<compile_context>
chip_gen: v5e
topology: v5e:2x2
jax: 0.10.0
libtpu: 0.0.40
codegen_flags: <defaults>
</compile_context>

<pallas_src>
import functools

import jax
import jax.numpy as jnp
from jax.experimental import pallas as pl
from jax.experimental.pallas import tpu as pltpu


def _cdiv(a, b):
    return -(-a // b)


def _round_up(x, m):
    return _cdiv(x, m) * m


def _vmem_capacity_bytes():
    """Per-TensorCore VMEM capacity (128 MiB on v5e/v6e, 64 MiB on v7x)."""
    try:
        return int(pltpu.get_tpu_info().vmem_capacity_bytes)
    except Exception:
        return 64 * 1024 * 1024        # conservative fallback (smallest tier)


# ----------------------------------------------------------------------------
# Kernel
# ----------------------------------------------------------------------------
def joint_kernel(enc_ref, dec_ref, w_ref, b_ref, out_ref):
    """add + tanh + projection matmul + log_softmax for one (tT, tU) tile.

    enc_ref : (1, tT, H)     bf16 pre-linear'ed encoder tile
    dec_ref : (1, tU, H)     bf16 pre-linear'ed predictor tile
    w_ref   : (H, V)         bf16 projection weight (transposed, resident)
    b_ref   : (1, V)         f32  projection bias (resident)
    out_ref : (1, tT, tU, V) log-probabilities (bf16 or f32)
    """
    enc = enc_ref[0]                                   # (tT, H)  bf16
    dec = dec_ref[0]                                   # (tU, H)  bf16
    tT, H = enc.shape
    tU = dec.shape[0]
    V = w_ref.shape[1]

    # joint_func == 'add' followed by tanh.  bf16 elementwise halves vreg /
    # VMEM pressure on v6e/v7x (bf16 VPU/EUP); on v5e this is MXU-shadowed.
    h = jnp.tanh(enc[:, None, :] + dec[None, :, :])    # (tT, tU, H) bf16

    # tU % 16 == 0 (bf16 sublane packing) -> free reshape, one big MXU matmul
    # with M = tT * tU and f32 accumulation.
    h2 = h.reshape(tT * tU, H)
    logits = jnp.dot(h2, w_ref[...], preferred_element_type=jnp.float32)
    logits = logits + b_ref[...]                       # (M, V) + (1, V)

    # log_softmax over the vocab (lane) axis in f32; fused final subtraction.
    m = jnp.max(logits, axis=-1, keepdims=True)
    lse = jnp.log(jnp.sum(jnp.exp(logits - m), axis=-1, keepdims=True))
    logp = logits - (m + lse)

    out_ref[0] = logp.reshape(tT, tU, V).astype(out_ref.dtype)


# ----------------------------------------------------------------------------
# Tiling / wrapper
# ----------------------------------------------------------------------------
def _pick_tiles(T, U, H, V, out_itemsize, vmem_capacity):
    """Choose (tT, tU) minimizing T/U padding within a per-step VMEM budget."""
    # tU: multiple of 16 (bf16 sublane packing -> free in-kernel reshape),
    # chosen to minimize padded-U waste; ties broken towards the larger tile.
    u_cap = max(16, min(64, _round_up(U, 16)))
    candidates = [c for c in (16, 32, 48, 64) if c <= u_cap]
    tU = min(candidates, key=lambda c: (_round_up(U, c), -c))

    # Per-step working set (see kernel): double-buffered input/output tiles,
    # the bf16 joint tensor, ~2x f32 logits-sized temporaries plus the cast
    # of logp to the output dtype.  The projection weight/bias are resident
    # and single-buffered, so they are accounted once, separately.
    weight_bytes = H * V * 2 + V * 4
    budget = max(int(0.70 * vmem_capacity) - weight_bytes, 4 * 1024 * 1024)

    def step_bytes(t):
        m = t * tU
        return (2 * (t + tU) * H * 2            # input tiles, double-buffered
                + 3 * m * V * out_itemsize      # out tile x2 + logp cast
                + m * H * 2                     # joint tensor h (bf16)
                + 2 * m * V * 4)                # f32 logits temporaries

    t_cap = _round_up(T, 8)
    m_cap = max(8, (4096 // tU) // 8 * 8)       # soft cap on the MXU M dim
    tT_max = 8
    while tT_max + 8 <= min(t_cap, m_cap) and step_bytes(tT_max + 8) <= budget:
        tT_max += 8

    # Distribute T as evenly as possible over the minimal tile count so the
    # ragged last block wastes as little compute as possible.
    n_t = _cdiv(T, tT_max)
    tT = _round_up(_cdiv(T, n_t), 8)
    return tT, tU


def prepare_params(params):
    """One-time parameter prep (transpose/cast hoisted off the per-call path)."""
    V = params["w_proj"].shape[0]
    return {
        "w_enc": params["w_enc"], "b_enc": params["b_enc"],
        "w_prd": params["w_prd"], "b_prd": params["b_prd"],
        "w_proj_t": params["w_proj"].T.astype(jnp.bfloat16),    # (H, V)
        "b_proj_row": params["b_proj"].reshape(1, V).astype(jnp.float32),
    }


@functools.partial(jax.jit, static_argnames=("out_dtype",))
def joint_net_forward(enc_state, dec_state, params, out_dtype=jnp.bfloat16):
    """JointNet.forward (pre_linear=True, joint_func='add', post_linear=False).

    `params` is the dict returned by `prepare_params`.  Default output dtype
    is bf16 (halves the dominant (B,T,U,V) HBM writeback); pass
    out_dtype=jnp.float32 for full-precision log-probs.
    """
    # Pre-linear FFNs (glue: plain XLA matmuls; the T*U joint lattice is the
    # hot path and lives in the kernel).
    enc = enc_state @ params["w_enc"].T + params["b_enc"]      # (B, T, H)
    dec = dec_state @ params["w_prd"].T + params["b_prd"]      # (B, U, H)

    B, T, H = enc.shape
    U = dec.shape[1]
    w_proj_t = params["w_proj_t"]
    b_proj = params["b_proj_row"]
    V = w_proj_t.shape[1]

    out_itemsize = jnp.dtype(out_dtype).itemsize
    vmem_capacity = _vmem_capacity_bytes()
    tT, tU = _pick_tiles(T, U, H, V, out_itemsize, vmem_capacity)
    n_t = _cdiv(T, tT)
    n_u = _cdiv(U, tU)

    # bf16 MXU operands.  Inputs are zero-padded up to whole tiles (cheap:
    # they are only (B,T,H)/(B,U,H)); the OUTPUT is allocated at its exact
    # (B, T, U, V) shape -- the ragged final T/U blocks are clipped on
    # writeback, so there is no pad-then-slice copy of the joint tensor.
    enc = enc.astype(jnp.bfloat16)
    dec = dec.astype(jnp.bfloat16)
    if n_t * tT != T:
        enc = jnp.pad(enc, ((0, 0), (0, n_t * tT - T), (0, 0)))
    if n_u * tU != U:
        dec = jnp.pad(dec, ((0, 0), (0, n_u * tU - U), (0, 0)))

    # VMEM bookkeeping: per-step tiles/temporaries + single-buffered weight,
    # with headroom, clamped per generation.
    m = tT * tU
    need = (2 * (tT + tU) * H * 2
            + 3 * m * V * out_itemsize
            + m * H * 2
            + 2 * m * V * 4
            + H * V * 2 + V * 4)
    vmem_limit = int(min(max(int(need * 1.3), 32 * 1024 * 1024),
                         vmem_capacity - 16 * 1024 * 1024,
                         100 * 1024 * 1024))

    grid = (B, n_t, n_u)

    out = pl.pallas_call(
        joint_kernel,
        out_shape=jax.ShapeDtypeStruct((B, T, U, V), out_dtype),
        grid_spec=pltpu.PrefetchScalarGridSpec(
            num_scalar_prefetch=0,
            grid=grid,
            in_specs=[
                pl.BlockSpec((1, tT, H), lambda b, ti, uj: (b, ti, 0)),
                pl.BlockSpec((1, tU, H), lambda b, ti, uj: (b, uj, 0)),
                # Grid-invariant projection weight / bias: fetched once, kept
                # resident, single-buffered (halves their VMEM footprint).
                pl.BlockSpec((H, V), lambda b, ti, uj: (0, 0),
                             pipeline_mode=pl.Buffered(1)),
                pl.BlockSpec((1, V), lambda b, ti, uj: (0, 0),
                             pipeline_mode=pl.Buffered(1)),
            ],
            out_specs=pl.BlockSpec((1, tT, tU, V),
                                   lambda b, ti, uj: (b, ti, uj, 0)),
        ),
        compiler_params=pltpu.CompilerParams(
            dimension_semantics=("parallel", "parallel", "parallel"),
            vmem_limit_bytes=vmem_limit,
        ),
    )(enc, dec, w_proj_t, b_proj)

    return out


# ----------------------------------------------------------------------------
# Params / reference
# ----------------------------------------------------------------------------
def init_params(key, input_size, inner_dim, vocab_size):
    """Deterministic synthetic parameter init (shapes match the PyTorch module)."""
    k_enc, k_prd, k_fwd, k_proj = jax.random.split(key, 4)

    def uniform(k, shape, limit):
        return jax.random.uniform(k, shape, jnp.float32, -limit, limit)

    lim_in = 1.0 / (input_size ** 0.5)                         # nn.Linear default
    lim_fwd = (6.0 / (input_size + inner_dim)) ** 0.5          # xavier_uniform
    lim_proj = (6.0 / (inner_dim + vocab_size)) ** 0.5

    return {
        "w_enc": uniform(k_enc, (inner_dim, input_size), lim_in),
        "b_enc": jnp.zeros((inner_dim,), jnp.float32),
        "w_prd": uniform(k_prd, (inner_dim, input_size), lim_in),
        "b_prd": jnp.zeros((inner_dim,), jnp.float32),
        # forward_layer exists in the module but is unused when post_linear=False
        "w_fwd": uniform(k_fwd, (inner_dim, input_size), lim_fwd),
        "b_fwd": jnp.zeros((inner_dim,), jnp.float32),
        "w_proj": uniform(k_proj, (vocab_size, inner_dim), lim_proj),
        "b_proj": jnp.zeros((vocab_size,), jnp.float32),
    }


def joint_net_reference(enc_state, dec_state, params, match_kernel_precision):
    """Pure-JAX reference; optionally mirrors the kernel's bf16 MXU operands."""
    enc = enc_state @ params["w_enc"].T + params["b_enc"]
    dec = dec_state @ params["w_prd"].T + params["b_prd"]
    if match_kernel_precision:
        enc = enc.astype(jnp.bfloat16)
        dec = dec.astype(jnp.bfloat16)
        joint = jnp.tanh(enc[:, :, None, :] + dec[:, None, :, :])
        w = params["w_proj"].T.astype(jnp.bfloat16)
        logits = jnp.einsum("btuh,hv->btuv", joint, w,
                            preferred_element_type=jnp.float32)
    else:
        joint = jnp.tanh(enc[:, :, None, :] + dec[:, None, :, :])
        logits = joint @ params["w_proj"].T
    logits = logits + params["b_proj"].astype(jnp.float32)
    return jax.nn.log_softmax(logits, axis=-1)


# ----------------------------------------------------------------------------
# Smoke test
# ----------------------------------------------------------------------------
if __name__ == "__main__":
    # T=19 / U=6 exercise ragged (clipped) output edge blocks along both axes.
    B, T, U = 2, 19, 6
    input_size, inner_dim, vocab_size = 64, 128, 256

    key = jax.random.PRNGKey(0)
    k_params, k_enc, k_dec = jax.random.split(key, 3)

    raw_params = init_params(k_params, input_size, inner_dim, vocab_size)
    params = prepare_params(raw_params)        # hoisted transpose/cast, done once
    enc_state = jax.random.normal(k_enc, (B, T, input_size), jnp.float32)
    dec_state = jax.random.normal(k_dec, (B, U, input_size), jnp.float32)

    # --- f32 output path: tight correctness checks ------------------------
    out_f32 = jax.block_until_ready(
        joint_net_forward(enc_state, dec_state, params, out_dtype=jnp.float32))
    assert out_f32.shape == (B, T, U, vocab_size), out_f32.shape

    ref_bf16 = joint_net_reference(enc_state, dec_state, raw_params,
                                   match_kernel_precision=True)
    err_bf16 = float(jnp.max(jnp.abs(out_f32 - ref_bf16)))
    assert err_bf16 < 2.5e-2, err_bf16

    ref_f32 = joint_net_reference(enc_state, dec_state, raw_params,
                                  match_kernel_precision=False)
    err_f32 = float(jnp.max(jnp.abs(out_f32 - ref_f32)))
    assert err_f32 < 6e-2, err_f32

    row_sums = jnp.exp(out_f32).sum(axis=-1)
    assert bool(jnp.allclose(row_sums, 1.0, atol=1e-3)), row_sums

    # --- default bf16 output path: halves the dominant HBM writeback ------
    out_bf16 = jax.block_until_ready(
        joint_net_forward(enc_state, dec_state, params))
    assert out_bf16.dtype == jnp.bfloat16
    assert out_bf16.shape == (B, T, U, vocab_size), out_bf16.shape
    err_out = float(jnp.max(jnp.abs(out_bf16.astype(jnp.float32) - out_f32)))
    assert err_out < 1e-1, err_out
    row_sums16 = jnp.exp(out_bf16.astype(jnp.float32)).sum(axis=-1)
    assert bool(jnp.allclose(row_sums16, 1.0, atol=5e-2)), row_sums16

    print("KERNEL_OK")
</pallas_src>

<mosaic_0001>
module attributes {stable_mosaic.version = 11 : i64} {
  func.func @joint_kernel(%arg0: i32, %arg1: i32, %arg2: i32, %arg3: memref<1x24x128xbf16, #tpu.memory_space<vmem>>, %arg4: memref<1x16x128xbf16, #tpu.memory_space<vmem>>, %arg5: memref<128x256xbf16, #tpu.memory_space<vmem>>, %arg6: memref<1x256xf32, #tpu.memory_space<vmem>>, %arg7: memref<1x24x16x256xf32, #tpu.memory_space<vmem>>) attributes {dimension_semantics = [#tpu.dimension_semantics<parallel>, #tpu.dimension_semantics<parallel>, #tpu.dimension_semantics<parallel>], iteration_bounds = array<i64: 2, 1, 1>, scalar_prefetch = 0 : i64, scratch_operands = 0 : i64, tpu.core_type = #tpu.core_type<tc>, window_params = [{transform_indices = @transform_0, window_bounds = array<i64: 1, 24, 128>}, {transform_indices = @transform_1, window_bounds = array<i64: 1, 16, 128>}, {pipeline_mode = #tpu.pipeline_mode<synchronous>, transform_indices = @transform_2, window_bounds = array<i64: 128, 256>}, {pipeline_mode = #tpu.pipeline_mode<synchronous>, transform_indices = @transform_3, window_bounds = array<i64: 1, 256>}, {transform_indices = @transform_4, window_bounds = array<i64: 1, 24, 16, 256>}]} {
    %c0 = arith.constant 0 : index
    %c0_0 = arith.constant 0 : index
    %c0_1 = arith.constant 0 : index
    %0 = vector.load %arg3[%c0, %c0_0, %c0_1] : memref<1x24x128xbf16, #tpu.memory_space<vmem>>, vector<1x24x128xbf16>
    %1 = vector.shape_cast %0 : vector<1x24x128xbf16> to vector<24x128xbf16>
    %c0_2 = arith.constant 0 : index
    %c0_3 = arith.constant 0 : index
    %c0_4 = arith.constant 0 : index
    %2 = vector.load %arg4[%c0_2, %c0_3, %c0_4] : memref<1x16x128xbf16, #tpu.memory_space<vmem>>, vector<1x16x128xbf16>
    %3 = vector.shape_cast %2 : vector<1x16x128xbf16> to vector<16x128xbf16>
    %4 = vector.shape_cast %1 : vector<24x128xbf16> to vector<24x1x128xbf16>
    %5 = vector.shape_cast %3 : vector<16x128xbf16> to vector<1x16x128xbf16>
    %6 = vector.broadcast %4 : vector<24x1x128xbf16> to vector<24x16x128xbf16>
    %7 = vector.broadcast %5 : vector<1x16x128xbf16> to vector<24x16x128xbf16>
    %8 = arith.addf %6, %7 : vector<24x16x128xbf16>
    %9 = math.tanh %8 : vector<24x16x128xbf16>
    %10 = vector.shape_cast %9 : vector<24x16x128xbf16> to vector<384x128xbf16>
    %c0_5 = arith.constant 0 : index
    %c0_6 = arith.constant 0 : index
    %11 = vector.load %arg5[%c0_5, %c0_6] : memref<128x256xbf16, #tpu.memory_space<vmem>>, vector<128x256xbf16>
    %cst = arith.constant dense<0.000000e+00> : vector<384x256xf32>
    %12 = tpu.matmul %10, %11, %cst {dimension_numbers = #tpu.dot_dimension_numbers<[1], [0], [0], [1], [0, 0, 1, 1], [], []>} : vector<384x128xbf16>, vector<128x256xbf16>, vector<384x256xf32> -> vector<384x256xf32>
    %c0_7 = arith.constant 0 : index
    %c0_8 = arith.constant 0 : index
    %13 = vector.load %arg6[%c0_7, %c0_8] : memref<1x256xf32, #tpu.memory_space<vmem>>, vector<1x256xf32>
    %14 = vector.broadcast %13 : vector<1x256xf32> to vector<384x256xf32>
    %15 = arith.addf %12, %14 : vector<384x256xf32>
    %cst_9 = arith.constant dense<0xFF800000> : vector<384xf32>
    %16 = vector.multi_reduction <maximumf>, %15, %cst_9 [1] : vector<384x256xf32> to vector<384xf32>
    %17 = vector.shape_cast %16 : vector<384xf32> to vector<384x1xf32>
    %18 = vector.broadcast %17 : vector<384x1xf32> to vector<384x256xf32>
    %19 = arith.subf %15, %18 : vector<384x256xf32>
    %20 = math.exp %19 : vector<384x256xf32>
    %cst_10 = arith.constant dense<0.000000e+00> : vector<384xf32>
    %21 = vector.multi_reduction <add>, %20, %cst_10 [1] : vector<384x256xf32> to vector<384xf32>
    %22 = vector.shape_cast %21 : vector<384xf32> to vector<384x1xf32>
    %23 = math.log %22 : vector<384x1xf32>
    %24 = arith.addf %17, %23 : vector<384x1xf32>
    %25 = vector.broadcast %24 : vector<384x1xf32> to vector<384x256xf32>
    %26 = arith.subf %15, %25 : vector<384x256xf32>
    %27 = vector.shape_cast %26 : vector<384x256xf32> to vector<24x16x256xf32>
    %c0_11 = arith.constant 0 : index
    %c0_12 = arith.constant 0 : index
    %c0_13 = arith.constant 0 : index
    %c0_14 = arith.constant 0 : index
    %28 = vector.load %arg7[%c0_11, %c0_12, %c0_13, %c0_14] : memref<1x24x16x256xf32, #tpu.memory_space<vmem>>, vector<1x24x16x256xf32>
    %29 = vector.shape_cast %28 : vector<1x24x16x256xf32> to vector<24x16x256xf32>
    %30 = vector.shape_cast %27 : vector<24x16x256xf32> to vector<1x24x16x256xf32>
    tpu.vector_store %arg7[%c0_11, %c0_12, %c0_13, %c0_14], %30 {strides = array<i32>} : memref<1x24x16x256xf32, #tpu.memory_space<vmem>>, vector<1x24x16x256xf32>,
    return
  }
  func.func @transform_0(%arg0: i32, %arg1: i32, %arg2: i32) -> (i32, i32, i32) {
    %c0_i32 = arith.constant 0 : i32
    %c0_i32_0 = arith.constant 0 : i32
    return %arg0, %arg1, %c0_i32 : i32, i32, i32
  }
  func.func @transform_1(%arg0: i32, %arg1: i32, %arg2: i32) -> (i32, i32, i32) {
    %c0_i32 = arith.constant 0 : i32
    %c0_i32_0 = arith.constant 0 : i32
    return %arg0, %arg2, %c0_i32 : i32, i32, i32
  }
  func.func @transform_2(%arg0: i32, %arg1: i32, %arg2: i32) -> (i32, i32) {
    %c0_i32 = arith.constant 0 : i32
    %c0_i32_0 = arith.constant 0 : i32
    %c0_i32_1 = arith.constant 0 : i32
    return %c0_i32, %c0_i32_0 : i32, i32
  }
  func.func @transform_3(%arg0: i32, %arg1: i32, %arg2: i32) -> (i32, i32) {
    %c0_i32 = arith.constant 0 : i32
    %c0_i32_0 = arith.constant 0 : i32
    %c0_i32_1 = arith.constant 0 : i32
    return %c0_i32, %c0_i32_0 : i32, i32
  }
  func.func @transform_4(%arg0: i32, %arg1: i32, %arg2: i32) -> (i32, i32, i32, i32) {
    %c0_i32 = arith.constant 0 : i32
    %c0_i32_0 = arith.constant 0 : i32
    return %arg0, %arg1, %arg2, %c0_i32 : i32, i32, i32, i32
  }
}

</mosaic_0001>

<bundles_post_ra>
// kernel: joint_net_forward.1
= control target key start
LH: loop header
LB: loop body
LE: loop exit
PB: predicated region body
PF: predicated region fallthrough
CT: control target
= control target key end

     0   :  { %s3257_s15 = smov 0   ;;  %s3259_s16 = smov 0   ;;  %s4601_s0 = inlined_call_operand.vmem [shape: bf16[2,24,128], index: 0, kind: input, shape index: {}]   ;;  %s4602_s1 = inlined_call_operand.vmem [shape: bf16[2,16,128], index: 1, kind: input, shape index: {}]   ;;  %s4603_s2 = inlined_call_operand.vmem [shape: bf16[128,256], index: 2, kind: input, shape index: {}]   ;;  %s4604_s3 = inlined_call_operand.vmem [shape: f32[1,256], index: 3, kind: input, shape index: {}]   ;;  %s4605_s4 = inlined_call_operand.vmem [shape: f32[2,19,6,256], index: 4, kind: output, shape index: {}]  }
   0x1   :  { %s3261_s17 = smov 0   ;;  %s3263_s18 = smov 0  }
   0x2   :  { %s3265_s19 = smov 0  }
   0x3 LB: > { %s2477_s20 = sadd.s32 4294967295, %s3198_s19   ;;  %s33_s21 = sadd.s32 1, %s3194_s18  ;;  %s3198_s19 = sphi %s3265_s19, %s14_s19   ;;  %s3194_s18 = sphi %s3263_s18, %s4960_s18   ;;  %s3190_s17 = sphi %s3261_s17, %s4959_s17   ;;  %s3186_s16 = sphi %s3259_s16, %s4958_s16   ;;  %s3182_s15 = sphi %s3257_s15, %s4957_s15  }
   0x4   : > { %p35_p0 = scmp.ge.s32.totalorder %s33_s21, 2  ;;  %s142_s22 = sadd.s32 1, %s3186_s16 }
   0x5   : > { %p152_p1 = scmp.ne.s32.totalorder %s3186_s16, %s3182_s15  ;;  %p153_p2 = scmp.eq.s32.totalorder %s2477_s20, 1 }
   0x6   : > { %s4962_s21 = smov (%p35_p0, %s33_s21), 0  ;;  %p2481_p4 = scmp.ge.s32.totalorder %s3198_s19, 1 }
   0x7   : > { %p3289_p3 = por %p153_p2, %p152_p1  ;;  %s135_s24 = ssub.s32 %s3194_s18, %s4962_s21 }
   0x8   : > { %p209_p5 = scmp.lt.s32.totalorder %s3198_s19, 3  ;;  %p140_p6 = scmp.eq.s32.totalorder %s135_s24, 0 }
   0xa   : > { %p210_p7 = pnand %p2481_p4, %p209_p5 }
   0xb   : > { %s3298_s25 = scalar_select %p140_p6, %s3186_s16, %s142_s22  }
   0xc   : > { %213 = sbr.rel (%p210_p7) target bundleno = 711 (0x2c7), region = 36 }
  0x11   : > { %v2555_v0 = vld [vmem:[%s4603_s2 + $0x70] sm:$0xf]  ;;  %v2592_v1 = vld [vmem:[%s4603_s2 + $0x74] sm:$0xf0]  ;;  %v2591_v2 = vld [vmem:[%s4603_s2 + $0x74] sm:$0xf] }
  0x12   : > { %v2556_v3 = vor.u32 %v2592_v1, %v2555_v0  ;;  %v2557_v4 = vld [vmem:[%s4603_s2 + $0x78] sm:$0xf0]  ;;  %v2547_v5 = vld [vmem:[%s4603_s2 + $0x60] sm:$0xf]  ;;  %v2590_v6 = vld [vmem:[%s4603_s2 + $0x64] sm:$0xf0] }
  0x13   : > { %v2560_v7 = vor.u32 %v2591_v2, %v2557_v4  ;;  %v2589_v8 = vld [vmem:[%s4603_s2 + $0x64] sm:$0xf]  ;;  %v2549_v9 = vld [vmem:[%s4603_s2 + $0x68] sm:$0xf0]  ;;  %v2548_v10 = vor.u32 %v2590_v6, %v2547_v5  ;;  %v2539_v12 = vld [vmem:[%s4603_s2 + $0x50] sm:$0xf] }
  0x14   : > { %1008 = vmatpush.bf16.msra.mxu0 %v2556_v3  ;;  %2597 = vmatpush.bf16.msra.mxu2 %v2556_v3  ;;  %v2552_v11 = vor.u32 %v2589_v8, %v2549_v9  ;;  %v2588_v13 = vld [vmem:[%s4603_s2 + $0x54] sm:$0xf0]  ;;  %v2587_v14 = vld [vmem:[%s4603_s2 + $0x54] sm:$0xf]  ;;  %v2541_v15 = vld [vmem:[%s4603_s2 + $0x58] sm:$0xf0] }
  0x15   : > { %1137 = vmatpush.bf16.msra.mxu1 %v2560_v7  ;;  %2605 = vmatpush.bf16.msra.mxu3 %v2560_v7  ;;  %v2540_v16 = vor.u32 %v2588_v13, %v2539_v12  ;;  %v2544_v17 = vor.u32 %v2587_v14, %v2541_v15  ;;  %v2531_v18 = vld [vmem:[%s4603_s2 + $0x40] sm:$0xf]  ;;  %v2586_v19 = vld [vmem:[%s4603_s2 + $0x44] sm:$0xf0]  ;;  %v2585_v20 = vld [vmem:[%s4603_s2 + $0x44] sm:$0xf] }
  0x16   : > { %v2533_v21 = vld [vmem:[%s4603_s2 + $0x48] sm:$0xf0]  ;;  %p248_p8 = scmp.lt.s32.totalorder %s3190_s17, 1  ;;  %v2532_v22 = vor.u32 %v2586_v19, %v2531_v18  ;;  %v2523_v24 = vld [vmem:[%s4603_s2 + $0x30] sm:$0xf]  ;;  %vm285_vm0 = vcmask 1040384  }
  0x17   : > { %v2536_v23 = vor.u32 %v2585_v20, %v2533_v21  ;;  %v2584_v25 = vld [vmem:[%s4603_s2 + $0x34] sm:$0xf0]  ;;  %v2583_v26 = vld [vmem:[%s4603_s2 + $0x34] sm:$0xf]  ;;  %v2525_v27 = vld [vmem:[%s4603_s2 + $0x38] sm:$0xf0] }
  0x18   : > { %1009 = vmatpush.bf16.msra.mxu0 %v2548_v10  ;;  %2598 = vmatpush.bf16.msra.mxu2 %v2548_v10  ;;  %s3356_s26 = scalar_select %p248_p8, %s3190_s17, 1  ;;  %v2524_v28 = vor.u32 %v2584_v25, %v2523_v24  ;;  %v2515_v29 = vld [vmem:[%s4603_s2 + $0x20] sm:$0xf]  ;;  %v2582_v30 = vld [vmem:[%s4603_s2 + $0x24] sm:$0xf0]  ;;  %v2528_v31 = vor.u32 %v2583_v26, %v2525_v27  ;;  %vm294_vm1 = vcmask 1042434  }
  0x19   : > { %1138 = vmatpush.bf16.msra.mxu1 %v2552_v11  ;;  %2606 = vmatpush.bf16.msra.mxu3 %v2552_v11  ;;  %v2581_v32 = vld [vmem:[%s4603_s2 + $0x24] sm:$0xf]  ;;  %v2517_v33 = vld [vmem:[%s4603_s2 + $0x28] sm:$0xf0]  ;;  %vm290_vm2 = vcmask 1041409   ;;  %v2516_v38 = vor.u32 %v2582_v30, %v2515_v29  ;;  %vm298_vm3 = vcmask 1043459  }
  0x1a   : > { %s2614_s5 = smul.u32 12, %s3356_s26  ;;  %s2576_s24 = sshll.u32 %s3356_s26, 3  ;;  %v2507_v39 = vld [vmem:[%s4603_s2 + $0x10] sm:$0xf]  ;;  %v2580_v40 = vld [vmem:[%s4603_s2 + $0x14] sm:$0xf0]  ;;  %v2520_v41 = vor.u32 %v2581_v32, %v2517_v33 }
  0x1b   : > { %s265_s6 = scalar_lea.vmem %s4602_s1, %s2576_s24  ;;  %v2579_v44 = vld [vmem:[%s4603_s2 + $0x14] sm:$0xf]  ;;  %v2509_v45 = vld [vmem:[%s4603_s2 + $0x18] sm:$0xf0]  ;;  %v2508_v50 = vor.u32 %v2580_v40, %v2507_v39  ;;  %v2499_v52 = vld [vmem:[%s4603_s2] sm:$0xf] }
  0x1c   : > { %1010 = vmatpush.bf16.msra.mxu0 %v2540_v16  ;;  %2599 = vmatpush.bf16.msra.mxu2 %v2540_v16  ;;  %s3380_s22 = scalar_lea.vmem %s4601_s0, %s2614_s5  ;;  %v2578_v53 = vld [vmem:[%s4603_s2 + $0x4] sm:$0xf0]  ;;  %v2594_v54 = vld [vmem:[%s265_s6] sm:$0xff]   ;;  %v2512_v59 = vor.u32 %v2579_v44, %v2509_v45  ;;  %v2501_v62 = vld [vmem:[%s4603_s2 + $0x8] sm:$0xf0]  ;;  %s244_s29 = sand.u32 1, %s3182_s15  }
  0x1d   : > { %1139 = vmatpush.bf16.msra.mxu1 %v2544_v17  ;;  %2607 = vmatpush.bf16.msra.mxu3 %v2544_v17  ;;  %v3384_v34 = vld [vmem:[%s3380_s22] sm:$0xf]  ;;  %v3387_v35 = vld [vmem:[%s3380_s22 + $0x4] sm:$0xf]  ;;  %v2500_v3 = vor.u32 %v2578_v53, %v2499_v52  ;;  %v3436_v4 = vunpack.c.l.bf16 %v2594_v54  ;;  %v3438_v5 = vunpack.c.h.bf16 %v2594_v54  ;;  %s2613_s30 = smul.u32 768, %s244_s29  ;;  %s4472_s11 = smov (%p3289_p3), 0  }
  0x1e   : > { %v3390_v36 = vrot.slane %v3384_v34, 3  ;;  %v3393_v37 = vrot.slane %v3387_v35, 3  ;;  %v2577_v61 = vld [vmem:[%s4603_s2 + $0x4] sm:$0xf]  ;;  %s2615_s5 = smul.u32 (%p3289_p3), 304, %s3190_s17  ;;  %s4474_s12 = smov (%p3289_p3), 0  }
  0x1f   : > { %v2504_v11 = vor.u32 %v2577_v61, %v2501_v62  ;;  %s4147_s15 = scalar_lea.vmem [#allocation2], %s2613_s30  }
  0x20   : > { %1011 = vmatpush.bf16.msra.mxu0 %v2532_v22  ;;  %2600 = vmatpush.bf16.msra.mxu2 %v2532_v22  ;;  %v288_v42 = vsel %vm285_vm0, %v3384_v34, %v3390_v36  ;;  %v309_v43 = vsel %vm294_vm1, %v3387_v35, %v3393_v37  ;;  %v291_v49 = vsel %vm290_vm2, %v3384_v34, %v3390_v36  ;;  %s4464_s8 = scalar_lea.vmem (%p3289_p3), %s4605_s4, %s2615_s5   ;;  %s4953_s10 = smov (%p3289_p3), %s4147_s15 }
  0x21   : > { %1140 = vmatpush.bf16.msra.mxu1 %v2536_v23  ;;  %2608 = vmatpush.bf16.msra.mxu3 %v2536_v23  ;;  %v2485_v46 = vpack.i.b16 %v288_v42, %v288_v42  ;;  %v311_v47 = vrot.slane %v309_v43, 2  ;;  %v329_v48 = vunpack.i.h.s16 %v288_v42  ;;  %v312_v51 = vsel %vm298_vm3, %v3387_v35, %v3393_v37  ;;  %s4952_s9 = smov (%p3289_p3), %s4464_s8 }
  0x22   : > { %v3428_v60 = vrot.slane %v291_v49, 1  ;;  %v3440_v6 = vrot.slane %v312_v51, 3 }
  0x23   : > { %v376_v55 = vperm.slane %v2485_v46, 0  ;;  %v2491_v56 = vpack.i.b16 %v311_v47, %v311_v47  ;;  %v353_v57 = vpack.i.b16 %v329_v48, %v329_v48  ;;  %v341_v58 = vunpack.i.h.s16 %v311_v47 }
  0x24   : > { %1012 = vmatpush.bf16.msra.mxu0 %v2524_v28  ;;  %2601 = vmatpush.bf16.msra.mxu2 %v2524_v28  ;;  %v2486_v12 = vpack.i.b16 %v3428_v60, %v3428_v60  ;;  %v2492_v17 = vpack.i.b16 %v3440_v6, %v3440_v6  ;;  %v331_v52 = vunpack.i.h.s16 %v3428_v60 }
  0x25   : > { %1141 = vmatpush.bf16.msra.mxu1 %v2528_v31  ;;  %2609 = vmatpush.bf16.msra.mxu3 %v2528_v31  ;;  %v401_v63 = vpack.i.b16 %v376_v55, %v376_v55  ;;  %v388_v0 = vperm.slane %v2491_v56, 0  ;;  %v377_v1 = vperm.slane %v353_v57, 0  ;;  %v365_v2 = vpack.i.b16 %v341_v58, %v341_v58 }
  0x26   : > { %v378_v23 = vperm.slane %v2486_v12, 0  ;;  %v390_v31 = vperm.slane %v2492_v17, 0  ;;  %v343_v57 = vunpack.i.h.s16 %v3440_v6 }
  0x27   : > { %v403_v7 = vperm.slane %v401_v63, 0  ;;  %v449_v8 = vpack.i.b16 %v388_v0, %v388_v0  ;;  %v405_v9 = vpack.i.b16 %v377_v1, %v377_v1  ;;  %v389_v10 = vperm.slane %v365_v2, 0 }
  0x28   : > { %1013 = vmatpush.bf16.msra.mxu0 %v2516_v38  ;;  %2602 = vmatpush.bf16.msra.mxu2 %v2516_v38  ;;  %v409_v42 = vpack.i.b16 %v378_v23, %v378_v23  ;;  %v457_v47 = vpack.i.b16 %v390_v31, %v390_v31  ;;  %v355_v1 = vpack.i.b16 %v331_v52, %v331_v52 }
  0x29   : > { %1142 = vmatpush.bf16.msra.mxu1 %v2520_v41  ;;  %2610 = vmatpush.bf16.msra.mxu3 %v2520_v41  ;;  %v496_v13 = vunpack.c.l.bf16 %v403_v7  ;;  %v451_v14 = vperm.slane %v449_v8, 0  ;;  %v407_v15 = vperm.slane %v405_v9, 0  ;;  %v453_v16 = vpack.i.b16 %v389_v10, %v389_v10 }
  0x2a   : > { %v459_v54 = vperm.slane %v457_v47, 0  ;;  %v367_v10 = vpack.i.b16 %v343_v57, %v343_v57 }
  0x2b   : > { %v522_v18 = vadd.f32 %v3436_v4, %v496_v13  ;;  %v523_v19 = vadd.f32 %v3438_v5, %v496_v13  ;;  %v508_v20 = vunpack.c.l.bf16 %v451_v14  ;;  %v497_v21 = vunpack.c.l.bf16 %v407_v15 }
  0x2c   : > { %1014 = vmatpush.bf16.msra.mxu0 %v2508_v50  ;;  %2603 = vmatpush.bf16.msra.mxu2 %v2508_v50  ;;  %v455_v22 = vperm.slane %v453_v16, 0  ;;  %v411_v50 = vperm.slane %v409_v42, 0  ;;  %v510_v8 = vunpack.c.l.bf16 %v459_v54  ;;  %v379_v14 = vperm.slane %v355_v1, 0 }
  0x2d   : > { %1143 = vmatpush.bf16.msra.mxu1 %v2512_v59  ;;  %2611 = vmatpush.bf16.msra.mxu3 %v2512_v59  ;;  %v570_v24 = vpack.c.bf16 %v522_v18, %v522_v18  ;;  %v571_v25 = vpack.c.bf16 %v523_v19, %v523_v19  ;;  %v546_v26 = vadd.f32 %v3436_v4, %v508_v20  ;;  %v391_v19 = vperm.slane %v367_v10, 0 }
  0x2e   : > { %v547_v27 = vadd.f32 %v3438_v5, %v508_v20  ;;  %v524_v28 = vadd.f32 %v3436_v4, %v497_v21  ;;  %v525_v29 = vadd.f32 %v3438_v5, %v497_v21  ;;  %v509_v30 = vunpack.c.l.bf16 %v455_v22 }
  0x2f   : > { %v618_v32 = vunpack.c.l.bf16 %v570_v24  ;;  %v619_v33 = vunpack.c.l.bf16 %v571_v25  ;;  %v594_v38 = vpack.c.bf16 %v546_v26, %v546_v26  ;;  %v498_v62 = vunpack.c.l.bf16 %v411_v50 }
  0x30   : > { %1015 = vmatpush.bf16.msra.mxu0 %v2500_v3  ;;  %2604 = vmatpush.bf16.msra.mxu2 %v2500_v3  ;;  %v595_v39 = vpack.c.bf16 %v547_v27, %v547_v27  ;;  %v548_v40 = vadd.f32 %v3436_v4, %v509_v30  ;;  %v549_v41 = vadd.f32 %v3438_v5, %v509_v30 }
  0x31   : > { %1144 = vmatpush.bf16.msra.mxu1 %v2504_v11  ;;  %2612 = vmatpush.bf16.msra.mxu3 %v2504_v11  ;;  %2736 = vtanh.f32 %v618_v32  ;;  %v642_v43 = vunpack.c.l.bf16 %v594_v38  ;;  %v572_v45 = vpack.c.bf16 %v524_v28, %v524_v28  ;;  %v573_v46 = vpack.c.bf16 %v525_v29, %v525_v29 }
  0x32   : > { %v643_v44 = vunpack.c.l.bf16 %v595_v39  ;;  %2738 = vtanh.f32 %v619_v33  ;;  %v596_v48 = vpack.c.bf16 %v548_v40, %v548_v40  ;;  %v597_v49 = vpack.c.bf16 %v549_v41, %v549_v41  ;;  %v3464_v39 = vld [vmem:[%s3380_s22 + $0x8] sm:$0xf] }
  0x33   : > { %2740 = vtanh.f32 %v642_v43  ;;  %v620_v51 = vunpack.c.l.bf16 %v572_v45  ;;  %v621_v53 = vunpack.c.l.bf16 %v573_v46  ;;  %v526_v6 = vadd.f32 %v3436_v4, %v498_v62 }
  0x34   : > { %2742 = vtanh.f32 %v643_v44  ;;  %v644_v56 = vunpack.c.l.bf16 %v596_v48  ;;  %v645_v61 = vunpack.c.l.bf16 %v597_v49  ;;  %v527_v15 = vadd.f32 %v3438_v5, %v498_v62 }
  0x35   : > { %2744 = vtanh.f32 %v620_v51  ;;  %v550_v16 = vadd.f32 %v3436_v4, %v510_v8  ;;  %v574_v21 = vpack.c.bf16 %v526_v6, %v526_v6  ;;  %v551_v22 = vadd.f32 %v3438_v5, %v510_v8 }
  0x36   : > { %2746 = vtanh.f32 %v621_v53  ;;  %v413_v24 = vpack.i.b16 %v379_v14, %v379_v14  ;;  %v575_v26 = vpack.c.bf16 %v527_v15, %v527_v15  ;;  %v295_v28 = vsel %vm294_vm1, %v3384_v34, %v3390_v36 }
  0x37   : > { %v2737_v55 = vpop.eup %2736  ;;  %2748 = vtanh.f32 %v644_v56  ;;  %v598_v27 = vpack.c.bf16 %v550_v16, %v550_v16  ;;  %v461_v31 = vpack.i.b16 %v391_v19, %v391_v19  ;;  %v622_v33 = vunpack.c.l.bf16 %v574_v21 }
  0x38   : > { %v2739_v58 = vpop.eup %2738  ;;  %v714_v59 = vpack.c.bf16 %v2737_v55, %v2737_v55  ;;  %2750 = vtanh.f32 %v645_v61  ;;  %v599_v38 = vpack.c.bf16 %v551_v22, %v551_v22  ;;  %v415_v41 = vperm.slane %v413_v24, 0 }
  0x39   : > { %v2741_v63 = vpop.eup %2740  ;;  %v715_v0 = vpack.c.bf16 %v2739_v58, %v2739_v58  ;;  %v297_v42 = vrot.slane %v295_v28, 2  ;;  %v623_v43 = vunpack.c.l.bf16 %v575_v26  ;;  %v646_v44 = vunpack.c.l.bf16 %v598_v27 }
  0x3a   : > { %v2743_v2 = vpop.eup %2742  ;;  %v832_v3 = vunpack.c.l.b16 %v714_v59  ;;  %v738_v7 = vpack.c.bf16 %v2741_v63, %v2741_v63  ;;  %v463_v47 = vperm.slane %v461_v31, 0  ;;  %v3467_v48 = vrot.slane %v3464_v39, 3 }
  0x3b   : > { %v833_v60 = vunpack.c.l.b16 %v715_v0  ;;  %v739_v9 = vpack.c.bf16 %v2743_v2, %v2743_v2  ;;  %v2745_v17 = vpop.eup %2744  ;;  %2752 = vtanh.f32 %v622_v33  ;;  %v647_v50 = vunpack.c.l.bf16 %v599_v38 }
  0x3c   : > { %v856_v11 = vunpack.c.l.b16 %v738_v7  ;;  %v2747_v20 = vpop.eup %2746  ;;  %v716_v29 = vpack.c.bf16 %v2745_v17, %v2745_v17  ;;  %v499_v52 = vunpack.c.l.bf16 %v415_v41  ;;  %v2487_v53 = vpack.i.b16 %v297_v42, %v297_v42 }
  0x3d   : > { %v880_v12 = vpack.c.b16 %v833_v60, %v832_v3  ;;  %v857_v13 = vunpack.c.l.b16 %v739_v9  ;;  %v2749_v23 = vpop.eup %2748  ;;  %v717_v30 = vpack.c.bf16 %v2747_v20, %v2747_v20  ;;  %v317_v54 = vsel %vm285_vm0, %v3464_v39, %v3467_v48 }
  0x3e   : > { %v2751_v25 = vpop.eup %2750  ;;  %v740_v32 = vpack.c.bf16 %v2749_v23, %v2749_v23  ;;  %v834_v45 = vunpack.c.l.b16 %v716_v29  ;;  %2754 = vtanh.f32 %v623_v43  ;;  %v511_v56 = vunpack.c.l.bf16 %v463_v47 }
  0x3f   : > { %1016 = vmatmul.bf16.vlgmr.msra.gmra.mxu0 %v880_v12  ;;  %1145 = vmatmul.bf16.vlgmr.msra.gmra.mxu1 %v880_v12  ;;  %v892_v18 = vpack.c.b16 %v857_v13, %v856_v11  ;;  %v741_v40 = vpack.c.bf16 %v2751_v25, %v2751_v25  ;;  %v835_v46 = vunpack.c.l.b16 %v717_v30  ;;  %2756 = vtanh.f32 %v646_v44 }
  0x40   : > { %v858_v49 = vunpack.c.l.b16 %v740_v32  ;;  %v2493_v57 = vpack.i.b16 %v317_v54, %v317_v54  ;;  %2758 = vtanh.f32 %v647_v50  ;;  %v528_v59 = vadd.f32 %v3436_v4, %v499_v52 }
  0x41   : > { %1076 = vmatmul.bf16.vlgmr.msra.gmra.mxu2 %v892_v18  ;;  %1205 = vmatmul.bf16.vlgmr.msra.gmra.mxu3 %v892_v18  ;;  %v859_v51 = vunpack.c.l.b16 %v741_v40  ;;  %v881_v55 = vpack.c.b16 %v835_v46, %v834_v45  ;;  %v380_v61 = vperm.slane %v2487_v53, 0  ;;  %v2753_v62 = vpop.eup %2752  ;;  %v529_v63 = vadd.f32 %v3438_v5, %v499_v52 }
  0x42   : > { %v552_v0 = vadd.f32 %v3436_v4, %v511_v56  ;;  %v392_v1 = vperm.slane %v2493_v57, 0  ;;  %v553_v3 = vadd.f32 %v3438_v5, %v511_v56  ;;  %v576_v8 = vpack.c.bf16 %v528_v59, %v528_v59 }
  0x43   : > { %v893_v58 = vpack.c.b16 %v859_v51, %v858_v49  ;;  %v417_v60 = vpack.i.b16 %v380_v61, %v380_v61  ;;  %v718_v10 = vpack.c.bf16 %v2753_v62, %v2753_v62  ;;  %v577_v11 = vpack.c.bf16 %v529_v63, %v529_v63 }
  0x44   : > { %v2755_v2 = vpop.eup %2754  ;;  %v600_v12 = vpack.c.bf16 %v552_v0, %v552_v0  ;;  %v465_v13 = vpack.i.b16 %v392_v1, %v392_v1  ;;  %v601_v15 = vpack.c.bf16 %v553_v3, %v553_v3  ;;  %v624_v17 = vunpack.c.l.bf16 %v576_v8 }
  0x45   : > { %v2757_v7 = vpop.eup %2756  ;;  %v719_v6 = vpack.c.bf16 %v2755_v2, %v2755_v2  ;;  %v419_v18 = vperm.slane %v417_v60, 0  ;;  %v333_v19 = vunpack.i.h.s16 %v297_v42  ;;  %v836_v20 = vunpack.c.l.b16 %v718_v10 }
  0x46   : > { %v2759_v9 = vpop.eup %2758  ;;  %v742_v14 = vpack.c.bf16 %v2757_v7, %v2757_v7  ;;  %v625_v21 = vunpack.c.l.bf16 %v577_v11  ;;  %v648_v23 = vunpack.c.l.bf16 %v600_v12  ;;  %v467_v24 = vperm.slane %v465_v13, 0 }
  0x47   : > { %v743_v16 = vpack.c.bf16 %v2759_v9, %v2759_v9  ;;  %v837_v22 = vunpack.c.l.b16 %v719_v6  ;;  %v345_v25 = vunpack.i.h.s16 %v317_v54  ;;  %v649_v27 = vunpack.c.l.bf16 %v601_v15 }
  0x48   : > { %v860_v26 = vunpack.c.l.b16 %v742_v14  ;;  %2760 = vtanh.f32 %v624_v17  ;;  %v500_v29 = vunpack.c.l.bf16 %v419_v18  ;;  %v357_v30 = vpack.i.b16 %v333_v19, %v333_v19 }
  0x49   : > { %v861_v28 = vunpack.c.l.b16 %v743_v16  ;;  %2762 = vtanh.f32 %v625_v21  ;;  %v882_v31 = vpack.c.b16 %v837_v22, %v836_v20  ;;  %v512_v32 = vunpack.c.l.bf16 %v467_v24 }
  0x4a   : > { %2764 = vtanh.f32 %v648_v23  ;;  %v369_v33 = vpack.i.b16 %v345_v25, %v345_v25  ;;  %v530_v40 = vadd.f32 %v3436_v4, %v500_v29  ;;  %v381_v41 = vperm.slane %v357_v30, 0 }
  0x4b   : > { %2766 = vtanh.f32 %v649_v27  ;;  %v894_v38 = vpack.c.b16 %v861_v28, %v860_v26  ;;  %v531_v42 = vadd.f32 %v3438_v5, %v500_v29  ;;  %v554_v44 = vadd.f32 %v3436_v4, %v512_v32 }
  0x4c   : > { %v393_v45 = vperm.slane %v369_v33, 0  ;;  %v555_v47 = vadd.f32 %v3438_v5, %v512_v32  ;;  %v578_v50 = vpack.c.bf16 %v530_v40, %v530_v40  ;;  %v421_v51 = vpack.i.b16 %v381_v41, %v381_v41 }
  0x4d   : > { %v579_v54 = vpack.c.bf16 %v531_v42, %v531_v42  ;;  %v602_v57 = vpack.c.bf16 %v554_v44, %v554_v44  ;;  %v319_v62 = vsel %vm290_vm2, %v3464_v39, %v3467_v48 }
  0x4e   : > { %v2761_v43 = vpop.eup %2760  ;;  %v603_v61 = vpack.c.bf16 %v555_v47, %v555_v47  ;;  %v626_v0 = vunpack.c.l.bf16 %v578_v50  ;;  %v423_v1 = vperm.slane %v421_v51, 0  ;;  %v321_v10 = vrot.slane %v319_v62, 1 }
  0x4f   : > { %1021 = vmatmul.bf16.gmra.mxu0 %v881_v55  ;;  %1150 = vmatmul.bf16.gmra.mxu1 %v881_v55  ;;  %v2763_v46 = vpop.eup %2762  ;;  %v720_v53 = vpack.c.bf16 %v2761_v43, %v2761_v43  ;;  %v299_v55 = vsel %vm298_vm3, %v3384_v34, %v3390_v36  ;;  %v627_v7 = vunpack.c.l.bf16 %v579_v54  ;;  %v650_v60 = vunpack.c.l.bf16 %v602_v57 }
  0x50   : > { %v2765_v49 = vpop.eup %2764  ;;  %v721_v56 = vpack.c.bf16 %v2763_v46, %v2763_v46  ;;  %v301_v2 = vrot.slane %v299_v55, 3  ;;  %v651_v36 = vunpack.c.l.bf16 %v603_v61  ;;  %2768 = vtanh.f32 %v626_v0 }
  0x51   : > { %1081 = vmatmul.bf16.gmra.mxu2 %v893_v58  ;;  %1210 = vmatmul.bf16.gmra.mxu3 %v893_v58  ;;  %v2767_v52 = vpop.eup %2766  ;;  %v469_v58 = vpack.i.b16 %v393_v45, %v393_v45  ;;  %v744_v59 = vpack.c.bf16 %v2765_v49, %v2765_v49  ;;  %v838_v3 = vunpack.c.l.b16 %v720_v53  ;;  %v501_v6 = vunpack.c.l.bf16 %v423_v1 }
  0x52   : > { %v745_v63 = vpack.c.bf16 %v2767_v52, %v2767_v52  ;;  %v839_v8 = vunpack.c.l.b16 %v721_v56  ;;  %v2488_v12 = vpack.i.b16 %v301_v2, %v301_v2  ;;  %2770 = vtanh.f32 %v627_v7 }
  0x53   : > { %v471_v9 = vperm.slane %v469_v58, 0  ;;  %v862_v34 = vunpack.c.l.b16 %v744_v59  ;;  %2772 = vtanh.f32 %v650_v60  ;;  %v2494_v15 = vpack.i.b16 %v321_v10, %v321_v10 }
  0x54   : > { %v863_v11 = vunpack.c.l.b16 %v745_v63  ;;  %v883_v13 = vpack.c.b16 %v839_v8, %v838_v3  ;;  %2774 = vtanh.f32 %v651_v36  ;;  %v532_v17 = vadd.f32 %v3436_v4, %v501_v6 }
  0x55   : > { %v513_v14 = vunpack.c.l.bf16 %v471_v9  ;;  %v382_v18 = vperm.slane %v2488_v12, 0  ;;  %v533_v19 = vadd.f32 %v3438_v5, %v501_v6  ;;  %v394_v22 = vperm.slane %v2494_v15, 0 }
  0x56   : > { %v895_v16 = vpack.c.b16 %v863_v11, %v862_v34  ;;  %v2769_v20 = vpop.eup %2768  ;;  %v580_v26 = vpack.c.bf16 %v532_v17, %v532_v17  ;;  %v335_v44 = vunpack.i.h.s16 %v301_v2  ;;  %v347_v51 = vunpack.i.h.s16 %v321_v10 }
  0x57   : > { %v556_v21 = vadd.f32 %v3436_v4, %v513_v14  ;;  %v557_v24 = vadd.f32 %v3438_v5, %v513_v14  ;;  %v425_v27 = vpack.i.b16 %v382_v18, %v382_v18  ;;  %v722_v29 = vpack.c.bf16 %v2769_v20, %v2769_v20 }
  0x58   : > { %v2771_v23 = vpop.eup %2770  ;;  %v581_v30 = vpack.c.bf16 %v533_v19, %v533_v19  ;;  %v473_v33 = vpack.i.b16 %v394_v22, %v394_v22  ;;  %v628_v42 = vunpack.c.l.bf16 %v580_v26  ;;  %v359_v56 = vpack.i.b16 %v335_v44, %v335_v44 }
  0x59   : > { %v2773_v25 = vpop.eup %2772  ;;  %v604_v32 = vpack.c.bf16 %v556_v21, %v556_v21  ;;  %v605_v40 = vpack.c.bf16 %v557_v24, %v557_v24  ;;  %v427_v43 = vperm.slane %v425_v27, 0  ;;  %v840_v45 = vunpack.c.l.b16 %v722_v29 }
  0x5a   : > { %v2775_v28 = vpop.eup %2774  ;;  %v629_v46 = vunpack.c.l.bf16 %v581_v30  ;;  %v475_v50 = vperm.slane %v473_v33, 0  ;;  %2776 = vtanh.f32 %v628_v42  ;;  %v371_v59 = vpack.i.b16 %v347_v51, %v347_v51 }
  0x5b   : > { %v747_v41 = vpack.c.bf16 %v2775_v28, %v2775_v28  ;;  %v652_v49 = vunpack.c.l.bf16 %v604_v32  ;;  %v653_v53 = vunpack.c.l.bf16 %v605_v40  ;;  %v502_v55 = vunpack.c.l.bf16 %v427_v43 }
  0x5c   : > { %2778 = vtanh.f32 %v629_v46  ;;  %v514_v58 = vunpack.c.l.bf16 %v475_v50  ;;  %v383_v63 = vperm.slane %v359_v56, 0  ;;  %v395_v3 = vperm.slane %v371_v59, 0 }
  0x5d   : > { %v865_v54 = vunpack.c.l.b16 %v747_v41  ;;  %2780 = vtanh.f32 %v652_v49  ;;  %v534_v62 = vadd.f32 %v3436_v4, %v502_v55  ;;  %v535_v0 = vadd.f32 %v3438_v5, %v502_v55 }
  0x5e   : > { %2782 = vtanh.f32 %v653_v53  ;;  %v558_v2 = vadd.f32 %v3436_v4, %v514_v58  ;;  %v559_v8 = vadd.f32 %v3438_v5, %v514_v58  ;;  %v429_v10 = vpack.i.b16 %v383_v63, %v383_v63 }
  0x5f   : > { %1026 = vmatmul.bf16.gmra.mxu0 %v882_v31  ;;  %1155 = vmatmul.bf16.gmra.mxu1 %v882_v31  ;;  %v723_v31 = vpack.c.bf16 %v2771_v23, %v2771_v23  ;;  %v582_v9 = vpack.c.bf16 %v534_v62, %v534_v62  ;;  %v583_v11 = vpack.c.bf16 %v535_v0, %v535_v0 }
  0x60   : > { %v2777_v1 = vpop.eup %2776  ;;  %v606_v12 = vpack.c.bf16 %v558_v2, %v558_v2  ;;  %v607_v15 = vpack.c.bf16 %v559_v8, %v559_v8  ;;  %v431_v19 = vperm.slane %v429_v10, 0  ;;  %v304_v22 = vsel %vm285_vm0, %v3387_v35, %v3393_v37 }
  0x61   : > { %1086 = vmatmul.bf16.gmra.mxu2 %v894_v38  ;;  %1215 = vmatmul.bf16.gmra.mxu3 %v894_v38  ;;  %v746_v38 = vpack.c.bf16 %v2773_v25, %v2773_v25  ;;  %v841_v47 = vunpack.c.l.b16 %v723_v31  ;;  %v724_v36 = vpack.c.bf16 %v2777_v1, %v2777_v1  ;;  %v630_v18 = vunpack.c.l.bf16 %v582_v9 }
  0x62   : > { %v2779_v7 = vpop.eup %2778  ;;  %v631_v21 = vunpack.c.l.bf16 %v583_v11  ;;  %v654_v24 = vunpack.c.l.bf16 %v606_v12  ;;  %v655_v28 = vunpack.c.l.bf16 %v607_v15  ;;  %v503_v30 = vunpack.c.l.bf16 %v431_v19 }
  0x63   : > { %v864_v52 = vunpack.c.l.b16 %v746_v38  ;;  %v884_v57 = vpack.c.b16 %v841_v47, %v840_v45  ;;  %v2781_v60 = vpop.eup %2780  ;;  %v725_v6 = vpack.c.bf16 %v2779_v7, %v2779_v7  ;;  %v842_v20 = vunpack.c.l.b16 %v724_v36 }
  0x64   : > { %v2783_v34 = vpop.eup %2782  ;;  %v748_v14 = vpack.c.bf16 %v2781_v60, %v2781_v60  ;;  %2784 = vtanh.f32 %v630_v18  ;;  %v2489_v31 = vpack.i.b16 %v304_v22, %v304_v22  ;;  %v536_v41 = vadd.f32 %v3436_v4, %v503_v30 }
  0x65   : > { %v896_v61 = vpack.c.b16 %v865_v54, %v864_v52  ;;  %v749_v17 = vpack.c.bf16 %v2783_v34, %v2783_v34  ;;  %v843_v23 = vunpack.c.l.b16 %v725_v6  ;;  %2786 = vtanh.f32 %v631_v21 }
  0x66   : > { %v866_v27 = vunpack.c.l.b16 %v748_v14  ;;  %2788 = vtanh.f32 %v654_v24  ;;  %v384_v42 = vperm.slane %v2489_v31, 0  ;;  %v537_v43 = vadd.f32 %v3438_v5, %v503_v30 }
  0x67   : > { %v867_v29 = vunpack.c.l.b16 %v749_v17  ;;  %v885_v32 = vpack.c.b16 %v843_v23, %v842_v20  ;;  %2790 = vtanh.f32 %v655_v28  ;;  %v584_v51 = vpack.c.bf16 %v536_v41, %v536_v41 }
  0x68   : > { %v433_v52 = vpack.i.b16 %v384_v42, %v384_v42  ;;  %v585_v55 = vpack.c.bf16 %v537_v43, %v537_v43  ;;  %v337_v1 = vunpack.i.h.s16 %v304_v22 }
  0x69   : > { %v897_v40 = vpack.c.b16 %v867_v29, %v866_v27  ;;  %v632_v63 = vunpack.c.l.bf16 %v584_v51  ;;  %v306_v27 = vsel %vm290_vm2, %v3387_v35, %v3393_v37 }
  0x6a   : > { %v2785_v44 = vpop.eup %2784  ;;  %v435_v0 = vperm.slane %v433_v52, 0  ;;  %v361_v6 = vpack.i.b16 %v337_v1, %v337_v1  ;;  %v3514_v41 = vrot.slane %v306_v27, 1 }
  0x6b   : > { %v2787_v47 = vpop.eup %2786  ;;  %v726_v54 = vpack.c.bf16 %v2785_v44, %v2785_v44  ;;  %2792 = vtanh.f32 %v632_v63 }
  0x6c   : > { %v2789_v50 = vpop.eup %2788  ;;  %v727_v56 = vpack.c.bf16 %v2787_v47, %v2787_v47  ;;  %v504_v11 = vunpack.c.l.bf16 %v435_v0  ;;  %v385_v17 = vperm.slane %v361_v6, 0  ;;  %v2490_v52 = vpack.i.b16 %v3514_v41, %v3514_v41 }
  0x6d   : > { %v2791_v53 = vpop.eup %2790  ;;  %v750_v59 = vpack.c.bf16 %v2789_v50, %v2789_v50  ;;  %v844_v2 = vunpack.c.l.b16 %v726_v54 }
  0x6e   : > { %v751_v62 = vpack.c.bf16 %v2791_v53, %v2791_v53  ;;  %v845_v7 = vunpack.c.l.b16 %v727_v56  ;;  %v539_v18 = vadd.f32 %v3438_v5, %v504_v11 }
  0x6f   : > { %1031 = vmatmul.bf16.gmra.mxu0 %v883_v13  ;;  %1160 = vmatmul.bf16.gmra.mxu1 %v883_v13  ;;  %v477_v13 = vpack.i.b16 %v395_v3, %v395_v3  ;;  %v633_v3 = vunpack.c.l.bf16 %v585_v55  ;;  %v868_v10 = vunpack.c.l.b16 %v750_v59 }
  0x70   : > { %v869_v36 = vunpack.c.l.b16 %v751_v62  ;;  %v886_v12 = vpack.c.b16 %v845_v7, %v844_v2  ;;  %v587_v30 = vpack.c.bf16 %v539_v18, %v539_v18 }
  0x71   : > { %1091 = vmatmul.bf16.gmra.mxu2 %v895_v16  ;;  %1220 = vmatmul.bf16.gmra.mxu3 %v895_v16  ;;  %v322_v16 = vsel %vm294_vm1, %v3464_v39, %v3467_v48  ;;  %v479_v25 = vperm.slane %v477_v13, 0  ;;  %2794 = vtanh.f32 %v633_v3  ;;  %v2793_v19 = vpop.eup %2792 }
  0x72   : > { %v324_v26 = vrot.slane %v322_v16, 2  ;;  %v898_v15 = vpack.c.b16 %v869_v36, %v868_v10  ;;  %v538_v16 = vadd.f32 %v3436_v4, %v504_v11  ;;  %v728_v29 = vpack.c.bf16 %v2793_v19, %v2793_v19 }
  0x73   : > { %v515_v33 = vunpack.c.l.bf16 %v479_v25 }
  0x74   : > { %v2495_v38 = vpack.i.b16 %v324_v26, %v324_v26  ;;  %v349_v9 = vunpack.i.h.s16 %v324_v26  ;;  %v586_v25 = vpack.c.bf16 %v538_v16, %v538_v16  ;;  %v437_v26 = vpack.i.b16 %v385_v17, %v385_v17 }
  0x75   : > { %v560_v45 = vadd.f32 %v3436_v4, %v515_v33  ;;  %v561_v49 = vadd.f32 %v3438_v5, %v515_v33  ;;  %v846_v35 = vunpack.c.l.b16 %v728_v29  ;;  %v339_v29 = vunpack.i.h.s16 %v3514_v41 }
  0x76   : > { %v396_v46 = vperm.slane %v2495_v38, 0  ;;  %v373_v14 = vpack.i.b16 %v349_v9, %v349_v9  ;;  %v325_v38 = vsel %vm298_vm3, %v3464_v39, %v3467_v48  ;;  %v634_v44 = vunpack.c.l.bf16 %v586_v25 }
  0x77   : > { %v2795_v22 = vpop.eup %2794  ;;  %v3516_v47 = vrot.slane %v325_v38, 3  ;;  %v363_v38 = vpack.i.b16 %v339_v29, %v339_v29 }
  0x78   : > { %v481_v58 = vpack.i.b16 %v396_v46, %v396_v46  ;;  %v397_v21 = vperm.slane %v373_v14, 0  ;;  %v729_v31 = vpack.c.bf16 %v2795_v22, %v2795_v22  ;;  %v635_v46 = vunpack.c.l.bf16 %v587_v30 }
  0x79   : > { %v2496_v54 = vpack.i.b16 %v3516_v47, %v3516_v47 }
  0x7a   : > { %v483_v60 = vperm.slane %v481_v58, 0  ;;  %v485_v33 = vpack.i.b16 %v397_v21, %v397_v21  ;;  %v847_v37 = vunpack.c.l.b16 %v729_v31 }
  0x7b   : > { %v398_v62 = vperm.slane %v2496_v54, 0 }
  0x7c   : > { %v516_v13 = vunpack.c.l.bf16 %v483_v60  ;;  %v487_v50 = vperm.slane %v485_v33, 0  ;;  %v887_v55 = vpack.c.b16 %v847_v37, %v846_v35 }
  0x7d   : > { %v489_v10 = vpack.i.b16 %v398_v62, %v398_v62 }
  0x7e   : > { %v562_v20 = vadd.f32 %v3436_v4, %v516_v13  ;;  %v563_v23 = vadd.f32 %v3438_v5, %v516_v13  ;;  %v517_v56 = vunpack.c.l.bf16 %v487_v50  ;;  %v778_v13 = vld [vmem:[%s4604_s3] sm:$0x3] }
  0x7f   : > { %1036 = vmatmul.bf16.gmra.mxu0 %v884_v57  ;;  %1165 = vmatmul.bf16.gmra.mxu1 %v884_v57  ;;  %v608_v57 = vpack.c.bf16 %v560_v45, %v560_v45  ;;  %v439_v45 = vperm.slane %v437_v26, 0  ;;  %v491_v18 = vperm.slane %v489_v10, 0  ;;  %v3529_v22 = vperm.slane %v778_v13, 0 }
  0x80   : > { %v564_v0 = vadd.f32 %v3436_v4, %v517_v56  ;;  %v565_v2 = vadd.f32 %v3438_v5, %v517_v56  ;;  %v3531_v25 = vperm.slane %v778_v13, 1 }
  0x81   : > { %1096 = vmatmul.bf16.gmra.mxu2 %v896_v61  ;;  %1225 = vmatmul.bf16.gmra.mxu3 %v896_v61  ;;  %v609_v61 = vpack.c.bf16 %v561_v49, %v561_v49  ;;  %v656_v8 = vunpack.c.l.bf16 %v608_v57  ;;  %v505_v48 = vunpack.c.l.bf16 %v439_v45  ;;  %v386_v57 = vperm.slane %v2490_v52, 0 }
  0x82   : > { %v612_v11 = vpack.c.bf16 %v564_v0, %v564_v0  ;;  %v613_v6 = vpack.c.bf16 %v565_v2, %v565_v2 }
  0x83   : > { %v657_v34 = vunpack.c.l.bf16 %v609_v61  ;;  %2796 = vtanh.f32 %v656_v8  ;;  %v540_v59 = vadd.f32 %v3436_v4, %v505_v48  ;;  %v541_v61 = vadd.f32 %v3438_v5, %v505_v48 }
  0x84   : > { %v441_v3 = vpack.i.b16 %v386_v57, %v386_v57  ;;  %v660_v21 = vunpack.c.l.bf16 %v612_v11 }
  0x85   : > { %2798 = vtanh.f32 %v657_v34  ;;  %v588_v8 = vpack.c.bf16 %v540_v59, %v540_v59  ;;  %v589_v9 = vpack.c.bf16 %v541_v61, %v541_v61 }
  0x86   : > { %2800 = vtanh.f32 %v634_v44 }
  0x87   : > { %2802 = vtanh.f32 %v635_v46  ;;  %v636_v16 = vunpack.c.l.bf16 %v588_v8  ;;  %v637_v17 = vunpack.c.l.bf16 %v589_v9  ;;  %v387_v46 = vperm.slane %v363_v38, 0 }
  0x89   : > { %v2797_v24 = vpop.eup %2796  ;;  %v445_v48 = vpack.i.b16 %v387_v46, %v387_v46 }
  0x8a   : > { %v752_v42 = vpack.c.bf16 %v2797_v24, %v2797_v24 }
  0x8b   : > { %v2799_v28 = vpop.eup %2798 }
  0x8c   : > { %v753_v43 = vpack.c.bf16 %v2799_v28, %v2799_v28  ;;  %v870_v53 = vunpack.c.l.b16 %v752_v42  ;;  %v2801_v63 = vpop.eup %2800  ;;  %v518_v28 = vunpack.c.l.bf16 %v491_v18 }
  0x8d   : > { %v2803_v1 = vpop.eup %2802  ;;  %v730_v34 = vpack.c.bf16 %v2801_v63, %v2801_v63 }
  0x8e   : > { %v871_v39 = vunpack.c.l.b16 %v753_v43  ;;  %v731_v36 = vpack.c.bf16 %v2803_v1, %v2803_v1  ;;  %v566_v41 = vadd.f32 %v3436_v4, %v518_v28 }
  0x8f   : > { %1041 = vmatmul.bf16.gmra.mxu0 %v885_v32  ;;  %1170 = vmatmul.bf16.gmra.mxu1 %v885_v32  ;;  %v610_v32 = vpack.c.bf16 %v562_v20, %v562_v20  ;;  %v848_v19 = vunpack.c.l.b16 %v730_v34 }
  0x90   : > { %v899_v58 = vpack.c.b16 %v871_v39, %v870_v53  ;;  %v849_v20 = vunpack.c.l.b16 %v731_v36 }
  0x91   : > { %1101 = vmatmul.bf16.gmra.mxu2 %v897_v40  ;;  %1230 = vmatmul.bf16.gmra.mxu3 %v897_v40  ;;  %v611_v40 = vpack.c.bf16 %v563_v23, %v563_v23  ;;  %v658_v49 = vunpack.c.l.bf16 %v610_v32  ;;  %v661_v23 = vunpack.c.l.bf16 %v613_v6 }
  0x92   : > { %v888_v30 = vpack.c.b16 %v849_v20, %v848_v19 }
  0x93   : > { %v659_v51 = vunpack.c.l.bf16 %v611_v40  ;;  %2804 = vtanh.f32 %v658_v49  ;;  %v351_v40 = vunpack.i.h.s16 %v3516_v47  ;;  %v567_v47 = vadd.f32 %v3438_v5, %v518_v28 }
  0x95   : > { %2806 = vtanh.f32 %v659_v51  ;;  %v375_v35 = vpack.i.b16 %v351_v40, %v351_v40 }
  0x96   : > { %2808 = vtanh.f32 %v636_v16 }
  0x97   : > { %2810 = vtanh.f32 %v637_v17  ;;  %v399_v52 = vperm.slane %v375_v35, 0 }
  0x98   : > { %2812 = vtanh.f32 %v660_v21 }
  0x99   : > { %v2805_v7 = vpop.eup %2804  ;;  %2814 = vtanh.f32 %v661_v23  ;;  %v493_v59 = vpack.i.b16 %v399_v52, %v399_v52 }
  0x9a   : > { %v754_v14 = vpack.c.bf16 %v2805_v7, %v2805_v7 }
  0x9b   : > { %v2807_v60 = vpop.eup %2806  ;;  %v495_v6 = vperm.slane %v493_v59, 0 }
  0x9c   : > { %v872_v26 = vunpack.c.l.b16 %v754_v14  ;;  %v2809_v37 = vpop.eup %2808 }
  0x9d   : > { %v2811_v50 = vpop.eup %2810  ;;  %v732_v56 = vpack.c.bf16 %v2809_v37, %v2809_v37  ;;  %v519_v17 = vunpack.c.l.bf16 %v495_v6 }
  0x9e   : > { %v2813_v53 = vpop.eup %2812  ;;  %v733_v57 = vpack.c.bf16 %v2811_v50, %v2811_v50 }
  0x9f   : > { %1046 = vmatmul.bf16.gmra.mxu0 %v886_v12  ;;  %1175 = vmatmul.bf16.gmra.mxu1 %v886_v12  ;;  %v443_v12 = vperm.slane %v441_v3, 0  ;;  %v2815_v54 = vpop.eup %2814  ;;  %v756_v63 = vpack.c.bf16 %v2813_v53, %v2813_v53  ;;  %v850_v34 = vunpack.c.l.b16 %v732_v56 }
  0xa0   : > { %v757_v7 = vpack.c.bf16 %v2815_v54, %v2815_v54  ;;  %v851_v36 = vunpack.c.l.b16 %v733_v57 }
  0xa1   : > { %1106 = vmatmul.bf16.gmra.mxu2 %v898_v15  ;;  %1235 = vmatmul.bf16.gmra.mxu3 %v898_v15  ;;  %v755_v15 = vpack.c.bf16 %v2807_v60, %v2807_v60  ;;  %v506_v24 = vunpack.c.l.bf16 %v443_v12  ;;  %v447_v60 = vperm.slane %v445_v48, 0  ;;  %v874_v13 = vunpack.c.l.b16 %v756_v63 }
  0xa2   : > { %v875_v14 = vunpack.c.l.b16 %v757_v7  ;;  %v889_v16 = vpack.c.b16 %v851_v36, %v850_v34 }
  0xa3   : > { %v873_v27 = vunpack.c.l.b16 %v755_v15  ;;  %v542_v33 = vadd.f32 %v3436_v4, %v506_v24  ;;  %v543_v45 = vadd.f32 %v3438_v5, %v506_v24  ;;  %v507_v15 = vunpack.c.l.bf16 %v447_v60 }
  0xa5   : > { %v900_v44 = vpack.c.b16 %v873_v27, %v872_v26  ;;  %v590_v51 = vpack.c.bf16 %v542_v33, %v542_v33  ;;  %v591_v39 = vpack.c.bf16 %v543_v45, %v543_v45  ;;  %v901_v27 = vpack.c.b16 %v875_v14, %v874_v13 }
  0xa6   : > { %v544_v28 = vadd.f32 %v3436_v4, %v507_v15  ;;  %v568_v33 = vadd.f32 %v3436_v4, %v519_v17  ;;  %v569_v45 = vadd.f32 %v3438_v5, %v519_v17 }
  0xa7   : > { %v638_v0 = vunpack.c.l.bf16 %v590_v51  ;;  %v639_v8 = vunpack.c.l.bf16 %v591_v39 }
  0xa8   : > { %v592_v46 = vpack.c.bf16 %v544_v28, %v544_v28  ;;  %v616_v4 = vpack.c.bf16 %v568_v33, %v568_v33  ;;  %v617_v39 = vpack.c.bf16 %v569_v45, %v569_v45 }
  0xa9   : > { %2816 = vtanh.f32 %v638_v0 }
  0xaa   : > { %2818 = vtanh.f32 %v639_v8  ;;  %v640_v56 = vunpack.c.l.bf16 %v592_v46  ;;  %v664_v63 = vunpack.c.l.bf16 %v616_v4  ;;  %v665_v7 = vunpack.c.l.bf16 %v617_v39 }
  0xaf   : > { %1051 = vmatmul.bf16.gmra.mxu0 %v887_v55  ;;  %1180 = vmatmul.bf16.gmra.mxu1 %v887_v55  ;;  %v614_v55 = vpack.c.bf16 %v566_v41, %v566_v41  ;;  %v2817_v29 = vpop.eup %2816 }
  0xb0   : > { %v734_v37 = vpack.c.bf16 %v2817_v29, %v2817_v29 }
  0xb1   : > { %1111 = vmatmul.bf16.gmra.mxu2 %v899_v58  ;;  %1240 = vmatmul.bf16.gmra.mxu3 %v899_v58  ;;  %v615_v58 = vpack.c.bf16 %v567_v47, %v567_v47  ;;  %v662_v10 = vunpack.c.l.bf16 %v614_v55 }
  0xb2   : > { %v852_v59 = vunpack.c.l.b16 %v734_v37 }
  0xb3   : > { %v663_v11 = vunpack.c.l.bf16 %v615_v58  ;;  %2820 = vtanh.f32 %v662_v10 }
  0xb5   : > { %2822 = vtanh.f32 %v663_v11 }
  0xb6   : > { %2824 = vtanh.f32 %v640_v56 }
  0xbc   : > { %v1017_v31 = vpop.f32.mrf.mxu0  ;;  %v1146_v32 = vpop.f32.mrf.mxu1 }
  0xbd   : > { %v3537_v42 = vadd.f32 %v1017_v31, %v3529_v22  ;;  %v3540_v43 = vadd.f32 %v1146_v32, %v3531_v25  ;;  %v545_v31 = vadd.f32 %v3438_v5, %v507_v15  ;;  %v2819_v32 = vpop.eup %2818 }
  0xbe   : > { %v2821_v38 = vpop.eup %2820 }
  0xbf   : > { %4730 = vst [vmem:[#allocation3_spill] sm:$0xff] %v3537_v42  ;;  %1056 = vmatmul.bf16.gmra.mxu0 %v888_v30  ;;  %1185 = vmatmul.bf16.gmra.mxu1 %v888_v30  ;;  %v1266_v49 = vmax.f32 %v3537_v42, %v3540_v43  ;;  %v2823_v41 = vpop.eup %2822  ;;  %v593_v35 = vpack.c.bf16 %v545_v31, %v545_v31 }
  0xc0   : > { %4731 = vst [vmem:[#allocation4_spill] sm:$0xff] %v3540_v43  ;;  %v758_v47 = vpack.c.bf16 %v2821_v38, %v2821_v38  ;;  %v759_v5 = vpack.c.bf16 %v2823_v41, %v2823_v41  ;;  %v2825_v17 = vpop.eup %2824 }
  0xc1   : > { %1116 = vmatmul.bf16.gmra.mxu2 %v900_v44  ;;  %1245 = vmatmul.bf16.gmra.mxu3 %v900_v44  ;;  %v641_v58 = vunpack.c.l.bf16 %v593_v35  ;;  %v736_v29 = vpack.c.bf16 %v2825_v17, %v2825_v17 }
  0xc2   : > { %1267 = vmax.xlane.f32.xlu0 %v1266_v49  ;;  %v735_v49 = vpack.c.bf16 %v2819_v32, %v2819_v32 }
  0xc3   : > { %2826 = vtanh.f32 %v641_v58 }
  0xc4   : > { %v1019_v61 = vpop.f32.mrf.mxu0  ;;  %v1077_v62 = vpop.f32.mrf.mxu2  ;;  %2828 = vtanh.f32 %v664_v63 }
  0xc5   : > { %v3548_v1 = vadd.f32 %v1019_v61, %v3529_v22  ;;  %v1148_v2 = vpop.f32.mrf.mxu1  ;;  %v1206_v3 = vpop.f32.mrf.mxu3  ;;  %v3556_v18 = vadd.f32 %v1077_v62, %v3529_v22  ;;  %v853_v61 = vunpack.c.l.b16 %v735_v49  ;;  %v876_v62 = vunpack.c.l.b16 %v758_v47 }
  0xc6   : > { %v3551_v9 = vadd.f32 %v1148_v2, %v3531_v25  ;;  %v3559_v19 = vadd.f32 %v1206_v3, %v3531_v25  ;;  %v877_v3 = vunpack.c.l.b16 %v759_v5  ;;  %2830 = vtanh.f32 %v665_v7 }
  0xc7   : > { %4732 = vst [vmem:[#allocation5_spill] sm:$0xff] %v3548_v1  ;;  %v890_v8 = vpack.c.b16 %v853_v61, %v852_v59  ;;  %v854_v49 = vunpack.c.l.b16 %v736_v29 }
  0xc8   : > { %4733 = vst [vmem:[#allocation6_spill] sm:$0xff] %v3551_v9  ;;  %v1269_v12 = vmax.f32 %v3548_v1, %v3551_v9  ;;  %v1338_v40 = vmax.f32 %v3556_v18, %v3559_v19  ;;  %v902_v34 = vpack.c.b16 %v877_v3, %v876_v62 }
  0xc9   : > { %4734 = vst [vmem:[#allocation7_spill] sm:$0xff] %v3556_v18 }
  0xca   : > { %1270 = vmax.xlane.f32.xlu0 %v1269_v12  ;;  %4735 = vst [vmem:[#allocation8_spill] sm:$0xff] %v3559_v19 }
  0xcc   : > { %v1022_v20 = vpop.f32.mrf.mxu0  ;;  %v1079_v21 = vpop.f32.mrf.mxu2 }
  0xcd   : > { %v3562_v23 = vadd.f32 %v1022_v20, %v3529_v22  ;;  %v1151_v24 = vpop.f32.mrf.mxu1  ;;  %v1208_v26 = vpop.f32.mrf.mxu3  ;;  %v3576_v50 = vadd.f32 %v1079_v21, %v3529_v22 }
  0xce   : > { %v3566_v30 = vadd.f32 %v1151_v24, %v3531_v25  ;;  %v3579_v51 = vadd.f32 %v1208_v26, %v3531_v25  ;;  %v2827_v20 = vpop.eup %2826 }
  0xcf   : > { %4736 = vst [vmem:[#allocation9_spill] sm:$0xff] %v3562_v23  ;;  %1061 = vmatmul.bf16.gmra.mxu0 %v889_v16  ;;  %1190 = vmatmul.bf16.gmra.mxu1 %v889_v16  ;;  %v2829_v26 = vpop.eup %2828  ;;  %v737_v31 = vpack.c.bf16 %v2827_v20, %v2827_v20 }
  0xd0   : > { %4737 = vst [vmem:[#allocation10_spill] sm:$0xff] %v3566_v30  ;;  %v1272_v44 = vmax.f32 %v3562_v23, %v3566_v30  ;;  %v1341_v2 = vmax.f32 %v3576_v50, %v3579_v51  ;;  %v2831_v28 = vpop.eup %2830  ;;  %v760_v41 = vpack.c.bf16 %v2829_v26, %v2829_v26 }
  0xd1   : > { %1121 = vmatmul.bf16.gmra.mxu2 %v901_v27  ;;  %1250 = vmatmul.bf16.gmra.mxu3 %v901_v27  ;;  %4738 = vst [vmem:[#allocation11_spill] sm:$0xff] %v3576_v50  ;;  %v761_v46 = vpack.c.bf16 %v2831_v28, %v2831_v28  ;;  %v855_v47 = vunpack.c.l.b16 %v737_v31 }
  0xd2   : > { %1339 = vmax.xlane.f32.xlu0 %v1338_v40  ;;  %1273 = vmax.xlane.f32.xlu1 %v1272_v44  ;;  %4739 = vst [vmem:[#allocation12_spill] sm:$0xff] %v3579_v51 }
  0xd3   : > { %v879_v5 = vunpack.c.l.b16 %v761_v46  ;;  %v891_v39 = vpack.c.b16 %v855_v47, %v854_v49 }
  0xd4   : > { %v1024_v52 = vpop.f32.mrf.mxu0  ;;  %v1082_v53 = vpop.f32.mrf.mxu2 }
  0xd5   : > { %v3582_v48 = vadd.f32 %v1082_v53, %v3529_v22  ;;  %v1153_v54 = vpop.f32.mrf.mxu1  ;;  %v1211_v55 = vpop.f32.mrf.mxu3  ;;  %v3592_v36 = vadd.f32 %v1024_v52, %v3529_v22  ;;  %v878_v53 = vunpack.c.l.b16 %v760_v41 }
  0xd6   : > { %v3585_v57 = vadd.f32 %v1211_v55, %v3531_v25  ;;  %v3595_v11 = vadd.f32 %v1153_v54, %v3531_v25 }
  0xd7   : > { %4740 = vst [vmem:[#allocation13_spill] sm:$0xff] %v3582_v48  ;;  %v903_v62 = vpack.c.b16 %v879_v5, %v878_v53 }
  0xd8   : > { %4741 = vst [vmem:[#allocation14_spill] sm:$0xff] %v3585_v57  ;;  %v1344_v0 = vmax.f32 %v3582_v48, %v3585_v57  ;;  %v1275_v27 = vmax.f32 %v3592_v36, %v3595_v11 }
  0xd9   : > { %4742 = vst [vmem:[#allocation15_spill] sm:$0xff] %v3592_v36 }
  0xda   : > { %1345 = vmax.xlane.f32.xlu2 %v1344_v0  ;;  %1342 = vmax.xlane.f32.xlu1 %v1341_v2  ;;  %4743 = vst [vmem:[#allocation16_spill] sm:$0xff] %v3595_v11 }
  0xdc   : > { %v1027_v60 = vpop.f32.mrf.mxu0  ;;  %v1084_v10 = vpop.f32.mrf.mxu2 }
  0xdd   : > { %v3598_v6 = vadd.f32 %v1027_v60, %v3529_v22  ;;  %v3601_v12 = vadd.f32 %v1084_v10, %v3529_v22  ;;  %v1156_v13 = vpop.f32.mrf.mxu1  ;;  %v1213_v14 = vpop.f32.mrf.mxu3 }
  0xde   : > { %v3604_v15 = vadd.f32 %v1156_v13, %v3531_v25  ;;  %v3607_v16 = vadd.f32 %v1213_v14, %v3531_v25 }
  0xdf   : > { %4744 = vst [vmem:[#allocation17_spill] sm:$0xff] %v3598_v6  ;;  %1066 = vmatmul.bf16.gmra.mxu0 %v890_v8  ;;  %1195 = vmatmul.bf16.gmra.mxu1 %v890_v8 }
  0xe0   : > { %4745 = vst [vmem:[#allocation18_spill] sm:$0xff] %v3601_v12  ;;  %v1347_v21 = vmax.f32 %v3601_v12, %v3607_v16  ;;  %v1278_v24 = vmax.f32 %v3598_v6, %v3604_v15 }
  0xe1   : > { %4746 = vst [vmem:[#allocation19_spill] sm:$0xff] %v3604_v15  ;;  %1126 = vmatmul.bf16.gmra.mxu2 %v902_v34  ;;  %1255 = vmatmul.bf16.gmra.mxu3 %v902_v34 }
  0xe2   : > { %4747 = vst [vmem:[#allocation20_spill] sm:$0xff] %v3607_v16  ;;  %1348 = vmax.xlane.f32.xlu0 %v1347_v21  ;;  %1279 = vmax.xlane.f32.xlu2 %v1278_v24 }
  0xe3   : > { %1276 = vmax.xlane.f32.xlu1 %v1275_v27 }
  0xe4   : > { %v1029_v32 = vpop.f32.mrf.mxu0  ;;  %v1087_v33 = vpop.f32.mrf.mxu2 }
  0xe5   : > { %v3616_v38 = vadd.f32 %v1029_v32, %v3529_v22  ;;  %v3619_v40 = vadd.f32 %v1087_v33, %v3529_v22  ;;  %v1158_v44 = vpop.f32.mrf.mxu1  ;;  %v1216_v45 = vpop.f32.mrf.mxu3 }
  0xe6   : > { %v3622_v35 = vadd.f32 %v1158_v44, %v3531_v25  ;;  %v3625_v37 = vadd.f32 %v1216_v45, %v3531_v25 }
  0xe7   : > { %4748 = vst [vmem:[#allocation21_spill] sm:$0xff] %v3616_v38 }
  0xe8   : > { %4749 = vst [vmem:[#allocation22_spill] sm:$0xff] %v3619_v40  ;;  %v1281_v4 = vmax.f32 %v3616_v38, %v3622_v35  ;;  %v1350_v52 = vmax.f32 %v3619_v40, %v3625_v37 }
  0xe9   : > { %4750 = vst [vmem:[#allocation23_spill] sm:$0xff] %v3622_v35 }
  0xea   : > { %4751 = vst [vmem:[#allocation24_spill] sm:$0xff] %v3625_v37  ;;  %1282 = vmax.xlane.f32.xlu2 %v1281_v4 }
  0xeb   : > { %1351 = vmax.xlane.f32.xlu1 %v1350_v52 }
  0xec   : > { %v1032_v54 = vpop.f32.mrf.mxu0  ;;  %v1089_v55 = vpop.f32.mrf.mxu2 }
  0xed   : > { %v3632_v56 = vadd.f32 %v1032_v54, %v3529_v22  ;;  %v3635_v58 = vadd.f32 %v1089_v55, %v3529_v22  ;;  %v1161_v59 = vpop.f32.mrf.mxu1  ;;  %v1218_v61 = vpop.f32.mrf.mxu3 }
  0xee   : > { %v3638_v63 = vadd.f32 %v1161_v59, %v3531_v25  ;;  %v3641_v0 = vadd.f32 %v1218_v61, %v3531_v25 }
  0xef   : > { %4752 = vst [vmem:[#allocation25_spill] sm:$0xff] %v3632_v56  ;;  %1071 = vmatmul.bf16.gmra.mxu0 %v891_v39  ;;  %1200 = vmatmul.bf16.gmra.mxu1 %v891_v39 }
  0xf0   : > { %4753 = vst [vmem:[#allocation26_spill] sm:$0xff] %v3635_v58  ;;  %v1284_v2 = vmax.f32 %v3632_v56, %v3638_v63  ;;  %v1353_v3 = vmax.f32 %v3635_v58, %v3641_v0 }
  0xf1   : > { %4754 = vst [vmem:[#allocation27_spill] sm:$0xff] %v3638_v63  ;;  %1131 = vmatmul.bf16.gmra.mxu2 %v903_v62  ;;  %1260 = vmatmul.bf16.gmra.mxu3 %v903_v62 }
  0xf2   : > { %4755 = vst [vmem:[#allocation28_spill] sm:$0xff] %v3641_v0  ;;  %1285 = vmax.xlane.f32.xlu0 %v1284_v2  ;;  %1354 = vmax.xlane.f32.xlu2 %v1353_v3 }
  0xf4   : > { %v1034_v7 = vpop.f32.mrf.mxu0  ;;  %v1092_v8 = vpop.f32.mrf.mxu2 }
  0xf5   : > { %v3648_v60 = vadd.f32 %v1034_v7, %v3529_v22  ;;  %v3651_v10 = vadd.f32 %v1092_v8, %v3529_v22  ;;  %v1163_v34 = vpop.f32.mrf.mxu1  ;;  %v1221_v13 = vpop.f32.mrf.mxu3 }
  0xf6   : > { %v3654_v14 = vadd.f32 %v1163_v34, %v3531_v25  ;;  %v3657_v17 = vadd.f32 %v1221_v13, %v3531_v25 }
  0xf7   : > { %4756 = vst [vmem:[#allocation29_spill] sm:$0xff] %v3648_v60 }
  0xf8   : > { %4757 = vst [vmem:[#allocation30_spill] sm:$0xff] %v3651_v10  ;;  %v1356_v20 = vmax.f32 %v3651_v10, %v3657_v17  ;;  %v1287_v21 = vmax.f32 %v3648_v60, %v3654_v14 }
  0xf9   : > { %4758 = vst [vmem:[#allocation31_spill] sm:$0xff] %v3654_v14 }
  0xfa   : > { %4759 = vst [vmem:[#allocation32_spill] sm:$0xff] %v3657_v17  ;;  %1357 = vmax.xlane.f32.xlu0 %v1356_v20  ;;  %1288 = vmax.xlane.f32.xlu1 %v1287_v21 }
  0xfc   : > { %v1037_v24 = vpop.f32.mrf.mxu0  ;;  %v1094_v26 = vpop.f32.mrf.mxu2 }
  0xfd   : > { %v3664_v27 = vadd.f32 %v1037_v24, %v3529_v22  ;;  %v3667_v28 = vadd.f32 %v1094_v26, %v3529_v22  ;;  %v1166_v29 = vpop.f32.mrf.mxu1  ;;  %v1223_v31 = vpop.f32.mrf.mxu3 }
  0xfe   : > { %v3670_v32 = vadd.f32 %v1166_v29, %v3531_v25  ;;  %v3673_v33 = vadd.f32 %v1223_v31, %v3531_v25 }
  0xff   : > { %4760 = vst [vmem:[#allocation33_spill] sm:$0xff] %v3664_v27 }
 0x100   : > { %4761 = vst [vmem:[#allocation34_spill] sm:$0xff] %v3667_v28  ;;  %v1290_v44 = vmax.f32 %v3664_v27, %v3670_v32  ;;  %v1359_v45 = vmax.f32 %v3667_v28, %v3673_v33 }
 0x101   : > { %4762 = vst [vmem:[#allocation35_spill] sm:$0xff] %v3670_v32 }
 0x102   : > { %4763 = vst [vmem:[#allocation36_spill] sm:$0xff] %v3673_v33  ;;  %1291 = vmax.xlane.f32.xlu2 %v1290_v44  ;;  %1360 = vmax.xlane.f32.xlu1 %v1359_v45 }
 0x104   : > { %v1039_v41 = vpop.f32.mrf.mxu0  ;;  %v1097_v46 = vpop.f32.mrf.mxu2 }
 0x105   : > { %v3680_v49 = vadd.f32 %v1039_v41, %v3529_v22  ;;  %v3683_v47 = vadd.f32 %v1097_v46, %v3529_v22  ;;  %v1168_v4 = vpop.f32.mrf.mxu1  ;;  %v1226_v52 = vpop.f32.mrf.mxu3 }
 0x106   : > { %v3686_v53 = vadd.f32 %v1168_v4, %v3531_v25  ;;  %v3689_v5 = vadd.f32 %v1226_v52, %v3531_v25 }
 0x107   : > { %4764 = vst [vmem:[#allocation37_spill] sm:$0xff] %v3680_v49 }
 0x108   : > { %4765 = vst [vmem:[#allocation38_spill] sm:$0xff] %v3683_v47  ;;  %v1293_v39 = vmax.f32 %v3680_v49, %v3686_v53  ;;  %v1362_v54 = vmax.f32 %v3683_v47, %v3689_v5 }
 0x109   : > { %4766 = vst [vmem:[#allocation39_spill] sm:$0xff] %v3686_v53 }
 0x10a   : > { %4767 = vst [vmem:[#allocation40_spill] sm:$0xff] %v3689_v5  ;;  %1294 = vmax.xlane.f32.xlu0 %v1293_v39  ;;  %1363 = vmax.xlane.f32.xlu2 %v1362_v54 }
 0x10c   : > { %v1042_v55 = vpop.f32.mrf.mxu0  ;;  %v1099_v59 = vpop.f32.mrf.mxu2 }
 0x10d   : > { %v3696_v61 = vadd.f32 %v1042_v55, %v3529_v22  ;;  %v3699_v62 = vadd.f32 %v1099_v59, %v3529_v22  ;;  %v1171_v2 = vpop.f32.mrf.mxu1  ;;  %v1228_v3 = vpop.f32.mrf.mxu3 }
 0x10e   : > { %v3702_v7 = vadd.f32 %v1171_v2, %v3531_v25  ;;  %v3705_v8 = vadd.f32 %v1228_v3, %v3531_v25 }
 0x10f   : > { %4768 = vst [vmem:[#allocation41_spill] sm:$0xff] %v3696_v61 }
 0x110   : > { %4769 = vst [vmem:[#allocation42_spill] sm:$0xff] %v3699_v62  ;;  %v1365_v34 = vmax.f32 %v3699_v62, %v3705_v8  ;;  %v1296_v13 = vmax.f32 %v3696_v61, %v3702_v7 }
 0x111   : > { %4770 = vst [vmem:[#allocation43_spill] sm:$0xff] %v3705_v8 }
 0x112   : > { %1366 = vmax.xlane.f32.xlu0 %v1365_v34  ;;  %1297 = vmax.xlane.f32.xlu1 %v1296_v13 }
 0x114   : > { %v1044_v20 = vpop.f32.mrf.mxu0  ;;  %v1102_v21 = vpop.f32.mrf.mxu2 }
 0x115   : > { %v3712_v24 = vadd.f32 %v1044_v20, %v3529_v22  ;;  %v3715_v26 = vadd.f32 %v1102_v21, %v3529_v22  ;;  %v1173_v29 = vpop.f32.mrf.mxu1  ;;  %v1231_v31 = vpop.f32.mrf.mxu3 }
 0x116   : > { %v3718_v44 = vadd.f32 %v1173_v29, %v3531_v25  ;;  %v3721_v45 = vadd.f32 %v1231_v31, %v3531_v25 }
 0x117   : > { %4771 = vst [vmem:[#allocation44_spill] sm:$0xff] %v3712_v24 }
 0x118   : > { %4772 = vst [vmem:[#allocation45_spill] sm:$0xff] %v3715_v26  ;;  %v1299_v41 = vmax.f32 %v3712_v24, %v3718_v44  ;;  %v1368_v46 = vmax.f32 %v3715_v26, %v3721_v45 }
 0x119   : > { %4773 = vst [vmem:[#allocation46_spill] sm:$0xff] %v3718_v44 }
 0x11a   : > { %4774 = vst [vmem:[#allocation47_spill] sm:$0xff] %v3721_v45  ;;  %1300 = vmax.xlane.f32.xlu2 %v1299_v41  ;;  %1369 = vmax.xlane.f32.xlu1 %v1368_v46 }
 0x11c   : > { %v1047_v4 = vpop.f32.mrf.mxu0  ;;  %v1104_v52 = vpop.f32.mrf.mxu2 }
 0x11d   : > { %v3728_v39 = vadd.f32 %v1047_v4, %v3529_v22  ;;  %v3731_v54 = vadd.f32 %v1104_v52, %v3529_v22  ;;  %v1176_v55 = vpop.f32.mrf.mxu1  ;;  %v1233_v59 = vpop.f32.mrf.mxu3 }
 0x11e   : > { %v3734_v2 = vadd.f32 %v1176_v55, %v3531_v25  ;;  %v3737_v3 = vadd.f32 %v1233_v59, %v3531_v25 }
 0x11f   : > { %4775 = vst [vmem:[#allocation48_spill] sm:$0xff] %v3728_v39 }
 0x120   : > { %4776 = vst [vmem:[#allocation49_spill] sm:$0xff] %v3731_v54  ;;  %v1302_v34 = vmax.f32 %v3728_v39, %v3734_v2  ;;  %v1371_v13 = vmax.f32 %v3731_v54, %v3737_v3 }
 0x121   : > { %4777 = vst [vmem:[#allocation50_spill] sm:$0xff] %v3734_v2 }
 0x122   : > { %4778 = vst [vmem:[#allocation51_spill] sm:$0xff] %v3737_v3  ;;  %1303 = vmax.xlane.f32.xlu0 %v1302_v34  ;;  %1372 = vmax.xlane.f32.xlu2 %v1371_v13 }
 0x124   : > { %v1049_v20 = vpop.f32.mrf.mxu0  ;;  %v1107_v21 = vpop.f32.mrf.mxu2 }
 0x125   : > { %v3744_v29 = vadd.f32 %v1049_v20, %v3529_v22  ;;  %v3747_v31 = vadd.f32 %v1107_v21, %v3529_v22  ;;  %v1178_v41 = vpop.f32.mrf.mxu1  ;;  %v1236_v46 = vpop.f32.mrf.mxu3 }
 0x126   : > { %v3750_v4 = vadd.f32 %v1178_v41, %v3531_v25  ;;  %v3753_v52 = vadd.f32 %v1236_v46, %v3531_v25 }
 0x127   : > { %4779 = vst [vmem:[#allocation52_spill] sm:$0xff] %v3744_v29 }
 0x128   : > { %4780 = vst [vmem:[#allocation53_spill] sm:$0xff] %v3747_v31  ;;  %v1374_v55 = vmax.f32 %v3747_v31, %v3753_v52  ;;  %v1305_v59 = vmax.f32 %v3744_v29, %v3750_v4 }
 0x129   : > { %4781 = vst [vmem:[#allocation54_spill] sm:$0xff] %v3750_v4 }
 0x12a   : > { %4782 = vst [vmem:[#allocation55_spill] sm:$0xff] %v3753_v52  ;;  %1375 = vmax.xlane.f32.xlu0 %v1374_v55  ;;  %1306 = vmax.xlane.f32.xlu1 %v1305_v59 }
 0x12c   : > { %v1052_v34 = vpop.f32.mrf.mxu0  ;;  %v1109_v13 = vpop.f32.mrf.mxu2 }
 0x12d   : > { %v3760_v20 = vadd.f32 %v1052_v34, %v3529_v22  ;;  %v3763_v21 = vadd.f32 %v1109_v13, %v3529_v22  ;;  %v1181_v41 = vpop.f32.mrf.mxu1  ;;  %v1238_v3 = vpop.f32.mrf.mxu3 }
 0x12e   : > { %v3766_v46 = vadd.f32 %v1181_v41, %v3531_v25  ;;  %v3769_v52 = vadd.f32 %v1238_v3, %v3531_v25 }
 0x12f   : > { %4783 = vst [vmem:[#allocation56_spill] sm:$0xff] %v3760_v20 }
 0x130   : > { %4784 = vst [vmem:[#allocation57_spill] sm:$0xff] %v3763_v21  ;;  %v1308_v55 = vmax.f32 %v3760_v20, %v3766_v46  ;;  %v1377_v59 = vmax.f32 %v3763_v21, %v3769_v52 }
 0x131   : > { %4785 = vst [vmem:[#allocation58_spill] sm:$0xff] %v3766_v46 }
 0x132   : > { %4786 = vst [vmem:[#allocation59_spill] sm:$0xff] %v3769_v52  ;;  %1309 = vmax.xlane.f32.xlu2 %v1308_v55  ;;  %1378 = vmax.xlane.f32.xlu1 %v1377_v59 }
 0x134   : > { %v1112_v34 = vpop.f32.mrf.mxu2  ;;  %v1054_v4 = vpop.f32.mrf.mxu0 }
 0x135   : > { %v3776_v13 = vadd.f32 %v1112_v34, %v3529_v22  ;;  %v1241_v29 = vpop.f32.mrf.mxu3  ;;  %v3778_v31 = vpop.xlane.xlu0 %1267  ;;  %v3781_v41 = vadd.f32 %v1054_v4, %v3529_v22 }
 0x136   : > { %4788 = vst [vmem:[#allocation61_spill] sm:$0xff] %v3778_v31  ;;  %v3784_v3 = vadd.f32 %v1241_v29, %v3531_v25  ;;  %v1183_v46 = vpop.f32.mrf.mxu1  ;;  %v1410_v52 = vsub.f32 %v3537_v42, %v3778_v31  ;;  %v1411_v59 = vsub.f32 %v3540_v43, %v3778_v31 }
 0x137   : > { %4787 = vst [vmem:[#allocation60_spill] sm:$0xff] %v3776_v13  ;;  %v3789_v55 = vadd.f32 %v1183_v46, %v3531_v25 }
 0x138   : > { %4789 = vst [vmem:[#allocation62_spill] sm:$0xff] %v3781_v41  ;;  %v1380_v34 = vmax.f32 %v3776_v13, %v3784_v3  ;;  %v1506_v21 = vmul.f32 1.442695, %v1410_v52  ;;  %v1508_v29 = vmul.f32 1.442695, %v1411_v59 }
 0x139   : > { %4790 = vst [vmem:[#allocation63_spill] sm:$0xff] %v3784_v3  ;;  %v1311_v4 = vmax.f32 %v3781_v41, %v3789_v55 }
 0x13a   : > { %4791 = vst [vmem:[#allocation64_spill] sm:$0xff] %v3789_v55  ;;  %1381 = vmax.xlane.f32.xlu2 %v1380_v34  ;;  %2832 = vpow2.f32 %v1506_v21 }
 0x13b   : > { %1312 = vmax.xlane.f32.xlu0 %v1311_v4  ;;  %2834 = vpow2.f32 %v1508_v29 }
 0x13c   : > { %v1114_v20 = vpop.f32.mrf.mxu2  ;;  %v1057_v54 = vpop.f32.mrf.mxu0 }
 0x13d   : > { %v3798_v42 = vadd.f32 %v1114_v20, %v3529_v22  ;;  %v1243_v46 = vpop.f32.mrf.mxu3  ;;  %v3800_v45 = vpop.xlane.xlu0 %1270  ;;  %v3803_v43 = vadd.f32 %v1057_v54, %v3529_v22 }
 0x13e   : > { %4792 = vst [vmem:[#allocation65_spill] sm:$0xff] %v3800_v45  ;;  %v3806_v31 = vadd.f32 %v1243_v46, %v3531_v25  ;;  %v1186_v3 = vpop.f32.mrf.mxu1  ;;  %v1412_v52 = vsub.f32 %v3548_v1, %v3800_v45  ;;  %v1413_v34 = vsub.f32 %v3551_v9, %v3800_v45 }
 0x13f   : > { %4793 = vst [vmem:[#allocation66_spill] sm:$0xff] %v3803_v43  ;;  %v3811_v59 = vadd.f32 %v1186_v3, %v3531_v25 }
 0x140   : > { %4794 = vst [vmem:[#allocation67_spill] sm:$0xff] %v3806_v31  ;;  %v1383_v20 = vmax.f32 %v3798_v42, %v3806_v31  ;;  %v1510_v4 = vmul.f32 1.442695, %v1412_v52  ;;  %v2833_v55 = vpop.eup %2832  ;;  %v1512_v1 = vmul.f32 1.442695, %v1413_v34 }
 0x141   : > { %4795 = vst [vmem:[#allocation68_spill] sm:$0xff] %v3811_v59  ;;  %v1314_v54 = vmax.f32 %v3803_v43, %v3811_v59  ;;  %v2835_v9 = vpop.eup %2834 }
 0x142   : > { %2836 = vpow2.f32 %v1510_v4 }
 0x143   : > { %1384 = vmax.xlane.f32.xlu0 %v1383_v20  ;;  %1315 = vmax.xlane.f32.xlu1 %v1314_v54  ;;  %2838 = vpow2.f32 %v1512_v1 }
 0x144   : > { %v1117_v21 = vpop.f32.mrf.mxu2  ;;  %v1059_v46 = vpop.f32.mrf.mxu0 }
 0x145   : > { %v3820_v3 = vadd.f32 %v1117_v21, %v3529_v22  ;;  %v1246_v29 = vpop.f32.mrf.mxu3  ;;  %v3822_v41 = vpop.xlane.xlu0 %1339  ;;  %v3825_v31 = vadd.f32 %v1059_v46, %v3529_v22 }
 0x146   : > { %4797 = vst [vmem:[#allocation70_spill] sm:$0xff] %v3822_v41  ;;  %v3828_v45 = vadd.f32 %v1246_v29, %v3531_v25  ;;  %v1458_v52 = vsub.f32 %v3556_v18, %v3822_v41  ;;  %v1459_v20 = vsub.f32 %v3559_v19, %v3822_v41  ;;  %v1188_v34 = vpop.f32.mrf.mxu1  ;;  %v3834_v54 = vpop.xlane.xlu1 %1273  ;;  %v1698_v19 = vadd.f32 %v2835_v9, %v2833_v55 }
 0x147   : > { %4796 = vst [vmem:[#allocation69_spill] sm:$0xff] %v3820_v3  ;;  %v3837_v21 = vadd.f32 %v1188_v34, %v3531_v25  ;;  %v1414_v46 = vsub.f32 %v3562_v23, %v3834_v54  ;;  %v1415_v29 = vsub.f32 %v3566_v30, %v3834_v54 }
 0x148   : > { %4798 = vst [vmem:[#allocation71_spill] sm:$0xff] %v3825_v31  ;;  %v1602_v59 = vmul.f32 1.442695, %v1458_v52  ;;  %v1604_v43 = vmul.f32 1.442695, %v1459_v20  ;;  %v1386_v18 = vmax.f32 %v3820_v3, %v3828_v45  ;;  %v2837_v23 = vpop.eup %2836 }
 0x149   : > { %4799 = vst [vmem:[#allocation72_spill] sm:$0xff] %v3828_v45  ;;  %v1317_v41 = vmax.f32 %v3825_v31, %v3837_v21  ;;  %v1514_v4 = vmul.f32 1.442695, %v1414_v46  ;;  %v1516_v34 = vmul.f32 1.442695, %v1415_v29 }
 0x14a   : > { %4800 = vst [vmem:[#allocation73_spill] sm:$0xff] %v3834_v54  ;;  %2840 = vpow2.f32 %v1602_v59 }
 0x14b   : > { %4801 = vst [vmem:[#allocation74_spill] sm:$0xff] %v3837_v21  ;;  %2842 = vpow2.f32 %v1604_v43  ;;  %1699 = vadd.xlane.f32.xlu0 %v1698_v19  ;;  %1318 = vmax.xlane.f32.xlu2 %v1317_v41  ;;  %v2839_v43 = vpop.eup %2838 }
 0x14c   : > { %1387 = vmax.xlane.f32.xlu1 %v1386_v18  ;;  %v1119_v52 = vpop.f32.mrf.mxu2  ;;  %v1062_v20 = vpop.f32.mrf.mxu0  ;;  %2844 = vpow2.f32 %v1514_v4  ;;  %v1701_v3 = vadd.f32 %v2839_v43, %v2837_v23 }
 0x14d   : > { %v3848_v30 = vadd.f32 %v1119_v52, %v3529_v22  ;;  %v1248_v54 = vpop.f32.mrf.mxu3  ;;  %v3850_v45 = vpop.xlane.xlu2 %1345  ;;  %2846 = vpow2.f32 %v1516_v34 }
 0x14e   : > { %4803 = vst [vmem:[#allocation76_spill] sm:$0xff] %v3850_v45  ;;  %v3853_v1 = vadd.f32 %v1248_v54, %v3531_v25  ;;  %v1191_v9 = vpop.f32.mrf.mxu1  ;;  %v3855_v55 = vpop.xlane.xlu1 %1342  ;;  %v1462_v18 = vsub.f32 %v3582_v48, %v3850_v45  ;;  %v1463_v54 = vsub.f32 %v3585_v57, %v3850_v45 }
 0x14f   : > { %4802 = vst [vmem:[#allocation75_spill] sm:$0xff] %v3848_v30  ;;  %v1460_v19 = vsub.f32 %v3576_v50, %v3855_v55  ;;  %v1461_v41 = vsub.f32 %v3579_v51, %v3855_v55  ;;  %v3868_v50 = vadd.f32 %v1062_v20, %v3529_v22  ;;  %v3871_v51 = vadd.f32 %v1191_v9, %v3531_v25 }
 0x150   : > { %4804 = vst [vmem:[#allocation77_spill] sm:$0xff] %v3853_v1  ;;  %v2841_v59 = vpop.eup %2840  ;;  %v1389_v46 = vmax.f32 %v3848_v30, %v3853_v1  ;;  %v1610_v48 = vmul.f32 1.442695, %v1462_v18  ;;  %v1612_v31 = vmul.f32 1.442695, %v1463_v54 }
 0x151   : > { %4805 = vst [vmem:[#allocation78_spill] sm:$0xff] %v3855_v55  ;;  %v2843_v29 = vpop.eup %2842  ;;  %v1606_v52 = vmul.f32 1.442695, %v1460_v19  ;;  %v1608_v4 = vmul.f32 1.442695, %v1461_v41 }
 0x152   : > { %v1770_v21 = vadd.f32 %v2843_v29, %v2841_v59  ;;  %4806 = vst [vmem:[#allocation79_spill] sm:$0xff] %v3868_v50  ;;  %v2845_v34 = vpop.eup %2844 }
 0x153   : > { %1390 = vmax.xlane.f32.xlu2 %v1389_v46  ;;  %4807 = vst [vmem:[#allocation80_spill] sm:$0xff] %v3871_v51  ;;  %2848 = vpow2.f32 %v1606_v52  ;;  %v2847_v57 = vpop.eup %2846 }
 0x154   : > { %1702 = vadd.xlane.f32.xlu1 %v1701_v3  ;;  %1771 = vadd.xlane.f32.xlu0 %v1770_v21  ;;  %2850 = vpow2.f32 %v1608_v4  ;;  %v1122_v45 = vpop.f32.mrf.mxu2  ;;  %v1064_v23 = vpop.f32.mrf.mxu0  ;;  %v1320_v3 = vmax.f32 %v3868_v50, %v3871_v51  ;;  %v1704_v9 = vadd.f32 %v2847_v57, %v2845_v34 }
 0x155   : > { %v1251_v19 = vpop.f32.mrf.mxu3  ;;  %2852 = vpow2.f32 %v1610_v48  ;;  %v3875_v41 = vpop.xlane.xlu2 %1279  ;;  %v3884_v48 = vadd.f32 %v1122_v45, %v3529_v22  ;;  %v3894_v34 = vadd.f32 %v1064_v23, %v3529_v22 }
 0x156   : > { %v3873_v43 = vpop.xlane.xlu1 %1276  ;;  %2854 = vpow2.f32 %v1612_v31  ;;  %v1193_v18 = vpop.f32.mrf.mxu1  ;;  %4808 = vst [vmem:[#allocation81_spill] sm:$0xff] %v3875_v41  ;;  %v3887_v31 = vadd.f32 %v1251_v19, %v3531_v25  ;;  %v1419_v23 = vsub.f32 %v3604_v15, %v3875_v41 }
 0x157   : > { %v1416_v20 = vsub.f32 %v3592_v36, %v3873_v43  ;;  %v1417_v21 = vsub.f32 %v3595_v11, %v3873_v43  ;;  %v3889_v46 = vpop.xlane.xlu0 %1348  ;;  %v3899_v19 = vadd.f32 %v1193_v18, %v3531_v25 }
 0x158   : > { %4809 = vst [vmem:[#allocation82_spill] sm:$0xff] %v3889_v46  ;;  %v1464_v57 = vsub.f32 %v3601_v12, %v3889_v46  ;;  %v1465_v45 = vsub.f32 %v3607_v16, %v3889_v46 }
 0x159   : > { %v2849_v59 = vpop.eup %2848  ;;  %v1518_v29 = vmul.f32 1.442695, %v1416_v20  ;;  %v1520_v36 = vmul.f32 1.442695, %v1417_v21  ;;  %v1392_v21 = vmax.f32 %v3884_v48, %v3887_v31 }
 0x15a   : > { %v2851_v54 = vpop.eup %2850  ;;  %v1614_v18 = vmul.f32 1.442695, %v1464_v57  ;;  %v1616_v46 = vmul.f32 1.442695, %v1465_v45 }
 0x15b   : > { %1705 = vadd.xlane.f32.xlu2 %v1704_v9  ;;  %v1773_v52 = vadd.f32 %v2851_v54, %v2849_v59  ;;  %v2853_v4 = vpop.eup %2852  ;;  %2856 = vpow2.f32 %v1518_v29  ;;  %v1418_v9 = vsub.f32 %v3598_v6, %v3875_v41  ;;  %v1524_v6 = vmul.f32 1.442695, %v1419_v23 }
 0x15c   : > { %1321 = vmax.xlane.f32.xlu0 %v1320_v3  ;;  %v2855_v55 = vpop.eup %2854  ;;  %v1124_v20 = vpop.f32.mrf.mxu2  ;;  %2858 = vpow2.f32 %v1520_v36  ;;  %v1323_v36 = vmax.f32 %v3894_v34, %v3899_v19 }
 0x15d   : > { %1774 = vadd.xlane.f32.xlu1 %v1773_v52  ;;  %v1253_v3 = vpop.f32.mrf.mxu3  ;;  %v1067_v59 = vpop.f32.mrf.mxu0  ;;  %v1776_v54 = vadd.f32 %v2855_v55, %v2853_v4  ;;  %v1522_v55 = vmul.f32 1.442695, %v1418_v9  ;;  %2860 = vpow2.f32 %v1614_v18  ;;  %v3924_v45 = vadd.f32 %v1124_v20, %v3529_v22 }
 0x15e   : > { %v1196_v52 = vpop.f32.mrf.mxu1  ;;  %v3907_v16 = vpop.xlane.xlu2 %1282  ;;  %v3910_v29 = vadd.f32 %v1067_v59, %v3529_v22  ;;  %2862 = vpow2.f32 %v1616_v46 }
 0x15f   : > { %4810 = vst [vmem:[#allocation83_spill] sm:$0xff] %v3907_v16  ;;  %v3913_v12 = vadd.f32 %v1196_v52, %v3531_v25  ;;  %v1420_v57 = vsub.f32 %v3616_v38, %v3907_v16  ;;  %v3919_v59 = vpop.xlane.xlu1 %1351  ;;  %v1421_v9 = vsub.f32 %v3622_v35, %v3907_v16  ;;  %2864 = vpow2.f32 %v1522_v55 }
 0x160   : > { %4811 = vst [vmem:[#allocation84_spill] sm:$0xff] %v3919_v59  ;;  %2866 = vpow2.f32 %v1524_v6  ;;  %v1467_v46 = vsub.f32 %v3625_v37, %v3919_v59 }
 0x161   : > { %v2857_v4 = vpop.eup %2856  ;;  %v1326_v52 = vmax.f32 %v3910_v29, %v3913_v12  ;;  %v1526_v38 = vmul.f32 1.442695, %v1420_v57  ;;  %v1528_v35 = vmul.f32 1.442695, %v1421_v9 }
 0x162   : > { %v2859_v15 = vpop.eup %2858  ;;  %v1620_v37 = vmul.f32 1.442695, %v1467_v46 }
 0x163   : > { %1777 = vadd.xlane.f32.xlu2 %v1776_v54  ;;  %v1466_v54 = vsub.f32 %v3619_v40, %v3919_v59  ;;  %v2861_v40 = vpop.eup %2860  ;;  %2868 = vpow2.f32 %v1526_v38 }
 0x164   : > { %1393 = vmax.xlane.f32.xlu0 %v1392_v21  ;;  %v3927_v21 = vadd.f32 %v1253_v3, %v3531_v25  ;;  %v1127_v23 = vpop.f32.mrf.mxu2  ;;  %2870 = vpow2.f32 %v1528_v35 }
 0x165   : > { %1324 = vmax.xlane.f32.xlu1 %v1323_v36  ;;  %v1256_v18 = vpop.f32.mrf.mxu3  ;;  %v1707_v36 = vadd.f32 %v2859_v15, %v2857_v4  ;;  %v3936_v20 = vadd.f32 %v1127_v23, %v3529_v22  ;;  %v2863_v15 = vpop.eup %2862  ;;  %v1618_v4 = vmul.f32 1.442695, %v1466_v54 }
 0x166   : > { %v3939_v3 = vadd.f32 %v1256_v18, %v3531_v25  ;;  %v3941_v55 = vpop.xlane.xlu2 %1354  ;;  %v1395_v6 = vmax.f32 %v3924_v45, %v3927_v21  ;;  %v2865_v57 = vpop.eup %2864  ;;  %v1779_v54 = vadd.f32 %v2863_v15, %v2861_v40 }
 0x167   : > { %4812 = vst [vmem:[#allocation85_spill] sm:$0xff] %v3936_v20  ;;  %v1069_v23 = vpop.f32.mrf.mxu0  ;;  %v1468_v18 = vsub.f32 %v3635_v58, %v3941_v55  ;;  %v2867_v9 = vpop.eup %2866  ;;  %2872 = vpow2.f32 %v1618_v4 }
 0x168   : > { %4813 = vst [vmem:[#allocation86_spill] sm:$0xff] %v3939_v3  ;;  %v1198_v59 = vpop.f32.mrf.mxu1  ;;  %v3951_v16 = vpop.xlane.xlu0 %1285  ;;  %2874 = vpow2.f32 %v1620_v37  ;;  %v3954_v11 = vadd.f32 %v1069_v23, %v3529_v22 }
 0x169   : > { %4814 = vst [vmem:[#allocation87_spill] sm:$0xff] %v3941_v55  ;;  %v1622_v38 = vmul.f32 1.442695, %v1468_v18  ;;  %v2869_v58 = vpop.eup %2868  ;;  %v3957_v35 = vadd.f32 %v1198_v59, %v3531_v25  ;;  %v1423_v4 = vsub.f32 %v3638_v63, %v3951_v16 }
 0x16a   : > { %4815 = vst [vmem:[#allocation88_spill] sm:$0xff] %v3951_v16  ;;  %v2871_v41 = vpop.eup %2870 }
 0x16b   : > { %1327 = vmax.xlane.f32.xlu2 %v1326_v52  ;;  %v1398_v52 = vmax.f32 %v3936_v20, %v3939_v3  ;;  %4816 = vst [vmem:[#allocation89_spill] sm:$0xff] %v3954_v11  ;;  %2876 = vpow2.f32 %v1622_v38  ;;  %v1329_v59 = vmax.f32 %v3954_v11, %v3957_v35  ;;  %v1532_v38 = vmul.f32 1.442695, %v1423_v4 }
 0x16c   : > { %1708 = vadd.xlane.f32.xlu0 %v1707_v36  ;;  %v1469_v36 = vsub.f32 %v3641_v0, %v3941_v55  ;;  %4817 = vst [vmem:[#allocation90_spill] sm:$0xff] %v3957_v35  ;;  %v1422_v0 = vsub.f32 %v3632_v56, %v3951_v16  ;;  %v1129_v40 = vpop.f32.mrf.mxu2 }
 0x16d   : > { %1396 = vmax.xlane.f32.xlu1 %v1395_v6  ;;  %v1710_v6 = vadd.f32 %v2867_v9, %v2865_v57  ;;  %v2873_v15 = vpop.eup %2872  ;;  %v1258_v57 = vpop.f32.mrf.mxu3  ;;  %v1713_v9 = vadd.f32 %v2871_v41, %v2869_v58 }
 0x16e   : > { %v1624_v46 = vmul.f32 1.442695, %v1469_v36  ;;  %v3963_v23 = vpop.xlane.xlu1 %1288  ;;  %v1530_v36 = vmul.f32 1.442695, %v1422_v0  ;;  %v3973_v63 = vadd.f32 %v1258_v57, %v3531_v25 }
 0x16f   : > { %v1072_v37 = vpop.f32.mrf.mxu0  ;;  %4818 = vst [vmem:[#allocation91_spill] sm:$0xff] %v3963_v23 }
 0x170   : > { %2878 = vpow2.f32 %v1624_v46  ;;  %v1201_v18 = vpop.f32.mrf.mxu1  ;;  %v3970_v46 = vadd.f32 %v1129_v40, %v3529_v22  ;;  %4820 = vst [vmem:[#allocation93_spill] sm:$0xff] %v3973_v63  ;;  %v3976_v58 = vadd.f32 %v1072_v37, %v3529_v22  ;;  %v1424_v37 = vsub.f32 %v3648_v60, %v3963_v23 }
 0x171   : > { %v3979_v41 = vadd.f32 %v1201_v18, %v3531_v25  ;;  %2880 = vpow2.f32 %v1530_v36 }
 0x172   : > { %2882 = vpow2.f32 %v1532_v38  ;;  %v1425_v38 = vsub.f32 %v3654_v14, %v3963_v23 }
 0x173   : > { %1399 = vmax.xlane.f32.xlu2 %v1398_v52  ;;  %v2875_v52 = vpop.eup %2874  ;;  %4821 = vst [vmem:[#allocation94_spill] sm:$0xff] %v3979_v41  ;;  %v1332_v36 = vmax.f32 %v3976_v58, %v3979_v41  ;;  %v1534_v41 = vmul.f32 1.442695, %v1424_v37 }
 0x174   : > { %1780 = vadd.xlane.f32.xlu0 %v1779_v54  ;;  %v3967_v54 = vpop.xlane.xlu0 %1357  ;;  %v2877_v56 = vpop.eup %2876 }
 0x175   : > { %1711 = vadd.xlane.f32.xlu1 %v1710_v6  ;;  %4819 = vst [vmem:[#allocation92_spill] sm:$0xff] %v3967_v54  ;;  %v1782_v6 = vadd.f32 %v2875_v52, %v2873_v15  ;;  %v3981_v0 = vpop.xlane.xlu2 %1291  ;;  %v1470_v15 = vsub.f32 %v3651_v10, %v3967_v54  ;;  %v1132_v4 = vpop.f32.mrf.mxu2  ;;  %v1471_v57 = vsub.f32 %v3657_v17, %v3967_v54 }
 0x176   : > { %v2879_v55 = vpop.eup %2878  ;;  %v1261_v40 = vpop.f32.mrf.mxu3  ;;  %v1426_v14 = vsub.f32 %v3664_v27, %v3981_v0  ;;  %v4008_v23 = vadd.f32 %v1132_v4, %v3529_v22 }
 0x177   : > { %v1785_v52 = vadd.f32 %v2879_v55, %v2877_v56  ;;  %v1626_v56 = vmul.f32 1.442695, %v1470_v15  ;;  %v2881_v55 = vpop.eup %2880  ;;  %v1628_v60 = vmul.f32 1.442695, %v1471_v57  ;;  %v1536_v15 = vmul.f32 1.442695, %v1425_v38 }
 0x178   : > { %v1203_v18 = vpop.f32.mrf.mxu1  ;;  %v2883_v16 = vpop.eup %2882  ;;  %v1427_v57 = vsub.f32 %v3670_v32, %v3981_v0 }
 0x179   : > { %v4003_v54 = vadd.f32 %v1203_v18, %v3531_v25  ;;  %2884 = vpow2.f32 %v1626_v56 }
 0x17a   : > { %2886 = vpow2.f32 %v1628_v60  ;;  %v1540_v60 = vmul.f32 1.442695, %v1427_v57 }
 0x17b   : > { %1714 = vadd.xlane.f32.xlu2 %v1713_v9  ;;  %v1074_v9 = vpop.f32.mrf.mxu0  ;;  %2888 = vpow2.f32 %v1534_v41 }
 0x17c   : > { %1330 = vmax.xlane.f32.xlu0 %v1329_v59  ;;  %v1401_v59 = vmax.f32 %v3970_v46, %v3973_v63  ;;  %v4000_v17 = vadd.f32 %v1074_v9, %v3529_v22  ;;  %2890 = vpow2.f32 %v1536_v15 }
 0x17d   : > { %1783 = vadd.xlane.f32.xlu1 %v1782_v6  ;;  %v3995_v6 = vpop.xlane.xlu1 %1360  ;;  %v3997_v10 = vpop.xlane.xlu0 %1294 }
 0x17e   : > { %v1428_v9 = vsub.f32 %v3680_v49, %v3997_v10  ;;  %v1429_v37 = vsub.f32 %v3686_v53, %v3997_v10  ;;  %v4019_v18 = vpop.xlane.xlu2 %1363  ;;  %v1335_v4 = vmax.f32 %v4000_v17, %v4003_v54  ;;  %v1134_v38 = vpop.f32.mrf.mxu2  ;;  %v1473_v53 = vsub.f32 %v3673_v33, %v3995_v6 }
 0x17f   : > { %v1263_v56 = vpop.f32.mrf.mxu3  ;;  %v1474_v57 = vsub.f32 %v3683_v47, %v4019_v18 }
 0x180   : > { %v1542_v27 = vmul.f32 1.442695, %v1428_v9  ;;  %v4035_v41 = vadd.f32 %v1263_v56, %v3531_v25  ;;  %v1632_v9 = vmul.f32 1.442695, %v1473_v53 }
 0x181   : > { %v1634_v53 = vmul.f32 1.442695, %v1474_v57 }
 0x182   : > { %4824 = vst [vmem:[#allocation97_spill] sm:$0xff] %v4035_v41 }
 0x183   : > { %1786 = vadd.xlane.f32.xlu2 %v1785_v52  ;;  %v4011_v52 = vadd.f32 %v1261_v40, %v3531_v25  ;;  %v1716_v40 = vadd.f32 %v2883_v16, %v2881_v55  ;;  %v1544_v16 = vmul.f32 1.442695, %v1429_v37  ;;  %v1475_v37 = vsub.f32 %v3689_v5, %v4019_v18 }
 0x184   : > { %1402 = vmax.xlane.f32.xlu0 %v1401_v59  ;;  %v1538_v59 = vmul.f32 1.442695, %v1426_v14  ;;  %v4032_v14 = vadd.f32 %v1134_v38, %v3529_v22 }
 0x185   : > { %4822 = vst [vmem:[#allocation95_spill] sm:$0xff] %v4011_v52  ;;  %1333 = vmax.xlane.f32.xlu1 %v1332_v36  ;;  %v1472_v36 = vsub.f32 %v3667_v28, %v3995_v6  ;;  %v1404_v49 = vmax.f32 %v4008_v23, %v4011_v52  ;;  %v4029_v32 = vpop.xlane.xlu1 %1297  ;;  %v4037_v55 = vpop.xlane.xlu0 %1366 }
 0x186   : > { %4823 = vst [vmem:[#allocation96_spill] sm:$0xff] %v4032_v14  ;;  %v2885_v28 = vpop.eup %2884  ;;  %2892 = vpow2.f32 %v1538_v59  ;;  %v1476_v25 = vsub.f32 %v3699_v62, %v4037_v55  ;;  %v1431_v56 = vsub.f32 %v3702_v7, %v4029_v32 }
 0x187   : > { %v1630_v15 = vmul.f32 1.442695, %v1472_v36  ;;  %v2887_v33 = vpop.eup %2886  ;;  %2894 = vpow2.f32 %v1540_v60  ;;  %v1430_v36 = vsub.f32 %v3696_v61, %v4029_v32 }
 0x188   : > { %v2889_v22 = vpop.eup %2888  ;;  %2896 = vpow2.f32 %v1542_v27  ;;  %v1788_v38 = vadd.f32 %v2887_v33, %v2885_v28  ;;  %v1636_v27 = vmul.f32 1.442695, %v1475_v37 }
 0x189   : > { %2898 = vpow2.f32 %v1544_v16  ;;  %v1638_v16 = vmul.f32 1.442695, %v1476_v25  ;;  %v1546_v61 = vmul.f32 1.442695, %v1430_v36 }
 0x18a   : > { %2900 = vpow2.f32 %v1630_v15 }
 0x18b   : > { %1336 = vmax.xlane.f32.xlu2 %v1335_v4  ;;  %v2891_v4 = vpop.eup %2890  ;;  %2902 = vpow2.f32 %v1632_v9  ;;  %v1548_v9 = vmul.f32 1.442695, %v1431_v56 }
 0x18c   : > { %1717 = vadd.xlane.f32.xlu0 %v1716_v40  ;;  %v1477_v40 = vsub.f32 %v3705_v8, %v4037_v55  ;;  %v2893_v60 = vpop.eup %2892  ;;  %v1719_v8 = vadd.f32 %v2891_v4, %v2889_v22  ;;  %2904 = vpow2.f32 %v1634_v53 }
 0x18d   : > { %1405 = vmax.xlane.f32.xlu1 %v1404_v49  ;;  %v4047_v59 = vpop.xlane.xlu2 %1300  ;;  %v1407_v49 = vmax.f32 %v4032_v14, %v4035_v41  ;;  %v2895_v62 = vpop.eup %2894  ;;  %2906 = vpow2.f32 %v1636_v27  ;;  %v4827_v27 = vld [vmem:[#allocation47_spill] sm:$0xff] }
 0x18e   : > { %v1640_v5 = vmul.f32 1.442695, %v1477_v40  ;;  %v4055_v47 = vpop.xlane.xlu1 %1369  ;;  %v2897_v57 = vpop.eup %2896  ;;  %v1432_v28 = vsub.f32 %v3712_v24, %v4047_v59  ;;  %v1433_v37 = vsub.f32 %v3718_v44, %v4047_v59  ;;  %2908 = vpow2.f32 %v1638_v16 }
 0x18f   : > { %4825 = vst [vmem:[#allocation98_spill] sm:$0xff] %v4055_v47  ;;  %v2899_v33 = vpop.eup %2898  ;;  %v1479_v56 = vsub.f32 %v4827_v27, %v4055_v47 }
 0x190   : > { %v2901_v22 = vpop.eup %2900  ;;  %2910 = vpow2.f32 %v1640_v5  ;;  %v1550_v53 = vmul.f32 1.442695, %v1432_v28  ;;  %v1725_v36 = vadd.f32 %v2899_v33, %v2897_v57  ;;  %v4829_v33 = vld [vmem:[#allocation49_spill] sm:$0xff] }
 0x191   : > { %v2903_v4 = vpop.eup %2902  ;;  %2912 = vpow2.f32 %v1546_v61 }
 0x192   : > { %2914 = vpow2.f32 %v1548_v9  ;;  %v1791_v44 = vadd.f32 %v2903_v4, %v2901_v22  ;;  %v4831_v4 = vld [vmem:[#allocation53_spill] sm:$0xff] }
 0x193   : > { %1408 = vmax.xlane.f32.xlu2 %v1407_v49  ;;  %v1722_v49 = vadd.f32 %v2895_v62, %v2893_v60  ;;  %2916 = vpow2.f32 %v1550_v53  ;;  %v4832_v53 = vld [vmem:[#allocation55_spill] sm:$0xff] }
 0x194   : > { %1789 = vadd.xlane.f32.xlu0 %v1788_v38  ;;  %v1552_v38 = vmul.f32 1.442695, %v1433_v37 }
 0x195   : > { %v4057_v15 = vpop.xlane.xlu0 %1303  ;;  %1720 = vadd.xlane.f32.xlu1 %v1719_v8  ;;  %v1478_v8 = vsub.f32 %v3715_v26, %v4055_v47  ;;  %v4071_v16 = vpop.xlane.xlu2 %1372 }
 0x196   : > { %4826 = vst [vmem:[#allocation99_spill] sm:$0xff] %v4057_v15  ;;  %v1434_v25 = vsub.f32 %v3728_v39, %v4057_v15  ;;  %v1435_v40 = vsub.f32 %v3734_v2, %v4057_v15  ;;  %v2905_v39 = vpop.eup %2904  ;;  %v1480_v9 = vsub.f32 %v4829_v33, %v4071_v16  ;;  %2918 = vpow2.f32 %v1552_v38 }
 0x197   : > { %4828 = vst [vmem:[#allocation100_spill] sm:$0xff] %v4071_v16  ;;  %v2907_v2 = vpop.eup %2906  ;;  %v1642_v57 = vmul.f32 1.442695, %v1478_v8 }
 0x198   : > { %v1554_v5 = vmul.f32 1.442695, %v1434_v25  ;;  %v1556_v62 = vmul.f32 1.442695, %v1435_v40  ;;  %v2909_v28 = vpop.eup %2908  ;;  %v4830_v25 = vld [vmem:[#allocation51_spill] sm:$0xff]  ;;  %v1794_v26 = vadd.f32 %v2907_v2, %v2905_v39 }
 0x199   : > { %v2911_v37 = vpop.eup %2910  ;;  %v1646_v33 = vmul.f32 1.442695, %v1480_v9 }
 0x19a   : > { %v2913_v22 = vpop.eup %2912  ;;  %2920 = vpow2.f32 %v1554_v5 }
 0x19b   : > { %1723 = vadd.xlane.f32.xlu2 %v1722_v49  ;;  %v1644_v49 = vmul.f32 1.442695, %v1479_v56  ;;  %v2915_v27 = vpop.eup %2914  ;;  %2922 = vpow2.f32 %v1556_v62  ;;  %v1797_v56 = vadd.f32 %v2911_v37, %v2909_v28  ;;  %v4836_v37 = vld [vmem:[#allocation56_spill] sm:$0xff] }
 0x19c   : > { %1726 = vadd.xlane.f32.xlu0 %v1725_v36  ;;  %v1481_v36 = vsub.f32 %v4830_v25, %v4071_v16  ;;  %2924 = vpow2.f32 %v1642_v57  ;;  %v4834_v25 = vld [vmem:[#allocation54_spill] sm:$0xff]  ;;  %v2917_v16 = vpop.eup %2916  ;;  %v1728_v62 = vadd.f32 %v2915_v27, %v2913_v22 }
 0x19d   : > { %v4073_v61 = vpop.xlane.xlu0 %1375  ;;  %v4075_v60 = vpop.xlane.xlu1 %1306  ;;  %1792 = vadd.xlane.f32.xlu1 %v1791_v44  ;;  %v4833_v44 = vld [vmem:[#allocation52_spill] sm:$0xff]  ;;  %2926 = vpow2.f32 %v1644_v49  ;;  %v4837_v27 = vld [vmem:[#allocation58_spill] sm:$0xff] }
 0x19e   : > { %v1482_v40 = vsub.f32 %v4831_v4, %v4073_v61  ;;  %v1483_v8 = vsub.f32 %v4832_v53, %v4073_v61  ;;  %v1436_v38 = vsub.f32 %v4833_v44, %v4075_v60  ;;  %v1648_v47 = vmul.f32 1.442695, %v1481_v36  ;;  %v2919_v24 = vpop.eup %2918 }
 0x19f   : > { %v1437_v5 = vsub.f32 %v4834_v25, %v4075_v60  ;;  %2928 = vpow2.f32 %v1646_v33 }
 0x1a0   : > { %v1650_v4 = vmul.f32 1.442695, %v1482_v40  ;;  %v1652_v15 = vmul.f32 1.442695, %v1483_v8  ;;  %v2921_v39 = vpop.eup %2920  ;;  %v1558_v2 = vmul.f32 1.442695, %v1436_v38  ;;  %2930 = vpow2.f32 %v1648_v47 }
 0x1a1   : > { %v2923_v28 = vpop.eup %2922  ;;  %v1560_v9 = vmul.f32 1.442695, %v1437_v5  ;;  %v4838_v40 = vld [vmem:[#allocation57_spill] sm:$0xff]  ;;  %v1731_v8 = vadd.f32 %v2919_v24, %v2917_v16  ;;  %v4839_v38 = vld [vmem:[#allocation59_spill] sm:$0xff] }
 0x1a2   : > { %v2925_v49 = vpop.eup %2924  ;;  %2932 = vpow2.f32 %v1650_v4  ;;  %v1734_v47 = vadd.f32 %v2923_v28, %v2921_v39 }
 0x1a3   : > { %1795 = vadd.xlane.f32.xlu2 %v1794_v26  ;;  %v2927_v22 = vpop.eup %2926  ;;  %2934 = vpow2.f32 %v1652_v15 }
 0x1a4   : > { %1798 = vadd.xlane.f32.xlu0 %v1797_v56  ;;  %2936 = vpow2.f32 %v1558_v2  ;;  %v1800_v4 = vadd.f32 %v2927_v22, %v2925_v49  ;;  %v4840_v2 = vld [vmem:[#allocation62_spill] sm:$0xff] }
 0x1a5   : > { %v4089_v53 = vpop.xlane.xlu2 %1309  ;;  %1729 = vadd.xlane.f32.xlu1 %v1728_v62  ;;  %v4091_v57 = vpop.xlane.xlu1 %1378  ;;  %2938 = vpow2.f32 %v1560_v9  ;;  %v4841_v9 = vld [vmem:[#allocation64_spill] sm:$0xff] }
 0x1a6   : > { %4835 = vst [vmem:[#allocation101_spill] sm:$0xff] %v4089_v53  ;;  %v1438_v26 = vsub.f32 %v4836_v37, %v4089_v53  ;;  %v1439_v36 = vsub.f32 %v4837_v27, %v4089_v53  ;;  %v1484_v33 = vsub.f32 %v4838_v40, %v4091_v57  ;;  %v1485_v56 = vsub.f32 %v4839_v38, %v4091_v57  ;;  %v2929_v62 = vpop.eup %2928 }
 0x1a7   : > { %v2931_v25 = vpop.eup %2930 }
 0x1a8   : > { %v1562_v5 = vmul.f32 1.442695, %v1438_v26  ;;  %v1564_v37 = vmul.f32 1.442695, %v1439_v36  ;;  %v1654_v27 = vmul.f32 1.442695, %v1484_v33  ;;  %v2933_v15 = vpop.eup %2932 }
 0x1a9   : > { %v1656_v44 = vmul.f32 1.442695, %v1485_v56  ;;  %v2935_v39 = vpop.eup %2934  ;;  %v4842_v36 = vld [vmem:[#allocation63_spill] sm:$0xff] }
 0x1aa   : > { %2940 = vpow2.f32 %v1562_v5  ;;  %v2937_v49 = vpop.eup %2936 }
 0x1ab   : > { %1732 = vadd.xlane.f32.xlu2 %v1731_v8  ;;  %2942 = vpow2.f32 %v1564_v37  ;;  %v2939_v33 = vpop.eup %2938 }
 0x1ac   : > { %1735 = vadd.xlane.f32.xlu0 %v1734_v47  ;;  %2944 = vpow2.f32 %v1654_v27  ;;  %v1803_v47 = vadd.f32 %v2931_v25, %v2929_v62  ;;  %v1737_v38 = vadd.f32 %v2939_v33, %v2937_v49 }
 0x1ad   : > { %v4101_v53 = vpop.xlane.xlu2 %1381  ;;  %1801 = vadd.xlane.f32.xlu1 %v1800_v4  ;;  %2946 = vpow2.f32 %v1656_v44  ;;  %v4843_v44 = vld [vmem:[#allocation67_spill] sm:$0xff] }
 0x1ae   : > { %v4103_v24 = vpop.xlane.xlu0 %1312  ;;  %v1486_v16 = vsub.f32 %v3776_v13, %v4101_v53  ;;  %v1487_v22 = vsub.f32 %v4842_v36, %v4101_v53  ;;  %v1806_v13 = vadd.f32 %v2935_v39, %v2933_v15  ;;  %v4844_v15 = vld [vmem:[#allocation66_spill] sm:$0xff] }
 0x1af   : > { %v1440_v28 = vsub.f32 %v4840_v2, %v4103_v24  ;;  %v1441_v26 = vsub.f32 %v4841_v9, %v4103_v24 }
 0x1b0   : > { %v1658_v4 = vmul.f32 1.442695, %v1486_v16  ;;  %v1660_v5 = vmul.f32 1.442695, %v1487_v22  ;;  %v2941_v40 = vpop.eup %2940 }
 0x1b1   : > { %v1566_v8 = vmul.f32 1.442695, %v1440_v28  ;;  %v1568_v56 = vmul.f32 1.442695, %v1441_v26  ;;  %v2943_v9 = vpop.eup %2942 }
 0x1b2   : > { %v2945_v27 = vpop.eup %2944  ;;  %v1740_v33 = vadd.f32 %v2943_v9, %v2941_v40  ;;  %v4846_v40 = vld [vmem:[#allocation71_spill] sm:$0xff] }
 0x1b3   : > { %2948 = vpow2.f32 %v1566_v8  ;;  %1804 = vadd.xlane.f32.xlu2 %v1803_v47  ;;  %v2947_v28 = vpop.eup %2946 }
 0x1b4   : > { %2950 = vpow2.f32 %v1568_v56  ;;  %1807 = vadd.xlane.f32.xlu0 %v1806_v13  ;;  %v4845_v13 = vld [vmem:[#allocation68_spill] sm:$0xff] }
 0x1b5   : > { %2952 = vpow2.f32 %v1658_v4  ;;  %1738 = vadd.xlane.f32.xlu1 %v1737_v38 }
 0x1b6   : > { %v4113_v37 = vpop.xlane.xlu0 %1384  ;;  %v4115_v36 = vpop.xlane.xlu1 %1315  ;;  %2954 = vpow2.f32 %v1660_v5 }
 0x1b7   : > { %v1488_v25 = vsub.f32 %v3798_v42, %v4113_v37  ;;  %v1489_v62 = vsub.f32 %v4843_v44, %v4113_v37  ;;  %v1442_v16 = vsub.f32 %v4844_v15, %v4115_v36  ;;  %v1443_v39 = vsub.f32 %v4845_v13, %v4115_v36 }
 0x1b8   : > { %v1809_v44 = vadd.f32 %v2947_v28, %v2945_v27  ;;  %v4848_v27 = vld [vmem:[#allocation69_spill] sm:$0xff]  ;;  %v4849_v28 = vld [vmem:[#allocation72_spill] sm:$0xff] }
 0x1b9   : > { %v2949_v38 = vpop.eup %2948  ;;  %v1662_v26 = vmul.f32 1.442695, %v1488_v25  ;;  %v1664_v49 = vmul.f32 1.442695, %v1489_v62  ;;  %v1570_v22 = vmul.f32 1.442695, %v1442_v16 }
 0x1ba   : > { %v2951_v8 = vpop.eup %2950  ;;  %v1572_v56 = vmul.f32 1.442695, %v1443_v39  ;;  %v4847_v25 = vld [vmem:[#allocation74_spill] sm:$0xff] }
 0x1bb   : > { %2956 = vpow2.f32 %v1662_v26  ;;  %1741 = vadd.xlane.f32.xlu2 %v1740_v33  ;;  %v1743_v47 = vadd.f32 %v2951_v8, %v2949_v38  ;;  %v2953_v4 = vpop.eup %2952 }
 0x1bc   : > { %2958 = vpow2.f32 %v1664_v49  ;;  %v2955_v15 = vpop.eup %2954 }
 0x1bd   : > { %2960 = vpow2.f32 %v1570_v22  ;;  %1744 = vadd.xlane.f32.xlu0 %v1743_v47  ;;  %1810 = vadd.xlane.f32.xlu1 %v1809_v44  ;;  %v1812_v22 = vadd.f32 %v2955_v15, %v2953_v4 }
 0x1be   : > { %2962 = vpow2.f32 %v1572_v56  ;;  %v1700_v5 = vpop.xlane.xlu0 %1699  ;;  %v4125_v13 = vpop.xlane.xlu2 %1318 }
 0x1bf   : > { %2964 = vlog2.f32 %v1700_v5  ;;  %v1444_v9 = vsub.f32 %v4846_v40, %v4125_v13  ;;  %v1445_v62 = vsub.f32 %v4847_v25, %v4125_v13  ;;  %v4131_v16 = vpop.xlane.xlu1 %1387 }
 0x1c0   : > { %v1490_v39 = vsub.f32 %v4848_v27, %v4131_v16  ;;  %v1491_v38 = vsub.f32 %v4849_v28, %v4131_v16 }
 0x1c1   : > { %v2957_v26 = vpop.eup %2956  ;;  %v1574_v44 = vmul.f32 1.442695, %v1444_v9  ;;  %v1576_v49 = vmul.f32 1.442695, %v1445_v62 }
 0x1c2   : > { %v2959_v33 = vpop.eup %2958  ;;  %v1666_v8 = vmul.f32 1.442695, %v1490_v39  ;;  %v1668_v56 = vmul.f32 1.442695, %v1491_v38  ;;  %v4850_v38 = vld [vmem:[#allocation61_spill] sm:$0xff] }
 0x1c3   : > { %v2961_v47 = vpop.eup %2960  ;;  %2966 = vpow2.f32 %v1574_v44  ;;  %1813 = vadd.xlane.f32.xlu2 %v1812_v22  ;;  %v1815_v5 = vadd.f32 %v2959_v33, %v2957_v26 }
 0x1c4   : > { %v2963_v25 = vpop.eup %2962  ;;  %2968 = vpow2.f32 %v1576_v49 }
 0x1c5   : > { %v2965_v40 = vpop.eup %2964  ;;  %2970 = vpow2.f32 %v1666_v8  ;;  %1816 = vadd.xlane.f32.xlu0 %v1815_v5  ;;  %v1746_v27 = vadd.f32 %v2963_v25, %v2961_v47  ;;  %v4851_v25 = vld [vmem:[#allocation3_spill] sm:$0xff]  ;;  %v4852_v8 = vld [vmem:[#allocation4_spill] sm:$0xff] }
 0x1c6   : > { %v1843_v28 = vmul.f32 0.6931472, %v2965_v40  ;;  %2972 = vpow2.f32 %v1668_v56  ;;  %v4138_v9 = vpop.xlane.xlu2 %1390 }
 0x1c7   : > { %1747 = vadd.xlane.f32.xlu1 %v1746_v27  ;;  %v1492_v15 = vsub.f32 %v3848_v30, %v4138_v9  ;;  %v1493_v4 = vsub.f32 %v3853_v1, %v4138_v9  ;;  %v1703_v62 = vpop.xlane.xlu1 %1702  ;;  %v1772_v39 = vpop.xlane.xlu0 %1771  ;;  %v4859_v1 = vld [vmem:[#allocation8_spill] sm:$0xff] }
 0x1c8   : > { %v1938_v26 = vadd.f32 %v1843_v28, %v4850_v38  ;;  %2974 = vlog2.f32 %v1703_v62 }
 0x1c9   : > { %v2967_v44 = vpop.eup %2966  ;;  %v1670_v49 = vmul.f32 1.442695, %v1492_v15  ;;  %v1672_v22 = vmul.f32 1.442695, %v1493_v4  ;;  %2976 = vlog2.f32 %v1772_v39 }
 0x1ca   : > { %v2969_v40 = vpop.eup %2968  ;;  %v1986_v33 = vsub.f32 %v4851_v25, %v1938_v26  ;;  %v1987_v27 = vsub.f32 %v4852_v8, %v1938_v26 }
 0x1cb   : > { %v2971_v56 = vpop.eup %2970  ;;  %2978 = vpow2.f32 %v1670_v49  ;;  %v1749_v47 = vadd.f32 %v2969_v40, %v2967_v44  ;;  %v4854_v40 = vld [vmem:[#allocation65_spill] sm:$0xff] }
 0x1cc   : > { %v2973_v5 = vpop.eup %2972  ;;  %2082 = vst [vmem:[%s4147_s15] sm:$0xff] %v1986_v33  ;;  %2980 = vpow2.f32 %v1672_v22 }
 0x1cd   : > { %2083 = vst [vmem:[%s4147_s15 + $0x8] sm:$0xff] %v1987_v27  ;;  %1750 = vadd.xlane.f32.xlu2 %v1749_v47  ;;  %v1818_v28 = vadd.f32 %v2973_v5, %v2971_v56  ;;  %v4855_v27 = vld [vmem:[#allocation70_spill] sm:$0xff] }
 0x1ce   : > { %v2975_v15 = vpop.eup %2974  ;;  %v1706_v4 = vpop.xlane.xlu2 %1705 }
 0x1cf   : > { %v2977_v62 = vpop.eup %2976  ;;  %v1845_v39 = vmul.f32 0.6931472, %v2975_v15  ;;  %1819 = vadd.xlane.f32.xlu1 %v1818_v28  ;;  %2982 = vlog2.f32 %v1706_v4  ;;  %v4151_v38 = vpop.xlane.xlu0 %1321  ;;  %v4856_v28 = vld [vmem:[#allocation5_spill] sm:$0xff]  ;;  %v4857_v4 = vld [vmem:[#allocation6_spill] sm:$0xff] }
 0x1d0   : > { %4853 = vst [vmem:[#allocation62_spill] sm:$0xff] %v4151_v38  ;;  %v1891_v26 = vmul.f32 0.6931472, %v2977_v62  ;;  %v1446_v44 = vsub.f32 %v3868_v50, %v4151_v38  ;;  %v1447_v49 = vsub.f32 %v3871_v51, %v4151_v38  ;;  %v1775_v33 = vpop.xlane.xlu1 %1774  ;;  %v4858_v51 = vld [vmem:[#allocation7_spill] sm:$0xff] }
 0x1d1   : > { %v2979_v22 = vpop.eup %2978  ;;  %v1939_v25 = vadd.f32 %v1845_v39, %v4854_v40  ;;  %2984 = vlog2.f32 %v1775_v33 }
 0x1d2   : > { %v2981_v8 = vpop.eup %2980  ;;  %v1962_v56 = vadd.f32 %v1891_v26, %v4855_v27  ;;  %v1578_v47 = vmul.f32 1.442695, %v1446_v44  ;;  %v1580_v5 = vmul.f32 1.442695, %v1447_v49 }
 0x1d3   : > { %v1988_v15 = vsub.f32 %v4856_v28, %v1939_v25  ;;  %v1989_v62 = vsub.f32 %v4857_v4, %v1939_v25  ;;  %v1821_v50 = vadd.f32 %v2981_v8, %v2979_v22  ;;  %v4860_v22 = vld [vmem:[#allocation73_spill] sm:$0xff] }
 0x1d4   : > { %v2034_v38 = vsub.f32 %v4858_v51, %v1962_v56  ;;  %v2035_v30 = vsub.f32 %v4859_v1, %v1962_v56  ;;  %2986 = vpow2.f32 %v1578_v47  ;;  %v4862_v56 = vld [vmem:[#allocation10_spill] sm:$0xff] }
 0x1d5   : > { %v2983_v39 = vpop.eup %2982  ;;  %2084 = vst [vmem:[%s4147_s15 + $0x10] sm:$0xff] %v1988_v15  ;;  %2988 = vpow2.f32 %v1580_v5  ;;  %1822 = vadd.xlane.f32.xlu2 %v1821_v50  ;;  %v4863_v15 = vld [vmem:[#allocation78_spill] sm:$0xff] }
 0x1d6   : > { %2085 = vst [vmem:[%s4147_s15 + $0x18] sm:$0xff] %v1989_v62  ;;  %v1847_v26 = vmul.f32 0.6931472, %v2983_v39  ;;  %v1778_v44 = vpop.xlane.xlu2 %1777 }
 0x1d7   : > { %2130 = vst [vmem:[%s4147_s15 + $0x180] sm:$0xff] %v2034_v38  ;;  %2990 = vlog2.f32 %v1778_v44  ;;  %v4166_v49 = vpop.xlane.xlu0 %1393  ;;  %v2985_v40 = vpop.eup %2984  ;;  %v4861_v38 = vld [vmem:[#allocation9_spill] sm:$0xff] }
 0x1d8   : > { %2131 = vst [vmem:[%s4147_s15 + $0x188] sm:$0xff] %v2035_v30  ;;  %v1940_v25 = vadd.f32 %v1847_v26, %v4860_v22  ;;  %v1494_v51 = vsub.f32 %v3884_v48, %v4166_v49  ;;  %v1495_v1 = vsub.f32 %v3887_v31, %v4166_v49  ;;  %v1893_v50 = vmul.f32 0.6931472, %v2985_v40  ;;  %v4174_v33 = vpop.xlane.xlu1 %1324  ;;  %v4864_v40 = vld [vmem:[#allocation11_spill] sm:$0xff] }
 0x1d9   : > { %v1448_v62 = vsub.f32 %v3894_v34, %v4174_v33  ;;  %v1449_v39 = vsub.f32 %v3899_v19, %v4174_v33 }
 0x1da   : > { %v2987_v8 = vpop.eup %2986  ;;  %v1990_v27 = vsub.f32 %v4861_v38, %v1940_v25  ;;  %v1991_v47 = vsub.f32 %v4862_v56, %v1940_v25  ;;  %v1674_v5 = vmul.f32 1.442695, %v1494_v51  ;;  %v1676_v28 = vmul.f32 1.442695, %v1495_v1  ;;  %v4865_v25 = vld [vmem:[#allocation12_spill] sm:$0xff] }
 0x1db   : > { %v2989_v30 = vpop.eup %2988  ;;  %v1963_v4 = vadd.f32 %v1893_v50, %v4863_v15  ;;  %v1582_v1 = vmul.f32 1.442695, %v1448_v62  ;;  %v1584_v38 = vmul.f32 1.442695, %v1449_v39  ;;  %v4867_v39 = vld [vmem:[#allocation13_spill] sm:$0xff] }
 0x1dc   : > { %2086 = vst [vmem:[%s4147_s15 + $0x20] sm:$0xff] %v1990_v27  ;;  %2992 = vpow2.f32 %v1674_v5  ;;  %v1752_v26 = vadd.f32 %v2989_v30, %v2987_v8  ;;  %v4866_v5 = vld [vmem:[#allocation76_spill] sm:$0xff] }
 0x1dd   : > { %v2991_v44 = vpop.eup %2990  ;;  %2087 = vst [vmem:[%s4147_s15 + $0x28] sm:$0xff] %v1991_v47  ;;  %v2036_v22 = vsub.f32 %v4864_v40, %v1963_v4  ;;  %v2037_v51 = vsub.f32 %v4865_v25, %v1963_v4  ;;  %2994 = vpow2.f32 %v1676_v28 }
 0x1de   : > { %v1895_v50 = vmul.f32 0.6931472, %v2991_v44  ;;  %1753 = vadd.xlane.f32.xlu0 %v1752_v26  ;;  %v4187_v56 = vpop.xlane.xlu2 %1327  ;;  %2996 = vpow2.f32 %v1582_v1  ;;  %v4868_v44 = vld [vmem:[#allocation14_spill] sm:$0xff] }
 0x1df   : > { %2132 = vst [vmem:[%s4147_s15 + $0x190] sm:$0xff] %v2036_v22  ;;  %v1450_v27 = vsub.f32 %v3910_v29, %v4187_v56  ;;  %v1451_v8 = vsub.f32 %v3913_v12, %v4187_v56  ;;  %v1709_v47 = vpop.xlane.xlu0 %1708  ;;  %2998 = vpow2.f32 %v1584_v38 }
 0x1e0   : > { %2133 = vst [vmem:[%s4147_s15 + $0x198] sm:$0xff] %v2037_v51  ;;  %v1964_v30 = vadd.f32 %v1895_v50, %v4866_v5  ;;  %3000 = vlog2.f32 %v1709_v47  ;;  %v4196_v4 = vpop.xlane.xlu1 %1396 }
 0x1e1   : > { %v1586_v28 = vmul.f32 1.442695, %v1450_v27  ;;  %v1588_v15 = vmul.f32 1.442695, %v1451_v8  ;;  %v1496_v22 = vsub.f32 %v3924_v45, %v4196_v4  ;;  %v1497_v25 = vsub.f32 %v3927_v21, %v4196_v4 }
 0x1e2   : > { %v2993_v62 = vpop.eup %2992  ;;  %v2038_v26 = vsub.f32 %v4867_v39, %v1964_v30  ;;  %v2039_v40 = vsub.f32 %v4868_v44, %v1964_v30 }
 0x1e3   : > { %v2995_v51 = vpop.eup %2994  ;;  %3002 = vpow2.f32 %v1586_v28  ;;  %v1678_v1 = vmul.f32 1.442695, %v1496_v22  ;;  %v1680_v50 = vmul.f32 1.442695, %v1497_v25 }
 0x1e4   : > { %2134 = vst [vmem:[%s4147_s15 + $0x1a0] sm:$0xff] %v2038_v26  ;;  %3004 = vpow2.f32 %v1588_v15  ;;  %v1824_v38 = vadd.f32 %v2995_v51, %v2993_v62  ;;  %v2997_v27 = vpop.eup %2996 }
 0x1e5   : > { %2135 = vst [vmem:[%s4147_s15 + $0x1a8] sm:$0xff] %v2039_v40  ;;  %v2999_v8 = vpop.eup %2998  ;;  %3006 = vpow2.f32 %v1678_v1 }
 0x1e6   : > { %1825 = vadd.xlane.f32.xlu0 %v1824_v38  ;;  %v4206_v47 = vpop.xlane.xlu2 %1399  ;;  %v3001_v5 = vpop.eup %3000  ;;  %3008 = vpow2.f32 %v1680_v50  ;;  %v1755_v30 = vadd.f32 %v2999_v8, %v2997_v27  ;;  %v4869_v38 = vld [vmem:[#allocation15_spill] sm:$0xff]  ;;  %v4870_v8 = vld [vmem:[#allocation16_spill] sm:$0xff] }
 0x1e7   : > { %v1498_v39 = vsub.f32 %v3936_v20, %v4206_v47  ;;  %v1499_v28 = vsub.f32 %v3939_v3, %v4206_v47  ;;  %v1781_v15 = vpop.xlane.xlu0 %1780  ;;  %v1849_v26 = vmul.f32 0.6931472, %v3001_v5 }
 0x1e8   : > { %3010 = vlog2.f32 %v1781_v15  ;;  %1756 = vadd.xlane.f32.xlu1 %v1755_v30  ;;  %v1712_v22 = vpop.xlane.xlu1 %1711 }
 0x1e9   : > { %v3003_v62 = vpop.eup %3002  ;;  %v1682_v44 = vmul.f32 1.442695, %v1498_v39  ;;  %v1684_v40 = vmul.f32 1.442695, %v1499_v28  ;;  %v1941_v51 = vadd.f32 %v1849_v26, %v3873_v43  ;;  %3012 = vlog2.f32 %v1712_v22 }
 0x1ea   : > { %v3005_v25 = vpop.eup %3004 }
 0x1eb   : > { %3014 = vpow2.f32 %v1682_v44  ;;  %v1758_v1 = vadd.f32 %v3005_v25, %v3003_v62  ;;  %v3007_v50 = vpop.eup %3006  ;;  %v1992_v27 = vsub.f32 %v4869_v38, %v1941_v51  ;;  %v1993_v3 = vsub.f32 %v4870_v8, %v1941_v51  ;;  %v4872_v38 = vld [vmem:[#allocation18_spill] sm:$0xff]  ;;  %v4873_v8 = vld [vmem:[#allocation20_spill] sm:$0xff] }
 0x1ec   : > { %3016 = vpow2.f32 %v1684_v40  ;;  %v3009_v5 = vpop.eup %3008  ;;  %v4871_v40 = vld [vmem:[#allocation82_spill] sm:$0xff] }
 0x1ed   : > { %1759 = vadd.xlane.f32.xlu2 %v1758_v1  ;;  %2088 = vst [vmem:[%s4147_s15 + $0x30] sm:$0xff] %v1992_v27  ;;  %v1827_v39 = vadd.f32 %v3009_v5, %v3007_v50 }
 0x1ee   : > { %v3011_v30 = vpop.eup %3010  ;;  %v1715_v28 = vpop.xlane.xlu2 %1714  ;;  %2089 = vst [vmem:[%s4147_s15 + $0x38] sm:$0xff] %v1993_v3 }
 0x1ef   : > { %v1897_v15 = vmul.f32 0.6931472, %v3011_v30  ;;  %3018 = vlog2.f32 %v1715_v28  ;;  %v4217_v20 = vpop.xlane.xlu0 %1330  ;;  %v3013_v43 = vpop.eup %3012  ;;  %v4874_v30 = vld [vmem:[#allocation81_spill] sm:$0xff] }
 0x1f0   : > { %v1452_v26 = vsub.f32 %v3954_v11, %v4217_v20  ;;  %v1453_v62 = vsub.f32 %v3957_v35, %v4217_v20  ;;  %v1851_v25 = vmul.f32 0.6931472, %v3013_v43  ;;  %1828 = vadd.xlane.f32.xlu1 %v1827_v39  ;;  %v1784_v51 = vpop.xlane.xlu1 %1783  ;;  %v4876_v43 = vld [vmem:[#allocation19_spill] sm:$0xff] }
 0x1f1   : > { %v3015_v44 = vpop.eup %3014  ;;  %v1965_v22 = vadd.f32 %v1897_v15, %v4871_v40  ;;  %3020 = vlog2.f32 %v1784_v51  ;;  %v4875_v15 = vld [vmem:[#allocation17_spill] sm:$0xff] }
 0x1f2   : > { %v3017_v3 = vpop.eup %3016  ;;  %v1590_v1 = vmul.f32 1.442695, %v1452_v26  ;;  %v1592_v50 = vmul.f32 1.442695, %v1453_v62  ;;  %v1942_v28 = vadd.f32 %v1851_v25, %v4874_v30 }
 0x1f3   : > { %v2040_v27 = vsub.f32 %v4872_v38, %v1965_v22  ;;  %v2041_v5 = vsub.f32 %v4873_v8, %v1965_v22  ;;  %v1830_v35 = vadd.f32 %v3017_v3, %v3015_v44  ;;  %v4877_v44 = vld [vmem:[#allocation83_spill] sm:$0xff]  ;;  %v4878_v38 = vld [vmem:[#allocation21_spill] sm:$0xff] }
 0x1f4   : > { %3022 = vpow2.f32 %v1590_v1  ;;  %v1994_v39 = vsub.f32 %v4875_v15, %v1942_v28  ;;  %v1995_v40 = vsub.f32 %v4876_v43, %v1942_v28  ;;  %v4879_v8 = vld [vmem:[#allocation23_spill] sm:$0xff] }
 0x1f5   : > { %v3019_v11 = vpop.eup %3018  ;;  %2136 = vst [vmem:[%s4147_s15 + $0x1b0] sm:$0xff] %v2040_v27  ;;  %3024 = vpow2.f32 %v1592_v50  ;;  %1831 = vadd.xlane.f32.xlu2 %v1830_v35 }
 0x1f6   : > { %2137 = vst [vmem:[%s4147_s15 + $0x1b8] sm:$0xff] %v2041_v5  ;;  %v1853_v26 = vmul.f32 0.6931472, %v3019_v11  ;;  %v1787_v62 = vpop.xlane.xlu2 %1786 }
 0x1f7   : > { %2090 = vst [vmem:[%s4147_s15 + $0x40] sm:$0xff] %v1994_v39  ;;  %3026 = vlog2.f32 %v1787_v62  ;;  %v4232_v51 = vpop.xlane.xlu0 %1402  ;;  %v3021_v22 = vpop.eup %3020  ;;  %v4880_v39 = vld [vmem:[#allocation84_spill] sm:$0xff] }
 0x1f8   : > { %2091 = vst [vmem:[%s4147_s15 + $0x48] sm:$0xff] %v1995_v40  ;;  %v1943_v25 = vadd.f32 %v1853_v26, %v4877_v44  ;;  %v1500_v3 = vsub.f32 %v3970_v46, %v4232_v51  ;;  %v1501_v1 = vsub.f32 %v3973_v63, %v4232_v51  ;;  %v1899_v35 = vmul.f32 0.6931472, %v3021_v22  ;;  %v4240_v50 = vpop.xlane.xlu1 %1333  ;;  %v4881_v26 = vld [vmem:[#allocation94_spill] sm:$0xff] }
 0x1f9   : > { %v1454_v40 = vsub.f32 %v3976_v58, %v4240_v50  ;;  %v1455_v62 = vsub.f32 %v4881_v26, %v4240_v50 }
 0x1fa   : > { %v3023_v11 = vpop.eup %3022  ;;  %v1996_v27 = vsub.f32 %v4878_v38, %v1943_v25  ;;  %v1997_v5 = vsub.f32 %v4879_v8, %v1943_v25  ;;  %v1686_v30 = vmul.f32 1.442695, %v1500_v3  ;;  %v1688_v28 = vmul.f32 1.442695, %v1501_v1  ;;  %v4882_v38 = vld [vmem:[#allocation22_spill] sm:$0xff]  ;;  %v4883_v3 = vld [vmem:[#allocation24_spill] sm:$0xff] }
 0x1fb   : > { %v3025_v15 = vpop.eup %3024  ;;  %v1966_v43 = vadd.f32 %v1899_v35, %v4880_v39  ;;  %v1594_v8 = vmul.f32 1.442695, %v1454_v40  ;;  %v1596_v39 = vmul.f32 1.442695, %v1455_v62 }
 0x1fc   : > { %2092 = vst [vmem:[%s4147_s15 + $0x50] sm:$0xff] %v1996_v27  ;;  %3028 = vpow2.f32 %v1686_v30  ;;  %v1761_v22 = vadd.f32 %v3025_v15, %v3023_v11  ;;  %v4884_v30 = vld [vmem:[#allocation87_spill] sm:$0xff] }
 0x1fd   : > { %v3027_v44 = vpop.eup %3026  ;;  %2093 = vst [vmem:[%s4147_s15 + $0x58] sm:$0xff] %v1997_v5  ;;  %v2042_v25 = vsub.f32 %v4882_v38, %v1966_v43  ;;  %v2043_v1 = vsub.f32 %v4883_v3, %v1966_v43  ;;  %3030 = vpow2.f32 %v1688_v28  ;;  %v4886_v38 = vld [vmem:[#allocation28_spill] sm:$0xff] }
 0x1fe   : > { %v1901_v35 = vmul.f32 0.6931472, %v3027_v44  ;;  %1762 = vadd.xlane.f32.xlu0 %v1761_v22  ;;  %v4253_v63 = vpop.xlane.xlu2 %1336  ;;  %3032 = vpow2.f32 %v1594_v8  ;;  %v4885_v22 = vld [vmem:[#allocation26_spill] sm:$0xff] }
 0x1ff   : > { %2138 = vst [vmem:[%s4147_s15 + $0x1c0] sm:$0xff] %v2042_v25  ;;  %v1456_v27 = vsub.f32 %v4000_v17, %v4253_v63  ;;  %v1457_v11 = vsub.f32 %v4003_v54, %v4253_v63  ;;  %v1718_v5 = vpop.xlane.xlu0 %1717  ;;  %3034 = vpow2.f32 %v1596_v39 }
 0x200   : > { %2139 = vst [vmem:[%s4147_s15 + $0x1c8] sm:$0xff] %v2043_v1  ;;  %v1967_v15 = vadd.f32 %v1901_v35, %v4884_v30  ;;  %3036 = vlog2.f32 %v1718_v5  ;;  %v4262_v40 = vpop.xlane.xlu1 %1405 }
 0x201   : > { %v1598_v28 = vmul.f32 1.442695, %v1456_v27  ;;  %v1600_v43 = vmul.f32 1.442695, %v1457_v11  ;;  %v1502_v3 = vsub.f32 %v4008_v23, %v4262_v40  ;;  %v1503_v1 = vsub.f32 %v4011_v52, %v4262_v40 }
 0x202   : > { %v3029_v62 = vpop.eup %3028  ;;  %v2044_v44 = vsub.f32 %v4885_v22, %v1967_v15  ;;  %v2045_v25 = vsub.f32 %v4886_v38, %v1967_v15 }
 0x203   : > { %v3031_v8 = vpop.eup %3030  ;;  %3038 = vpow2.f32 %v1598_v28  ;;  %v1690_v35 = vmul.f32 1.442695, %v1502_v3  ;;  %v1692_v39 = vmul.f32 1.442695, %v1503_v1 }
 0x204   : > { %2140 = vst [vmem:[%s4147_s15 + $0x1d0] sm:$0xff] %v2044_v44  ;;  %3040 = vpow2.f32 %v1600_v43  ;;  %v1833_v27 = vadd.f32 %v3031_v8, %v3029_v62  ;;  %v3033_v11 = vpop.eup %3032 }
 0x205   : > { %2141 = vst [vmem:[%s4147_s15 + $0x1d8] sm:$0xff] %v2045_v25  ;;  %v3035_v5 = vpop.eup %3034  ;;  %3042 = vpow2.f32 %v1690_v35  ;;  %v4888_v35 = vld [vmem:[#allocation88_spill] sm:$0xff] }
 0x206   : > { %1834 = vadd.xlane.f32.xlu0 %v1833_v27  ;;  %v4272_v30 = vpop.xlane.xlu2 %1408  ;;  %v3037_v15 = vpop.eup %3036  ;;  %3044 = vpow2.f32 %v1692_v39  ;;  %v1764_v22 = vadd.f32 %v3035_v5, %v3033_v11  ;;  %v4889_v5 = vld [vmem:[#allocation25_spill] sm:$0xff] }
 0x207   : > { %4887 = vst [vmem:[#allocation61_spill] sm:$0xff] %v4272_v30  ;;  %v1504_v38 = vsub.f32 %v4032_v14, %v4272_v30  ;;  %v1505_v28 = vsub.f32 %v4035_v41, %v4272_v30  ;;  %v1790_v43 = vpop.xlane.xlu0 %1789  ;;  %v1855_v44 = vmul.f32 0.6931472, %v3037_v15  ;;  %v4890_v41 = vld [vmem:[#allocation27_spill] sm:$0xff] }
 0x208   : > { %3046 = vlog2.f32 %v1790_v43  ;;  %1765 = vadd.xlane.f32.xlu1 %v1764_v22  ;;  %v1721_v1 = vpop.xlane.xlu1 %1720 }
 0x209   : > { %v3039_v62 = vpop.eup %3038  ;;  %v1694_v25 = vmul.f32 1.442695, %v1504_v38  ;;  %v1696_v3 = vmul.f32 1.442695, %v1505_v28  ;;  %v1944_v39 = vadd.f32 %v1855_v44, %v4888_v35  ;;  %3048 = vlog2.f32 %v1721_v1 }
 0x20a   : > { %v3041_v8 = vpop.eup %3040 }
 0x20b   : > { %3050 = vpow2.f32 %v1694_v25  ;;  %v1767_v27 = vadd.f32 %v3041_v8, %v3039_v62  ;;  %v3043_v11 = vpop.eup %3042  ;;  %v1998_v14 = vsub.f32 %v4889_v5, %v1944_v39  ;;  %v1999_v30 = vsub.f32 %v4890_v41, %v1944_v39  ;;  %v4891_v25 = vld [vmem:[#allocation92_spill] sm:$0xff] }
 0x20c   : > { %3052 = vpow2.f32 %v1696_v3  ;;  %v3045_v15 = vpop.eup %3044 }
 0x20d   : > { %1768 = vadd.xlane.f32.xlu2 %v1767_v27  ;;  %2094 = vst [vmem:[%s4147_s15 + $0x60] sm:$0xff] %v1998_v14  ;;  %v1836_v38 = vadd.f32 %v3045_v15, %v3043_v11  ;;  %v4892_v14 = vld [vmem:[#allocation30_spill] sm:$0xff]  ;;  %v4893_v27 = vld [vmem:[#allocation32_spill] sm:$0xff]  ;;  %v4894_v11 = vld [vmem:[#allocation91_spill] sm:$0xff] }
 0x20e   : > { %v3047_v22 = vpop.eup %3046  ;;  %v1724_v28 = vpop.xlane.xlu2 %1723  ;;  %2095 = vst [vmem:[%s4147_s15 + $0x68] sm:$0xff] %v1999_v30 }
 0x20f   : > { %v1903_v43 = vmul.f32 0.6931472, %v3047_v22  ;;  %3054 = vlog2.f32 %v1724_v28  ;;  %v1727_v44 = vpop.xlane.xlu0 %1726  ;;  %v3049_v1 = vpop.eup %3048  ;;  %v4895_v28 = vld [vmem:[#allocation29_spill] sm:$0xff] }
 0x210   : > { %3056 = vlog2.f32 %v1727_v44  ;;  %v1857_v35 = vmul.f32 0.6931472, %v3049_v1  ;;  %1837 = vadd.xlane.f32.xlu1 %v1836_v38  ;;  %v1793_v41 = vpop.xlane.xlu1 %1792 }
 0x211   : > { %v3051_v62 = vpop.eup %3050  ;;  %v1968_v8 = vadd.f32 %v1903_v43, %v4891_v25  ;;  %3058 = vlog2.f32 %v1793_v41  ;;  %v4896_v43 = vld [vmem:[#allocation31_spill] sm:$0xff] }
 0x212   : > { %v3053_v3 = vpop.eup %3052  ;;  %v1945_v5 = vadd.f32 %v1857_v35, %v4894_v11  ;;  %v4898_v11 = vld [vmem:[#allocation35_spill] sm:$0xff] }
 0x213   : > { %v2046_v39 = vsub.f32 %v4892_v14, %v1968_v8  ;;  %v2047_v30 = vsub.f32 %v4893_v27, %v1968_v8  ;;  %v1839_v15 = vadd.f32 %v3053_v3, %v3051_v62  ;;  %v4897_v27 = vld [vmem:[#allocation33_spill] sm:$0xff] }
 0x214   : > { %v2000_v44 = vsub.f32 %v4895_v28, %v1945_v5  ;;  %v2001_v25 = vsub.f32 %v4896_v43, %v1945_v5 }
 0x215   : > { %v3055_v22 = vpop.eup %3054  ;;  %2142 = vst [vmem:[%s4147_s15 + $0x1e0] sm:$0xff] %v2046_v39  ;;  %1840 = vadd.xlane.f32.xlu2 %v1839_v15  ;;  %v4899_v15 = vld [vmem:[#allocation37_spill] sm:$0xff] }
 0x216   : > { %v3057_v38 = vpop.eup %3056  ;;  %2143 = vst [vmem:[%s4147_s15 + $0x1e8] sm:$0xff] %v2047_v30  ;;  %v1859_v1 = vmul.f32 0.6931472, %v3055_v22  ;;  %v1796_v52 = vpop.xlane.xlu2 %1795  ;;  %v4900_v22 = vld [vmem:[#allocation39_spill] sm:$0xff] }
 0x217   : > { %2096 = vst [vmem:[%s4147_s15 + $0x70] sm:$0xff] %v2000_v44  ;;  %v1861_v41 = vmul.f32 0.6931472, %v3057_v38  ;;  %3060 = vlog2.f32 %v1796_v52  ;;  %v1799_v8 = vpop.xlane.xlu0 %1798  ;;  %v3059_v35 = vpop.eup %3058 }
 0x218   : > { %2097 = vst [vmem:[%s4147_s15 + $0x78] sm:$0xff] %v2001_v25  ;;  %v1946_v62 = vadd.f32 %v1859_v1, %v3981_v0  ;;  %3062 = vlog2.f32 %v1799_v8  ;;  %v1905_v14 = vmul.f32 0.6931472, %v3059_v35  ;;  %v1730_v39 = vpop.xlane.xlu1 %1729  ;;  %v4902_v25 = vld [vmem:[#allocation36_spill] sm:$0xff] }
 0x219   : > { %v1947_v3 = vadd.f32 %v1861_v41, %v3997_v10  ;;  %3064 = vlog2.f32 %v1730_v39  ;;  %v4901_v10 = vld [vmem:[#allocation34_spill] sm:$0xff] }
 0x21a   : > { %v2002_v30 = vsub.f32 %v4897_v27, %v1946_v62  ;;  %v2003_v5 = vsub.f32 %v4898_v11, %v1946_v62  ;;  %v1969_v44 = vadd.f32 %v1905_v14, %v3995_v6 }
 0x21b   : > { %v2004_v52 = vsub.f32 %v4899_v15, %v1947_v3  ;;  %v2005_v28 = vsub.f32 %v4900_v22, %v1947_v3 }
 0x21c   : > { %2098 = vst [vmem:[%s4147_s15 + $0x80] sm:$0xff] %v2002_v30  ;;  %v2048_v43 = vsub.f32 %v4901_v10, %v1969_v44  ;;  %v2049_v38 = vsub.f32 %v4902_v25, %v1969_v44  ;;  %v4903_v30 = vld [vmem:[#allocation38_spill] sm:$0xff] }
 0x21d   : > { %v3061_v0 = vpop.eup %3060  ;;  %2099 = vst [vmem:[%s4147_s15 + $0x88] sm:$0xff] %v2003_v5  ;;  %v4904_v5 = vld [vmem:[#allocation40_spill] sm:$0xff] }
 0x21e   : > { %v3063_v1 = vpop.eup %3062  ;;  %2100 = vst [vmem:[%s4147_s15 + $0x90] sm:$0xff] %v2004_v52  ;;  %v1907_v41 = vmul.f32 0.6931472, %v3061_v0  ;;  %v1733_v8 = vpop.xlane.xlu2 %1732  ;;  %v4905_v52 = vld [vmem:[#allocation42_spill] sm:$0xff] }
 0x21f   : > { %2101 = vst [vmem:[%s4147_s15 + $0x98] sm:$0xff] %v2005_v28  ;;  %v1909_v35 = vmul.f32 0.6931472, %v3063_v1  ;;  %3066 = vlog2.f32 %v1733_v8  ;;  %v1736_v62 = vpop.xlane.xlu0 %1735  ;;  %v3065_v3 = vpop.eup %3064  ;;  %v4906_v28 = vld [vmem:[#allocation43_spill] sm:$0xff] }
 0x220   : > { %2144 = vst [vmem:[%s4147_s15 + $0x1f0] sm:$0xff] %v2048_v43  ;;  %v1970_v6 = vadd.f32 %v1907_v41, %v4019_v18  ;;  %3068 = vlog2.f32 %v1736_v62  ;;  %v1863_v39 = vmul.f32 0.6931472, %v3065_v3  ;;  %v1802_v27 = vpop.xlane.xlu1 %1801  ;;  %v4908_v62 = vld [vmem:[#allocation99_spill] sm:$0xff] }
 0x221   : > { %2145 = vst [vmem:[%s4147_s15 + $0x1f8] sm:$0xff] %v2049_v38  ;;  %v1971_v14 = vadd.f32 %v1909_v35, %v4037_v55  ;;  %3070 = vlog2.f32 %v1802_v27  ;;  %v4907_v55 = vld [vmem:[#allocation41_spill] sm:$0xff]  ;;  %v4910_v27 = vld [vmem:[#allocation46_spill] sm:$0xff] }
 0x222   : > { %v2050_v11 = vsub.f32 %v4903_v30, %v1970_v6  ;;  %v2051_v15 = vsub.f32 %v4904_v5, %v1970_v6  ;;  %v1948_v18 = vadd.f32 %v1863_v39, %v4029_v32 }
 0x223   : > { %v2052_v22 = vsub.f32 %v4905_v52, %v1971_v14  ;;  %v2053_v44 = vsub.f32 %v4906_v28, %v1971_v14  ;;  %v4909_v14 = vld [vmem:[#allocation44_spill] sm:$0xff] }
 0x224   : > { %2146 = vst [vmem:[%s4147_s15 + $0x200] sm:$0xff] %v2050_v11  ;;  %v2006_v10 = vsub.f32 %v4907_v55, %v1948_v18  ;;  %v2007_v43 = vsub.f32 %v3702_v7, %v1948_v18  ;;  %v4911_v11 = vld [vmem:[#allocation48_spill] sm:$0xff] }
 0x225   : > { %v3067_v0 = vpop.eup %3066  ;;  %2147 = vst [vmem:[%s4147_s15 + $0x208] sm:$0xff] %v2051_v15  ;;  %v4912_v15 = vld [vmem:[#allocation50_spill] sm:$0xff] }
 0x226   : > { %v3069_v25 = vpop.eup %3068  ;;  %2148 = vst [vmem:[%s4147_s15 + $0x210] sm:$0xff] %v2052_v22  ;;  %v1865_v38 = vmul.f32 0.6931472, %v3067_v0  ;;  %v1805_v1 = vpop.xlane.xlu2 %1804  ;;  %v4913_v22 = vld [vmem:[#allocation98_spill] sm:$0xff]  ;;  %v4915_v0 = vld [vmem:[#allocation47_spill] sm:$0xff] }
 0x227   : > { %2149 = vst [vmem:[%s4147_s15 + $0x218] sm:$0xff] %v2053_v44  ;;  %v1867_v41 = vmul.f32 0.6931472, %v3069_v25  ;;  %3072 = vlog2.f32 %v1805_v1  ;;  %v1808_v8 = vpop.xlane.xlu0 %1807  ;;  %v3071_v35 = vpop.eup %3070  ;;  %v4914_v44 = vld [vmem:[#allocation45_spill] sm:$0xff] }
 0x228   : > { %2102 = vst [vmem:[%s4147_s15 + $0xa0] sm:$0xff] %v2006_v10  ;;  %v1949_v32 = vadd.f32 %v1865_v38, %v4047_v59  ;;  %3074 = vlog2.f32 %v1808_v8  ;;  %v1911_v7 = vmul.f32 0.6931472, %v3071_v35  ;;  %v1739_v6 = vpop.xlane.xlu1 %1738 }
 0x229   : > { %2103 = vst [vmem:[%s4147_s15 + $0xa8] sm:$0xff] %v2007_v43  ;;  %v1950_v3 = vadd.f32 %v1867_v41, %v4908_v62  ;;  %3076 = vlog2.f32 %v1739_v6  ;;  %v4916_v41 = vld [vmem:[#allocation100_spill] sm:$0xff] }
 0x22a   : > { %v2008_v39 = vsub.f32 %v4909_v14, %v1949_v32  ;;  %v2009_v30 = vsub.f32 %v4910_v27, %v1949_v32  ;;  %v1972_v59 = vadd.f32 %v1911_v7, %v4913_v22  ;;  %v4917_v7 = vld [vmem:[#allocation49_spill] sm:$0xff]  ;;  %v4918_v14 = vld [vmem:[#allocation51_spill] sm:$0xff] }
 0x22b   : > { %v2010_v5 = vsub.f32 %v4911_v11, %v1950_v3  ;;  %v2011_v52 = vsub.f32 %v4912_v15, %v1950_v3  ;;  %v4919_v27 = vld [vmem:[#allocation53_spill] sm:$0xff]  ;;  %v4920_v11 = vld [vmem:[#allocation55_spill] sm:$0xff] }
 0x22c   : > { %2104 = vst [vmem:[%s4147_s15 + $0xb0] sm:$0xff] %v2008_v39  ;;  %v2054_v18 = vsub.f32 %v4914_v44, %v1972_v59  ;;  %v2055_v55 = vsub.f32 %v4915_v0, %v1972_v59  ;;  %v4922_v59 = vld [vmem:[#allocation54_spill] sm:$0xff] }
 0x22d   : > { %v3073_v28 = vpop.eup %3072  ;;  %2105 = vst [vmem:[%s4147_s15 + $0xb8] sm:$0xff] %v2009_v30 }
 0x22e   : > { %v3075_v10 = vpop.eup %3074  ;;  %2106 = vst [vmem:[%s4147_s15 + $0xc0] sm:$0xff] %v2010_v5  ;;  %v1913_v43 = vmul.f32 0.6931472, %v3073_v28  ;;  %v1742_v25 = vpop.xlane.xlu2 %1741 }
 0x22f   : > { %2107 = vst [vmem:[%s4147_s15 + $0xc8] sm:$0xff] %v2011_v52  ;;  %v1915_v38 = vmul.f32 0.6931472, %v3075_v10  ;;  %3078 = vlog2.f32 %v1742_v25  ;;  %v3077_v1 = vpop.eup %3076  ;;  %v4923_v10 = vld [vmem:[#allocation101_spill] sm:$0xff] }
 0x230   : > { %2150 = vst [vmem:[%s4147_s15 + $0x220] sm:$0xff] %v2054_v18  ;;  %v1973_v8 = vadd.f32 %v1913_v43, %v4916_v41  ;;  %v1745_v35 = vpop.xlane.xlu0 %1744  ;;  %v1869_v62 = vmul.f32 0.6931472, %v3077_v1  ;;  %v1811_v3 = vpop.xlane.xlu1 %1810  ;;  %v4924_v1 = vld [vmem:[#allocation56_spill] sm:$0xff] }
 0x231   : > { %2151 = vst [vmem:[%s4147_s15 + $0x228] sm:$0xff] %v2055_v55  ;;  %v1974_v32 = vadd.f32 %v1915_v38, %v4073_v61  ;;  %3080 = vlog2.f32 %v1745_v35  ;;  %v4921_v61 = vld [vmem:[#allocation52_spill] sm:$0xff] }
 0x232   : > { %v2056_v6 = vsub.f32 %v4917_v7, %v1973_v8  ;;  %v2057_v39 = vsub.f32 %v4918_v14, %v1973_v8  ;;  %3082 = vlog2.f32 %v1811_v3  ;;  %v1951_v15 = vadd.f32 %v1869_v62, %v4075_v60  ;;  %v4925_v8 = vld [vmem:[#allocation58_spill] sm:$0xff] }
 0x233   : > { %v2058_v30 = vsub.f32 %v4919_v27, %v1974_v32  ;;  %v2059_v5 = vsub.f32 %v4920_v11, %v1974_v32  ;;  %v4927_v27 = vld [vmem:[#allocation57_spill] sm:$0xff]  ;;  %v4928_v11 = vld [vmem:[#allocation59_spill] sm:$0xff] }
 0x234   : > { %2152 = vst [vmem:[%s4147_s15 + $0x230] sm:$0xff] %v2056_v6  ;;  %v2012_v22 = vsub.f32 %v4921_v61, %v1951_v15  ;;  %v2013_v28 = vsub.f32 %v4922_v59, %v1951_v15  ;;  %v4926_v6 = vld [vmem:[#allocation64_spill] sm:$0xff] }
 0x235   : > { %v3079_v52 = vpop.eup %3078  ;;  %2153 = vst [vmem:[%s4147_s15 + $0x238] sm:$0xff] %v2057_v39 }
 0x236   : > { %2154 = vst [vmem:[%s4147_s15 + $0x240] sm:$0xff] %v2058_v30  ;;  %v1871_v44 = vmul.f32 0.6931472, %v3079_v52  ;;  %v1814_v18 = vpop.xlane.xlu2 %1813 }
 0x237   : > { %v3081_v0 = vpop.eup %3080  ;;  %2155 = vst [vmem:[%s4147_s15 + $0x248] sm:$0xff] %v2059_v5  ;;  %3084 = vlog2.f32 %v1814_v18 }
 0x238   : > { %v3083_v55 = vpop.eup %3082  ;;  %2108 = vst [vmem:[%s4147_s15 + $0xd0] sm:$0xff] %v2012_v22  ;;  %v1952_v43 = vadd.f32 %v1871_v44, %v4923_v10  ;;  %v1873_v60 = vmul.f32 0.6931472, %v3081_v0  ;;  %v1817_v25 = vpop.xlane.xlu0 %1816  ;;  %v4929_v22 = vld [vmem:[#allocation60_spill] sm:$0xff]  ;;  %v4931_v10 = vld [vmem:[#allocation67_spill] sm:$0xff] }
 0x239   : > { %2109 = vst [vmem:[%s4147_s15 + $0xd8] sm:$0xff] %v2013_v28  ;;  %v1917_v38 = vmul.f32 0.6931472, %v3083_v55  ;;  %3086 = vlog2.f32 %v1817_v25  ;;  %v4930_v28 = vld [vmem:[#allocation63_spill] sm:$0xff]  ;;  %v4932_v25 = vld [vmem:[#allocation66_spill] sm:$0xff] }
 0x23a   : > { %v2014_v41 = vsub.f32 %v4924_v1, %v1952_v43  ;;  %v2015_v35 = vsub.f32 %v4925_v8, %v1952_v43  ;;  %v1953_v32 = vadd.f32 %v1873_v60, %v4103_v24  ;;  %v1748_v62 = vpop.xlane.xlu1 %1747  ;;  %v4933_v1 = vld [vmem:[#allocation68_spill] sm:$0xff] }
 0x23b   : > { %v1975_v3 = vadd.f32 %v1917_v38, %v4091_v57  ;;  %3088 = vlog2.f32 %v1748_v62  ;;  %v4934_v62 = vld [vmem:[#allocation71_spill] sm:$0xff] }
 0x23c   : > { %2110 = vst [vmem:[%s4147_s15 + $0xe0] sm:$0xff] %v2014_v41  ;;  %v2016_v7 = vsub.f32 %v4840_v2, %v1953_v32  ;;  %v2017_v14 = vsub.f32 %v4926_v6, %v1953_v32 }
 0x23d   : > { %v3085_v39 = vpop.eup %3084  ;;  %2111 = vst [vmem:[%s4147_s15 + $0xe8] sm:$0xff] %v2015_v35  ;;  %v2060_v30 = vsub.f32 %v4927_v27, %v1975_v3  ;;  %v2061_v5 = vsub.f32 %v4928_v11, %v1975_v3 }
 0x23e   : > { %2112 = vst [vmem:[%s4147_s15 + $0xf0] sm:$0xff] %v2016_v7  ;;  %v1919_v15 = vmul.f32 0.6931472, %v3085_v39  ;;  %v4935_v7 = vld [vmem:[#allocation74_spill] sm:$0xff]  ;;  %v4936_v39 = vld [vmem:[#allocation69_spill] sm:$0xff] }
 0x23f   : > { %v3087_v24 = vpop.eup %3086  ;;  %2113 = vst [vmem:[%s4147_s15 + $0xf8] sm:$0xff] %v2017_v14 }
 0x240   : > { %2156 = vst [vmem:[%s4147_s15 + $0x250] sm:$0xff] %v2060_v30  ;;  %v1976_v57 = vadd.f32 %v1919_v15, %v4101_v53  ;;  %v1921_v52 = vmul.f32 0.6931472, %v3087_v24  ;;  %v1751_v2 = vpop.xlane.xlu2 %1750  ;;  %v4937_v30 = vld [vmem:[#allocation72_spill] sm:$0xff] }
 0x241   : > { %v3089_v61 = vpop.eup %3088  ;;  %2157 = vst [vmem:[%s4147_s15 + $0x258] sm:$0xff] %v2061_v5  ;;  %3090 = vlog2.f32 %v1751_v2  ;;  %v4939_v2 = vld [vmem:[#allocation77_spill] sm:$0xff] }
 0x242   : > { %v2062_v59 = vsub.f32 %v4929_v22, %v1976_v57  ;;  %v2063_v44 = vsub.f32 %v4930_v28, %v1976_v57  ;;  %v1977_v18 = vadd.f32 %v1921_v52, %v4113_v37  ;;  %v1875_v0 = vmul.f32 0.6931472, %v3089_v61  ;;  %v1820_v55 = vpop.xlane.xlu1 %1819  ;;  %v4938_v57 = vld [vmem:[#allocation75_spill] sm:$0xff]  ;;  %v4940_v28 = vld [vmem:[#allocation62_spill] sm:$0xff] }
 0x243   : > { %3092 = vlog2.f32 %v1820_v55 }
 0x244   : > { %2158 = vst [vmem:[%s4147_s15 + $0x260] sm:$0xff] %v2062_v59  ;;  %v2064_v53 = vsub.f32 %v3798_v42, %v1977_v18  ;;  %v2065_v43 = vsub.f32 %v4931_v10, %v1977_v18  ;;  %v1954_v60 = vadd.f32 %v1875_v0, %v4115_v36  ;;  %v4941_v0 = vld [vmem:[#allocation79_spill] sm:$0xff] }
 0x245   : > { %2159 = vst [vmem:[%s4147_s15 + $0x268] sm:$0xff] %v2063_v44 }
 0x246   : > { %2160 = vst [vmem:[%s4147_s15 + $0x270] sm:$0xff] %v2064_v53  ;;  %v2018_v38 = vsub.f32 %v4932_v25, %v1954_v60  ;;  %v2019_v41 = vsub.f32 %v4933_v1, %v1954_v60  ;;  %v4942_v53 = vld [vmem:[#allocation80_spill] sm:$0xff] }
 0x247   : > { %v3091_v8 = vpop.eup %3090  ;;  %2161 = vst [vmem:[%s4147_s15 + $0x278] sm:$0xff] %v2065_v43 }
 0x248   : > { %2114 = vst [vmem:[%s4147_s15 + $0x100] sm:$0xff] %v2018_v38  ;;  %v1877_v37 = vmul.f32 0.6931472, %v3091_v8  ;;  %v1823_v35 = vpop.xlane.xlu2 %1822 }
 0x249   : > { %v3093_v42 = vpop.eup %3092  ;;  %2115 = vst [vmem:[%s4147_s15 + $0x108] sm:$0xff] %v2019_v41  ;;  %3094 = vlog2.f32 %v1823_v35 }
 0x24a   : > { %v1955_v36 = vadd.f32 %v1877_v37, %v4125_v13  ;;  %v1923_v32 = vmul.f32 0.6931472, %v3093_v42 }
 0x24c   : > { %v2020_v3 = vsub.f32 %v4934_v62, %v1955_v36  ;;  %v2021_v6 = vsub.f32 %v4935_v7, %v1955_v36  ;;  %v1978_v14 = vadd.f32 %v1923_v32, %v4131_v16 }
 0x24e   : > { %2116 = vst [vmem:[%s4147_s15 + $0x110] sm:$0xff] %v2020_v3  ;;  %v2066_v27 = vsub.f32 %v4936_v39, %v1978_v14  ;;  %v2067_v11 = vsub.f32 %v4937_v30, %v1978_v14  ;;  %v4944_v30 = vld [vmem:[#allocation86_spill] sm:$0xff] }
 0x24f   : > { %v3095_v5 = vpop.eup %3094  ;;  %2117 = vst [vmem:[%s4147_s15 + $0x118] sm:$0xff] %v2021_v6 }
 0x250   : > { %2162 = vst [vmem:[%s4147_s15 + $0x280] sm:$0xff] %v2066_v27  ;;  %v1925_v15 = vmul.f32 0.6931472, %v3095_v5 }
 0x251   : > { %2163 = vst [vmem:[%s4147_s15 + $0x288] sm:$0xff] %v2067_v11  ;;  %v1754_v13 = vpop.xlane.xlu0 %1753 }
 0x252   : > { %v1979_v24 = vadd.f32 %v1925_v15, %v4138_v9  ;;  %3096 = vlog2.f32 %v1754_v13  ;;  %v4945_v13 = vld [vmem:[#allocation89_spill] sm:$0xff] }
 0x254   : > { %v2068_v52 = vsub.f32 %v4938_v57, %v1979_v24  ;;  %v2069_v16 = vsub.f32 %v4939_v2, %v1979_v24 }
 0x256   : > { %2164 = vst [vmem:[%s4147_s15 + $0x290] sm:$0xff] %v2068_v52 }
 0x257   : > { %2165 = vst [vmem:[%s4147_s15 + $0x298] sm:$0xff] %v2069_v16 }
 0x258   : > { %v3097_v61 = vpop.eup %3096 }
 0x259   : > { %v1879_v22 = vmul.f32 0.6931472, %v3097_v61  ;;  %v1826_v59 = vpop.xlane.xlu0 %1825 }
 0x25a   : > { %3098 = vlog2.f32 %v1826_v59 }
 0x25b   : > { %v1956_v44 = vadd.f32 %v1879_v22, %v4940_v28  ;;  %v1757_v18 = vpop.xlane.xlu1 %1756 }
 0x25c   : > { %3100 = vlog2.f32 %v1757_v18 }
 0x25d   : > { %v2022_v55 = vsub.f32 %v4941_v0, %v1956_v44  ;;  %v2023_v10 = vsub.f32 %v4942_v53, %v1956_v44  ;;  %v4947_v44 = vld [vmem:[#allocation93_spill] sm:$0xff] }
 0x25f   : > { %2118 = vst [vmem:[%s4147_s15 + $0x120] sm:$0xff] %v2022_v55 }
 0x260   : > { %v3099_v9 = vpop.eup %3098  ;;  %2119 = vst [vmem:[%s4147_s15 + $0x128] sm:$0xff] %v2023_v10  ;;  %v1760_v43 = vpop.xlane.xlu2 %1759 }
 0x261   : > { %v1927_v60 = vmul.f32 0.6931472, %v3099_v9  ;;  %3102 = vlog2.f32 %v1760_v43 }
 0x262   : > { %v3101_v25 = vpop.eup %3100 }
 0x263   : > { %v1980_v38 = vadd.f32 %v1927_v60, %v4166_v49  ;;  %v1881_v1 = vmul.f32 0.6931472, %v3101_v25  ;;  %v1829_v41 = vpop.xlane.xlu1 %1828 }
 0x264   : > { %3104 = vlog2.f32 %v1829_v41 }
 0x265   : > { %v2070_v8 = vsub.f32 %v3884_v48, %v1980_v38  ;;  %v2071_v37 = vsub.f32 %v3887_v31, %v1980_v38  ;;  %v1957_v35 = vadd.f32 %v1881_v1, %v4174_v33  ;;  %v4948_v1 = vld [vmem:[#allocation95_spill] sm:$0xff] }
 0x267   : > { %v3103_v42 = vpop.eup %3102  ;;  %2166 = vst [vmem:[%s4147_s15 + $0x2a0] sm:$0xff] %v2070_v8  ;;  %v2024_v36 = vsub.f32 %v3894_v34, %v1957_v35  ;;  %v2025_v32 = vsub.f32 %v3899_v19, %v1957_v35  ;;  %v4950_v35 = vld [vmem:[#allocation96_spill] sm:$0xff] }
 0x268   : > { %2167 = vst [vmem:[%s4147_s15 + $0x2a8] sm:$0xff] %v2071_v37  ;;  %v1883_v49 = vmul.f32 0.6931472, %v3103_v42  ;;  %v1832_v62 = vpop.xlane.xlu2 %1831  ;;  %v4951_v42 = vld [vmem:[#allocation97_spill] sm:$0xff] }
 0x269   : > { %3106 = vlog2.f32 %v1832_v62  ;;  %2120 = vst [vmem:[%s4147_s15 + $0x130] sm:$0xff] %v2024_v36 }
 0x26a   : > { %v1958_v48 = vadd.f32 %v1883_v49, %v4187_v56  ;;  %v3105_v31 = vpop.eup %3104  ;;  %2121 = vst [vmem:[%s4147_s15 + $0x138] sm:$0xff] %v2025_v32 }
 0x26b   : > { %v1929_v7 = vmul.f32 0.6931472, %v3105_v31 }
 0x26c   : > { %v2026_v33 = vsub.f32 %v3910_v29, %v1958_v48  ;;  %v2027_v3 = vsub.f32 %v3913_v12, %v1958_v48  ;;  %v4943_v12 = vld [vmem:[#allocation85_spill] sm:$0xff] }
 0x26d   : > { %v1981_v34 = vadd.f32 %v1929_v7, %v4196_v4 }
 0x26e   : > { %2122 = vst [vmem:[%s4147_s15 + $0x140] sm:$0xff] %v2026_v33 }
 0x26f   : > { %v3107_v19 = vpop.eup %3106  ;;  %2123 = vst [vmem:[%s4147_s15 + $0x148] sm:$0xff] %v2027_v3  ;;  %v2072_v6 = vsub.f32 %v3924_v45, %v1981_v34  ;;  %v2073_v14 = vsub.f32 %v3927_v21, %v1981_v34 }
 0x270   : > { %v1931_v56 = vmul.f32 0.6931472, %v3107_v19 }
 0x271   : > { %v1763_v39 = vpop.xlane.xlu0 %1762  ;;  %2168 = vst [vmem:[%s4147_s15 + $0x2b0] sm:$0xff] %v2072_v6 }
 0x272   : > { %v1982_v27 = vadd.f32 %v1931_v56, %v4206_v47  ;;  %3108 = vlog2.f32 %v1763_v39  ;;  %2169 = vst [vmem:[%s4147_s15 + $0x2b8] sm:$0xff] %v2073_v14  ;;  %v4946_v47 = vld [vmem:[#allocation90_spill] sm:$0xff] }
 0x274   : > { %v2074_v29 = vsub.f32 %v4943_v12, %v1982_v27  ;;  %v2075_v11 = vsub.f32 %v4944_v30, %v1982_v27 }
 0x276   : > { %2170 = vst [vmem:[%s4147_s15 + $0x2c0] sm:$0xff] %v2074_v29 }
 0x277   : > { %2171 = vst [vmem:[%s4147_s15 + $0x2c8] sm:$0xff] %v2075_v11 }
 0x278   : > { %v3109_v4 = vpop.eup %3108 }
 0x279   : > { %v1885_v5 = vmul.f32 0.6931472, %v3109_v4  ;;  %v1835_v45 = vpop.xlane.xlu0 %1834 }
 0x27a   : > { %3110 = vlog2.f32 %v1835_v45 }
 0x27b   : > { %v1959_v21 = vadd.f32 %v1885_v5, %v4217_v20  ;;  %v1766_v15 = vpop.xlane.xlu1 %1765 }
 0x27c   : > { %3112 = vlog2.f32 %v1766_v15 }
 0x27d   : > { %v2028_v24 = vsub.f32 %v4945_v13, %v1959_v21  ;;  %v2029_v57 = vsub.f32 %v4946_v47, %v1959_v21 }
 0x27f   : > { %2124 = vst [vmem:[%s4147_s15 + $0x150] sm:$0xff] %v2028_v24 }
 0x280   : > { %v3111_v52 = vpop.eup %3110  ;;  %2125 = vst [vmem:[%s4147_s15 + $0x158] sm:$0xff] %v2029_v57  ;;  %v1769_v2 = vpop.xlane.xlu2 %1768 }
 0x281   : > { %v1933_v16 = vmul.f32 0.6931472, %v3111_v52  ;;  %3114 = vlog2.f32 %v1769_v2 }
 0x282   : > { %v3113_v61 = vpop.eup %3112 }
 0x283   : > { %v1983_v22 = vadd.f32 %v1933_v16, %v4232_v51  ;;  %v1887_v59 = vmul.f32 0.6931472, %v3113_v61  ;;  %v1838_v20 = vpop.xlane.xlu1 %1837 }
 0x284   : > { %3116 = vlog2.f32 %v1838_v20 }
 0x285   : > { %v2076_v28 = vsub.f32 %v3970_v46, %v1983_v22  ;;  %v2077_v18 = vsub.f32 %v4947_v44, %v1983_v22  ;;  %v1960_v0 = vadd.f32 %v1887_v59, %v4240_v50 }
 0x287   : > { %v3115_v55 = vpop.eup %3114  ;;  %2172 = vst [vmem:[%s4147_s15 + $0x2d0] sm:$0xff] %v2076_v28  ;;  %v2030_v53 = vsub.f32 %v3976_v58, %v1960_v0  ;;  %v2031_v10 = vsub.f32 %v4881_v26, %v1960_v0 }
 0x288   : > { %2173 = vst [vmem:[%s4147_s15 + $0x2d8] sm:$0xff] %v2077_v18  ;;  %v1889_v51 = vmul.f32 0.6931472, %v3115_v55  ;;  %v1841_v9 = vpop.xlane.xlu2 %1840 }
 0x289   : > { %3118 = vlog2.f32 %v1841_v9  ;;  %2126 = vst [vmem:[%s4147_s15 + $0x160] sm:$0xff] %v2030_v53 }
 0x28a   : > { %v1961_v46 = vadd.f32 %v1889_v51, %v4253_v63  ;;  %v3117_v43 = vpop.eup %3116  ;;  %2127 = vst [vmem:[%s4147_s15 + $0x168] sm:$0xff] %v2031_v10  ;;  %v4949_v63 = vld [vmem:[#allocation61_spill] sm:$0xff] }
 0x28b   : > { %v1935_v25 = vmul.f32 0.6931472, %v3117_v43 }
 0x28c   : > { %v2032_v50 = vsub.f32 %v4000_v17, %v1961_v46  ;;  %v2033_v60 = vsub.f32 %v4003_v54, %v1961_v46 }
 0x28d   : > { %v1984_v58 = vadd.f32 %v1935_v25, %v4262_v40 }
 0x28e   : > { %2128 = vst [vmem:[%s4147_s15 + $0x170] sm:$0xff] %v2032_v50 }
 0x28f   : > { %v3119_v26 = vpop.eup %3118  ;;  %2129 = vst [vmem:[%s4147_s15 + $0x178] sm:$0xff] %v2033_v60  ;;  %v2078_v38 = vsub.f32 %v4008_v23, %v1984_v58  ;;  %v2079_v41 = vsub.f32 %v4948_v1, %v1984_v58 }
 0x290   : > { %v1937_v8 = vmul.f32 0.6931472, %v3119_v26 }
 0x291   : > { %2174 = vst [vmem:[%s4147_s15 + $0x2e0] sm:$0xff] %v2078_v38 }
 0x292   : > { %v1985_v37 = vadd.f32 %v1937_v8, %v4949_v63  ;;  %2175 = vst [vmem:[%s4147_s15 + $0x2e8] sm:$0xff] %v2079_v41 }
 0x293   : > { %2184 = sbr.rel (!%p3289_p3) target bundleno = 711 (0x2c7), region = 40 }
 0x294   : > { %v2080_v17 = vsub.f32 %v4950_v35, %v1985_v37  ;;  %v2081_v36 = vsub.f32 %v4951_v42, %v1985_v37 }
 0x296   : > { %2176 = vst [vmem:[%s4147_s15 + $0x2f0] sm:$0xff] %v2080_v17 }
 0x297   : > { %2177 = vst [vmem:[%s4147_s15 + $0x2f8] sm:$0xff] %v2081_v36 }
 0x298 LB: >> { %s2284_s17 = sadd.s32 1, %s3210_s11  ;;  %s2210_s12 = sadd.s32 1, %s3214_s12   ;;  %s3214_s12 = sphi %s4474_s12, %s2210_s12   ;;  %s3210_s11 = sphi %s4472_s11, %s4956_s11   ;;  %s3206_s10 = sphi %s4953_s10, %s4955_s10   ;;  %s3202_s9 = sphi %s4952_s9, %s4954_s9  }
 0x299   : >> { %p2286_p9 = scmp.ge.s32.totalorder %s2284_s17, 1  ;;  %p2209_p10 = scmp.ge.s32.totalorder %s2210_s12, 1 }
 0x29a   : > { %s2300_s24 = scalar_lea.vmem (%p2209_p10), %s4147_s15, 512 [#allocation2]   ;;  %s2302_s27 = scalar_lea.vmem (%p2209_p10), %s4464_s8, 256  }
 0x29b   : >> { %s4964_s17 = smov (%p2286_p9, %s2284_s17), 0  ;;  %s3224_s28 = smov (%p2209_p10), 0  }
 0x29c   : >> { %s2562_s23 = sshll.u32 %s4964_s17, 9  ;;  %s2564_s13 = sshll.u32 %s4964_s17, 8 }
 0x29d   : >> { %s4518_s14 = scalar_lea.vmem %s4147_s15, %s2562_s23 [#allocation2]   ;;  %s4521_s20 = scalar_lea.vmem %s4464_s8, %s2564_s13  }
 0x29e   : >> { %v2217_v23 = vld [vmem:[%s3206_s10] sm:$0xff]  ;;  %v2249_v39 = vld [vmem:[%s3206_s10 + $0x8] sm:$0xff]  ;;  %s4956_s11 = smov %s4964_s17  ;;  %s3228_s22 = smov (%p2209_p10), 0  }
 0x29f   : >> { %v2219_v54 = vld [vmem:[%s3206_s10 + $0x20] sm:$0xff]  ;;  %2218 = vst [vmem:[%s3202_s9] sm:$0xff] %v2217_v23  ;;  %v2251_v27 = vld [vmem:[%s3206_s10 + $0x28] sm:$0xff] }
 0x2a0   : >> { %v2221_v40 = vld [vmem:[%s3206_s10 + $0x40] sm:$0xff]  ;;  %2220 = vst [vmem:[%s3202_s9 + $0x10] sm:$0xff] %v2219_v54  ;;  %v2253_v12 = vld [vmem:[%s3206_s10 + $0x48] sm:$0xff] }
 0x2a1   : >> { %v2223_v32 = vld [vmem:[%s3206_s10 + $0x60] sm:$0xff]  ;;  %2222 = vst [vmem:[%s3202_s9 + $0x20] sm:$0xff] %v2221_v40  ;;  %v2255_v29 = vld [vmem:[%s3206_s10 + $0x68] sm:$0xff] }
 0x2a2   : >> { %v2225_v49 = vld [vmem:[%s3206_s10 + $0x80] sm:$0xff]  ;;  %2224 = vst [vmem:[%s3202_s9 + $0x30] sm:$0xff] %v2223_v32  ;;  %v2257_v30 = vld [vmem:[%s3206_s10 + $0x88] sm:$0xff] }
 0x2a3   : >> { %v2227_v62 = vld [vmem:[%s3206_s10 + $0xa0] sm:$0xff]  ;;  %2226 = vst [vmem:[%s3202_s9 + $0x40] sm:$0xff] %v2225_v49  ;;  %v2259_v11 = vld [vmem:[%s3206_s10 + $0xa8] sm:$0xff] }
 0x2a4   : >> { %v2229_v48 = vld [vmem:[%s3206_s10 + $0xc0] sm:$0xff]  ;;  %2228 = vst [vmem:[%s3202_s9 + $0x50] sm:$0xff] %v2227_v62  ;;  %v2261_v4 = vld [vmem:[%s3206_s10 + $0xc8] sm:$0xff] }
 0x2a5   : >> { %v2231_v31 = vld [vmem:[%s3206_s10 + $0xe0] sm:$0xff]  ;;  %2230 = vst [vmem:[%s3202_s9 + $0x60] sm:$0xff] %v2229_v48  ;;  %v2263_v5 = vld [vmem:[%s3206_s10 + $0xe8] sm:$0xff] }
 0x2a6   : >> { %v2233_v33 = vld [vmem:[%s3206_s10 + $0x100] sm:$0xff]  ;;  %2232 = vst [vmem:[%s3202_s9 + $0x70] sm:$0xff] %v2231_v31  ;;  %v2265_v45 = vld [vmem:[%s3206_s10 + $0x108] sm:$0xff] }
 0x2a7   : >> { %v2235_v3 = vld [vmem:[%s3206_s10 + $0x120] sm:$0xff]  ;;  %2234 = vst [vmem:[%s3202_s9 + $0x80] sm:$0xff] %v2233_v33  ;;  %v2267_v21 = vld [vmem:[%s3206_s10 + $0x128] sm:$0xff] }
 0x2a8   : >> { %v2237_v7 = vld [vmem:[%s3206_s10 + $0x140] sm:$0xff]  ;;  %2236 = vst [vmem:[%s3202_s9 + $0x90] sm:$0xff] %v2235_v3  ;;  %v2269_v15 = vld [vmem:[%s3206_s10 + $0x148] sm:$0xff] }
 0x2a9   : >> { %v2239_v34 = vld [vmem:[%s3206_s10 + $0x160] sm:$0xff]  ;;  %2238 = vst [vmem:[%s3202_s9 + $0xa0] sm:$0xff] %v2237_v7  ;;  %v2271_v13 = vld [vmem:[%s3206_s10 + $0x168] sm:$0xff] }
 0x2aa   : >> { %v2241_v19 = vld [vmem:[%s3206_s10 + $0x180] sm:$0xff]  ;;  %2240 = vst [vmem:[%s3202_s9 + $0xb0] sm:$0xff] %v2239_v34  ;;  %v2273_v24 = vld [vmem:[%s3206_s10 + $0x188] sm:$0xff] }
 0x2ab   : >> { %v2243_v6 = vld [vmem:[%s3206_s10 + $0x1a0] sm:$0xff]  ;;  %2242 = vst [vmem:[%s3202_s9 + $0xc0] sm:$0xff] %v2241_v19  ;;  %v2275_v47 = vld [vmem:[%s3206_s10 + $0x1a8] sm:$0xff] }
 0x2ac   : >> { %v2245_v14 = vld [vmem:[%s3206_s10 + $0x1c0] sm:$0xff]  ;;  %2244 = vst [vmem:[%s3202_s9 + $0xd0] sm:$0xff] %v2243_v6  ;;  %v2277_v57 = vld [vmem:[%s3206_s10 + $0x1c8] sm:$0xff] }
 0x2ad   : >> { %v2247_v56 = vld [vmem:[%s3206_s10 + $0x1e0] sm:$0xff]  ;;  %2246 = vst [vmem:[%s3202_s9 + $0xe0] sm:$0xff] %v2245_v14  ;;  %v2279_v52 = vld [vmem:[%s3206_s10 + $0x1e8] sm:$0xff]  ;;  %s4955_s10 = smov %s4518_s14 }
 0x2ae   : >> { %2248 = vst [vmem:[%s3202_s9 + $0xf0] sm:$0xff] %v2247_v56 }
 0x2af   : >> { %2250 = vst [vmem:[%s3202_s9 + $0x8] sm:$0xff] %v2249_v39 }
 0x2b0   : >> { %2252 = vst [vmem:[%s3202_s9 + $0x18] sm:$0xff] %v2251_v27 }
 0x2b1   : >> { %2254 = vst [vmem:[%s3202_s9 + $0x28] sm:$0xff] %v2253_v12 }
 0x2b2   : >> { %2256 = vst [vmem:[%s3202_s9 + $0x38] sm:$0xff] %v2255_v29 }
 0x2b3   : >> { %2258 = vst [vmem:[%s3202_s9 + $0x48] sm:$0xff] %v2257_v30 }
 0x2b4   : >> { %2260 = vst [vmem:[%s3202_s9 + $0x58] sm:$0xff] %v2259_v11 }
 0x2b5   : >> { %2262 = vst [vmem:[%s3202_s9 + $0x68] sm:$0xff] %v2261_v4 }
 0x2b6   : >> { %2264 = vst [vmem:[%s3202_s9 + $0x78] sm:$0xff] %v2263_v5 }
 0x2b7   : >> { %2266 = vst [vmem:[%s3202_s9 + $0x88] sm:$0xff] %v2265_v45 }
 0x2b8   : >> { %2268 = vst [vmem:[%s3202_s9 + $0x98] sm:$0xff] %v2267_v21 }
 0x2b9   : >> { %2270 = vst [vmem:[%s3202_s9 + $0xa8] sm:$0xff] %v2269_v15 }
 0x2ba   : >> { %2272 = vst [vmem:[%s3202_s9 + $0xb8] sm:$0xff] %v2271_v13  ;;  %2212 = sbr.rel (!%p2209_p10) target bundleno = 664 (0x298), region = 101 }
 0x2bb   : >> { %2274 = vst [vmem:[%s3202_s9 + $0xc8] sm:$0xff] %v2273_v24 }
 0x2bc   : >> { %2276 = vst [vmem:[%s3202_s9 + $0xd8] sm:$0xff] %v2275_v47 }
 0x2bd   : >> { %2278 = vst [vmem:[%s3202_s9 + $0xe8] sm:$0xff] %v2277_v57 }
 0x2be   : >> { %2280 = vst [vmem:[%s3202_s9 + $0xf8] sm:$0xff] %v2279_v52  ;;  %s4954_s9 = smov %s4521_s20 }
 0x2bf LB: >> { %v2314_v2 = vld [vmem:[%s3222_s24] sm:$0xff]  ;;  %v2316_v16 = vld [vmem:[%s3222_s24 + $0x8] sm:$0xff]  ;;  %s2321_s26 = sadd.s32 1, %s3226_s28  ;;  %s2307_s22 = sadd.s32 1, %s3230_s22   ;;  %s3230_s22 = sphi %s3228_s22, %s2307_s22   ;;  %s3226_s28 = sphi %s3224_s28, %s3225_s28   ;;  %s3222_s24 = sphi %s2300_s24, %s2571_s24   ;;  %s3218_s27 = sphi %s2302_s27, %s2573_s27  }
 0x2c0   : >> { %2315 = vst [vmem:[%s3218_s27] sm:$0xff] %v2314_v2  ;;  %p2323_p11 = scmp.ge.s32.totalorder %s2321_s26, 3  ;;  %p2306_p12 = scmp.ge.s32.totalorder %s2307_s22, 3 }
 0x2c1   : >> { %2317 = vst [vmem:[%s3218_s27 + $0x8] sm:$0xff] %v2316_v16 }
 0x2c2   : >> { %s4966_s26 = smov (%p2323_p11, %s2321_s26), 0  ;;  %2309 = sbr.rel (!%p2306_p12) target bundleno = 703 (0x2bf), region = 112 }
 0x2c3   : >> { %s2566_s29 = sshll.u32 %s4966_s26, 5  ;;  %s2568_s30 = sshll.u32 %s4966_s26, 4 }
 0x2c4   : >> { %s2570_s5 = scalar_lea.vmem %s4147_s15, %s2566_s29 [#allocation2]  ;;  %s2572_s6 = scalar_lea.vmem %s4464_s8, %s2568_s30 }
 0x2c5   : >> { %s2571_s24 = scalar_lea.vmem %s2570_s5, 512 [#allocation2]   ;;  %s2573_s27 = scalar_lea.vmem %s2572_s6, 256  }
 0x2c6   : >> { %s3225_s28 = smov %s4966_s26  }
 0x2c7 PF: > { %s14_s19 = sadd.s32 1, %s3198_s19   ;;  %s4957_s15 = smov %s3186_s16 }
 0x2c8   : > { %p11_p13 = scmp.ge.s32.totalorder %s14_s19, 4   ;;  %s4958_s16 = smov %s3298_s25 }
 0x2c9   : > { %s4959_s17 = smov %s3194_s18  ;;  %s4960_s18 = smov %s4962_s21 }
 0x2ca   :  { %13 = sbr.rel (!%p11_p13) target bundleno = 3 (0x3), region = 123 }

</bundles_post_ra>
